<compile_context>
chip_gen: v7x
topology: tpu7x:2x2x1
jax: 0.10.0
libtpu: 0.0.40
codegen_flags: <defaults>
</compile_context>

<pallas_src>
import math

import jax
import jax.numpy as jnp
from jax.experimental import pallas as pl
from jax.experimental.pallas import tpu as pltpu

NUM_LAYERS = 15
NUM_FEATURES = 64
BN_EPS = 1e-5

_TARGET_PIX = 4096                       # output pixels per grid step
_VMEM_LIMIT = 48 * 1024 * 1024           # fits v7x's 64 MiB physical VMEM

_CPARAMS = pltpu.CompilerParams(
    dimension_semantics=("parallel",),   # independent output tiles -> megacore
    vmem_limit_bytes=_VMEM_LIMIT,
)


# ---------------------------------------------------------------------------
# Pallas kernels
# ---------------------------------------------------------------------------
def _l0_conv_kernel(p_ref, w_ref, epi_ref, o_ref):
    # First layer (stride-2, Cin=3): im2col patches @ weights, +bias, ReLU, BN.
    y = jnp.dot(p_ref[...], w_ref[...], preferred_element_type=jnp.float32)
    y = jnp.maximum(y + epi_ref[0:1, :], 0.0)
    o_ref[...] = (y * epi_ref[1:2, :] + epi_ref[2:3, :]).astype(o_ref.dtype)


def _final_deconv_kernel(p_ref, w_ref, b_ref, r_ref, o_ref):
    # Merged 4-phase transposed conv: matmul + bias + residual add + ReLU.
    y = jnp.dot(p_ref[...], w_ref[...], preferred_element_type=jnp.float32)
    y = y + b_ref[...] + r_ref[...]
    o_ref[...] = jnp.maximum(y, 0.0).astype(o_ref.dtype)


def _implicit_gemm_patches(xh_ref):
    """Assemble (TR*W, 9*C) im2col patches in VMEM from a halo'd row slab."""
    trp2, wp, c = xh_ref.shape
    tr, w = trp2 - 2, wp - 2
    taps = [xh_ref[dy:dy + tr, dx:dx + w, :].reshape(tr * w, c)
            for dy in range(3) for dx in range(3)]          # (dy, dx, c) order
    return jnp.concatenate(taps, axis=-1), tr, w


def _conv3x3_kernel(xh_ref, w_ref, epi_ref, o_ref):
    # 3x3 stride-1 conv as a single big MXU matmul; bias/ReLU/BN fused.
    p, tr, w = _implicit_gemm_patches(xh_ref)
    y = jnp.dot(p, w_ref[...], preferred_element_type=jnp.float32)
    y = jnp.maximum(y + epi_ref[0:1, :], 0.0)
    y = y * epi_ref[1:2, :] + epi_ref[2:3, :]
    o_ref[...] = y.reshape(tr, w, -1).astype(o_ref.dtype)


def _conv3x3_skip_kernel(xh_ref, w_ref, epi_ref, s_ref, o_ref):
    # Same as above plus fused skip-connection add + ReLU epilogue.
    p, tr, w = _implicit_gemm_patches(xh_ref)
    y = jnp.dot(p, w_ref[...], preferred_element_type=jnp.float32)
    y = jnp.maximum(y + epi_ref[0:1, :], 0.0)
    y = y * epi_ref[1:2, :] + epi_ref[2:3, :]
    y = y.reshape(tr, w, -1) + s_ref[...].astype(jnp.float32)
    o_ref[...] = jnp.maximum(y, 0.0).astype(o_ref.dtype)


# ---------------------------------------------------------------------------
# Tiling helpers
# ---------------------------------------------------------------------------
def _round_up(x, m):
    return (x + m - 1) // m * m


def _pick_tile_m(M, target=_TARGET_PIX):
    """Row-tile for the plain matmul path (layer 0 / final layer)."""
    if M <= target:
        # >=2 tiles when comfortably large so both v7x TensorCores get work.
        if M >= 512 and M % 2 == 0 and (M // 2) % 8 == 0:
            return M // 2
        return M
    # Prefer a divisor of M: avoids an extra HBM padding copy of the patches.
    for tm in range(target, 7, -1):
        if M % tm == 0 and tm % 8 == 0:
            return tm
    return target  # rare fallback -> padded tail tile


def _pick_tile_rows(N, H, W):
    """Output-row tile for the implicit-GEMM conv path (must divide H)."""
    rows_target = max(1, _TARGET_PIX // max(W, 1))
    if N == 1:
        # Keep >=2 grid steps so both v7x TensorCores get work.
        rows_target = min(rows_target, max(1, H // 2))
    rows_target = min(rows_target, H)
    best = 1
    for tr in range(1, rows_target + 1):
        if H % tr == 0:
            best = tr
    return best


# ---------------------------------------------------------------------------
# pallas_call wrappers
# ---------------------------------------------------------------------------
def _tiled_matmul(kernel_fn, patches, w2d, const_ops, tiled_ops, out_cols,
                  out_dtype):
    """patches:(M,K) @ w2d:(K,out_cols); const_ops resident, tiled_ops M-tiled."""
    M, K = patches.shape
    TM = _pick_tile_m(M)
    Mp = _round_up(M, TM)

    patches = patches.astype(jnp.bfloat16)
    w2d = w2d.astype(jnp.bfloat16)
    if Mp != M:  # rare fallback; costs one extra HBM copy of the patch slab
        patches = jnp.pad(patches, ((0, Mp - M), (0, 0)))
        tiled_ops = [jnp.pad(t, ((0, Mp - M), (0, 0))) for t in tiled_ops]

    in_specs = [pl.BlockSpec((TM, K), lambda i: (i, 0)),      # streamed tile
                pl.BlockSpec(w2d.shape, lambda i: (0, 0))]    # resident weights
    in_specs += [pl.BlockSpec(c.shape, lambda i, nd=c.ndim: (0,) * nd)
                 for c in const_ops]
    in_specs += [pl.BlockSpec((TM, t.shape[1]), lambda i: (i, 0))
                 for t in tiled_ops]

    out = pl.pallas_call(
        kernel_fn,
        out_shape=jax.ShapeDtypeStruct((Mp, out_cols), out_dtype),
        grid=(Mp // TM,),
        in_specs=in_specs,
        out_specs=pl.BlockSpec((TM, out_cols), lambda i: (i, 0)),
        compiler_params=_CPARAMS,
    )(patches, w2d, *const_ops, *tiled_ops)
    return out[:M] if Mp != M else out


def conv3x3_igemm(x, w2d, epi, skip=None, out_dtype=jnp.bfloat16):
    """3x3 stride-1 conv (pad 1) via in-kernel implicit GEMM.

    x: (N,H,W,C) bf16; w2d: (9*C, Cout) bf16 with taps ordered (dy,dx,c);
    epi: (3, Cout) f32 rows [bias, bn_scale, bn_shift]; skip: optional
    (N,H,W,Cout) added (then ReLU'd) after the BN epilogue.
    """
    N, H, W, C = x.shape
    Cout = w2d.shape[1]
    assert w2d.shape[0] == 9 * C
    TR = _pick_tile_rows(N, H, W)
    n_tiles = H // TR
    NT = N * n_tiles
    Wp = W + 2

    # Halo'd row slabs: only ~(TR+2)/TR x activation traffic, no 9x im2col.
    xp = jnp.pad(x, ((0, 0), (1, 1), (1, 1), (0, 0)))          # (N,H+2,W+2,C)
    row_idx = jnp.arange(n_tiles)[:, None] * TR + jnp.arange(TR + 2)[None, :]
    xh = xp[:, row_idx].reshape(NT, TR + 2, Wp, C)             # (NT,TR+2,Wp,C)

    in_specs = [
        pl.BlockSpec((None, TR + 2, Wp, C), lambda i: (i, 0, 0, 0)),
        pl.BlockSpec((9 * C, Cout), lambda i: (0, 0)),         # resident weights
        pl.BlockSpec((3, Cout), lambda i: (0, 0)),             # folded epilogue
    ]
    args = [xh, w2d, epi]
    kernel = _conv3x3_kernel
    if skip is not None:
        in_specs.append(pl.BlockSpec((None, TR, W, Cout), lambda i: (i, 0, 0, 0)))
        args.append(skip.reshape(NT, TR, W, Cout))
        kernel = _conv3x3_skip_kernel

    out = pl.pallas_call(
        kernel,
        out_shape=jax.ShapeDtypeStruct((NT, TR, W, Cout), out_dtype),
        grid=(NT,),
        in_specs=in_specs,
        out_specs=pl.BlockSpec((None, TR, W, Cout), lambda i: (i, 0, 0, 0)),
        compiler_params=_CPARAMS,
    )(*args)
    return out.reshape(N, H, W, Cout)


# ---------------------------------------------------------------------------
# JAX glue: im2col (layer 0 only), parameter init
# ---------------------------------------------------------------------------
def im2col(x, stride, pad, k=3):
    """x: (N,H,W,C) -> (N*Ho*Wo, k*k*C), taps ordered (dy, dx, c)."""
    N, H, W, C = x.shape
    xp = jnp.pad(x, ((0, 0), (pad, pad), (pad, pad), (0, 0)))
    Hp, Wp = H + 2 * pad, W + 2 * pad
    Ho = (Hp - k) // stride + 1
    Wo = (Wp - k) // stride + 1
    cols = [xp[:, dy:dy + stride * (Ho - 1) + 1:stride,
               dx:dx + stride * (Wo - 1) + 1:stride, :]
            for dy in range(k) for dx in range(k)]
    patches = jnp.concatenate(cols, axis=-1)
    return patches.reshape(N * Ho * Wo, k * k * C), (N, Ho, Wo)


def init_params(key):
    """Deterministic synthetic parameters matching REDNet30's shapes."""
    keys = iter(jax.random.split(key, 16 * NUM_LAYERS))
    nk = lambda: next(keys)

    def bn_fold(cout):
        gamma = 1.0 + 0.1 * jax.random.normal(nk(), (cout,), jnp.float32)
        beta = 0.1 * jax.random.normal(nk(), (cout,), jnp.float32)
        rmean = 0.1 * jax.random.normal(nk(), (cout,), jnp.float32)
        rvar = 1.0 + 0.1 * jax.random.uniform(nk(), (cout,), jnp.float32)
        scale = gamma / jnp.sqrt(rvar + BN_EPS)
        shift = beta - rmean * scale
        return scale, shift

    conv_layers = []
    cin = 3
    for i in range(NUM_LAYERS):
        cout = NUM_FEATURES
        # PyTorch Conv2d weight layout: (C_out, C_in, kH, kW)
        w_oihw = jax.random.normal(nk(), (cout, cin, 3, 3), jnp.float32) \
            * jnp.sqrt(2.0 / (cin * 9))
        b = 0.01 * jax.random.normal(nk(), (cout,), jnp.float32)
        scale, shift = bn_fold(cout)
        w_hwio = jnp.transpose(w_oihw, (2, 3, 1, 0))          # (kH,kW,Cin,Cout)
        conv_layers.append(dict(
            w2d=w_hwio.reshape(9 * cin, cout).astype(jnp.bfloat16),
            epi=jnp.stack([b, scale, shift]).astype(jnp.float32),
            b=b, scale=scale, shift=shift,
            stride=2 if i == 0 else 1))
        cin = NUM_FEATURES

    deconv_layers = []
    for i in range(NUM_LAYERS):
        cout = NUM_FEATURES if i < NUM_LAYERS - 1 else 3
        # PyTorch ConvTranspose2d weight layout: (C_in, C_out, kH, kW)
        w_t = jax.random.normal(nk(), (NUM_FEATURES, cout, 3, 3), jnp.float32) \
            * jnp.sqrt(2.0 / (NUM_FEATURES * 9))
        b = 0.01 * jax.random.normal(nk(), (cout,), jnp.float32)
        # Equivalent forward-conv kernel: flip spatial taps, swap in/out chans.
        w_hwio = jnp.transpose(w_t[:, :, ::-1, ::-1], (2, 3, 0, 1)) \
            .astype(jnp.bfloat16)                              # (3,3,Cin,Cout)
        if i < NUM_LAYERS - 1:
            scale, shift = bn_fold(cout)
            deconv_layers.append(dict(
                w2d=w_hwio.reshape(9 * NUM_FEATURES, cout),
                epi=jnp.stack([b, scale, shift]).astype(jnp.float32),
                b=b, scale=scale, shift=shift))
        else:
            # Last layer: stride-2 transposed conv, merged 4-phase weight.
            # Patch row blocks: [x | sw | sh | shw]; columns (py, px, c).
            Wf = w_hwio                                        # (3,3,64,3)
            Z = jnp.zeros((NUM_FEATURES, 3), jnp.bfloat16)
            wm = jnp.concatenate([
                jnp.concatenate([Wf[1, 1], Wf[1, 0], Wf[0, 1], Wf[0, 0]], axis=1),
                jnp.concatenate([Z,        Wf[1, 2], Z,        Wf[0, 2]], axis=1),
                jnp.concatenate([Z,        Z,        Wf[2, 1], Wf[2, 0]], axis=1),
                jnp.concatenate([Z,        Z,        Z,        Wf[2, 2]], axis=1),
            ], axis=0)                                         # (256, 12)
            deconv_layers.append(dict(
                w_hwio=Wf, b=b, wm=wm,
                b12=jnp.tile(b, 4).astype(jnp.float32)))       # (12,)

    return dict(conv=conv_layers, deconv=deconv_layers)


# ---------------------------------------------------------------------------
# Forward pass (Pallas kernels on the hot path)
# ---------------------------------------------------------------------------
def rednet30_forward(x_nchw, params):
    # TODO(synk): BatchNorm2d is applied in eval mode (running stats folded to
    # per-channel scale/shift); train-mode batch statistics are not reproduced.
    x_nhwc = jnp.transpose(x_nchw, (0, 2, 3, 1)).astype(jnp.float32)   # NCHW->NHWC
    residual = x_nhwc                                                  # keep f32
    x = x_nhwc.astype(jnp.bfloat16)
    max_feats = math.ceil(NUM_LAYERS / 2) - 1

    # ---- encoder ----
    # Layer 0: stride-2 conv, Cin=3 -> tiny 27-wide patches, plain matmul path.
    L0 = params["conv"][0]
    patches, (n, ho, wo) = im2col(x, stride=2, pad=1)
    y = _tiled_matmul(_l0_conv_kernel, patches, L0["w2d"], [L0["epi"]], [],
                      NUM_FEATURES, jnp.bfloat16)
    x = y.reshape(n, ho, wo, NUM_FEATURES)

    conv_feats = []
    for i in range(1, NUM_LAYERS):
        L = params["conv"][i]
        x = conv3x3_igemm(x, L["w2d"], L["epi"])
        if (i + 1) % 2 == 0 and len(conv_feats) < max_feats:
            conv_feats.append(x)

    # ---- decoder (stride-1 transposed convs == convs with flipped kernels) ----
    feats_idx = 0
    for i in range(NUM_LAYERS - 1):
        L = params["deconv"][i]
        skip = None
        if ((i + 1 + NUM_LAYERS) % 2 == 0) and (feats_idx < len(conv_feats)):
            skip = conv_feats[-(feats_idx + 1)]
            feats_idx += 1
        x = conv3x3_igemm(x, L["w2d"], L["epi"], skip=skip)

    # ---- final ConvTranspose2d(64->3, k=3, stride=2, pad=1, output_padding=1)
    # All 4 output-parity phases merged into ONE (M,256)@(256,12) pallas_call
    # with the residual add + ReLU fused in-kernel.
    L = params["deconv"][-1]
    n, h, w, _ = x.shape
    sw = jnp.pad(x[:, :, 1:, :], ((0, 0), (0, 0), (0, 1), (0, 0)))    # x[y, x+1]
    sh = jnp.pad(x[:, 1:, :, :], ((0, 0), (0, 1), (0, 0), (0, 0)))    # x[y+1, x]
    shw = jnp.pad(x[:, 1:, 1:, :], ((0, 0), (0, 1), (0, 1), (0, 0)))  # x[y+1,x+1]
    M = n * h * w
    patches = jnp.concatenate([x, sw, sh, shw], axis=-1).reshape(M, 4 * NUM_FEATURES)
    res12 = residual.reshape(n, h, 2, w, 2, 3)
    res12 = jnp.transpose(res12, (0, 1, 3, 2, 4, 5)).reshape(M, 12)   # (py,px,c)
    out12 = _tiled_matmul(_final_deconv_kernel, patches, L["wm"],
                          [L["b12"].reshape(1, 12)], [res12], 12, jnp.float32)
    o = out12.reshape(n, h, w, 2, 2, 3)                                # [...,py,px,c]
    o = jnp.transpose(o, (0, 1, 3, 2, 4, 5)).reshape(n, 2 * h, 2 * w, 3)
    return jnp.transpose(o, (0, 3, 1, 2))                              # NHWC -> NCHW


# ---------------------------------------------------------------------------
# Pure-JAX reference (lax convolutions, same bf16 activation quantization)
# ---------------------------------------------------------------------------
def ref_forward(x_nchw, params):
    x0 = jnp.transpose(x_nchw, (0, 2, 3, 1)).astype(jnp.float32)
    residual = x0
    x = x0.astype(jnp.bfloat16)
    dn = ("NHWC", "HWIO", "NHWC")
    max_feats = math.ceil(NUM_LAYERS / 2) - 1

    conv_feats = []
    for i in range(NUM_LAYERS):
        L = params["conv"][i]
        cin = 3 if i == 0 else NUM_FEATURES
        w = L["w2d"].reshape(3, 3, cin, NUM_FEATURES)
        y = jax.lax.conv_general_dilated(x, w, (L["stride"],) * 2,
                                         ((1, 1), (1, 1)), dimension_numbers=dn,
                                         preferred_element_type=jnp.float32)
        y = jnp.maximum(y + L["b"], 0.0)
        x = (y * L["scale"] + L["shift"]).astype(jnp.bfloat16)
        if (i + 1) % 2 == 0 and len(conv_feats) < max_feats:
            conv_feats.append(x)

    feats_idx = 0
    for i in range(NUM_LAYERS):
        L = params["deconv"][i]
        if i < NUM_LAYERS - 1:
            w = L["w2d"].reshape(3, 3, NUM_FEATURES, NUM_FEATURES)
            y = jax.lax.conv_general_dilated(x, w, (1, 1), ((1, 1), (1, 1)),
                                             dimension_numbers=dn,
                                             preferred_element_type=jnp.float32)
            y = jnp.maximum(y + L["b"], 0.0)
            y = y * L["scale"] + L["shift"]
            if (i + 1 + NUM_LAYERS) % 2 == 0 and feats_idx < len(conv_feats):
                feat = conv_feats[-(feats_idx + 1)]
                feats_idx += 1
                y = jnp.maximum(y + feat.astype(jnp.float32), 0.0)
            x = y.astype(jnp.bfloat16)
        else:
            y = jax.lax.conv_general_dilated(x, L["w_hwio"], (1, 1),
                                             ((1, 2), (1, 2)), lhs_dilation=(2, 2),
                                             dimension_numbers=dn,
                                             preferred_element_type=jnp.float32)
            x = jnp.maximum(y + L["b"] + residual, 0.0)

    return jnp.transpose(x, (0, 3, 1, 2))


if __name__ == "__main__":
    key = jax.random.PRNGKey(0)
    pkey, xkey = jax.random.split(key)
    params = init_params(pkey)
    x = jax.random.normal(xkey, (2, 3, 16, 16), jnp.float32)

    fwd = jax.jit(lambda inp: rednet30_forward(inp, params))
    out = jax.block_until_ready(fwd(x))
    assert out.shape == (2, 3, 16, 16), out.shape
    assert out.dtype == jnp.float32, out.dtype

    ref = jax.block_until_ready(ref_forward(x, params))
    rel_err = float(jnp.max(jnp.abs(out - ref)) / (jnp.max(jnp.abs(ref)) + 1e-8))
    assert rel_err < 1e-2, f"mismatch vs lax reference: rel_err={rel_err}"

    print("KERNEL_OK")
</pallas_src>

<mosaic_0001>
module attributes {stable_mosaic.version = 11 : i64} {
  func.func @_l0_conv_kernel(%arg0: i32, %arg1: memref<128x27xbf16, #tpu.memory_space<vmem>>, %arg2: memref<27x64xbf16, #tpu.memory_space<vmem>>, %arg3: memref<3x64xf32, #tpu.memory_space<vmem>>, %arg4: memref<128x64xbf16, #tpu.memory_space<vmem>>) attributes {dimension_semantics = [#tpu.dimension_semantics<parallel>], iteration_bounds = array<i64: 1>, scalar_prefetch = 0 : i64, scratch_operands = 0 : i64, tpu.core_type = #tpu.core_type<tc>, window_params = [{transform_indices = @transform_0, window_bounds = array<i64: 128, 27>}, {pipeline_mode = #tpu.pipeline_mode<synchronous>, transform_indices = @transform_1, window_bounds = array<i64: 27, 64>}, {pipeline_mode = #tpu.pipeline_mode<synchronous>, transform_indices = @transform_2, window_bounds = array<i64: 3, 64>}, {transform_indices = @transform_3, window_bounds = array<i64: 128, 64>}]} {
    %c0 = arith.constant 0 : index
    %c0_0 = arith.constant 0 : index
    %0 = vector.load %arg1[%c0, %c0_0] : memref<128x27xbf16, #tpu.memory_space<vmem>>, vector<128x27xbf16>
    %c0_1 = arith.constant 0 : index
    %c0_2 = arith.constant 0 : index
    %1 = vector.load %arg2[%c0_1, %c0_2] : memref<27x64xbf16, #tpu.memory_space<vmem>>, vector<27x64xbf16>
    %cst = arith.constant dense<0.000000e+00> : vector<128x64xf32>
    %2 = tpu.matmul %0, %1, %cst {dimension_numbers = #tpu.dot_dimension_numbers<[1], [0], [0], [1], [0, 0, 1, 1], [], []>} : vector<128x27xbf16>, vector<27x64xbf16>, vector<128x64xf32> -> vector<128x64xf32>
    %c0_3 = arith.constant 0 : index
    %c0_4 = arith.constant 0 : index
    %3 = vector.load %arg3[%c0_3, %c0_4] : memref<3x64xf32, #tpu.memory_space<vmem>>, vector<1x64xf32>
    %4 = vector.broadcast %3 : vector<1x64xf32> to vector<128x64xf32>
    %5 = arith.addf %2, %4 : vector<128x64xf32>
    %cst_5 = arith.constant 0.000000e+00 : f32
    %6 = vector.broadcast %cst_5 : f32 to vector<128x64xf32>
    %7 = arith.maximumf %5, %6 : vector<128x64xf32>
    %c1 = arith.constant 1 : index
    %c0_6 = arith.constant 0 : index
    %8 = vector.load %arg3[%c1, %c0_6] : memref<3x64xf32, #tpu.memory_space<vmem>>, vector<1x64xf32>
    %9 = vector.broadcast %8 : vector<1x64xf32> to vector<128x64xf32>
    %10 = arith.mulf %7, %9 : vector<128x64xf32>
    %c2 = arith.constant 2 : index
    %c0_7 = arith.constant 0 : index
    %11 = vector.load %arg3[%c2, %c0_7] : memref<3x64xf32, #tpu.memory_space<vmem>>, vector<1x64xf32>
    %12 = vector.broadcast %11 : vector<1x64xf32> to vector<128x64xf32>
    %13 = arith.addf %10, %12 : vector<128x64xf32>
    %14 = arith.truncf %13 : vector<128x64xf32> to vector<128x64xbf16>
    %c0_8 = arith.constant 0 : index
    %c0_9 = arith.constant 0 : index
    %15 = vector.load %arg4[%c0_8, %c0_9] : memref<128x64xbf16, #tpu.memory_space<vmem>>, vector<128x64xbf16>
    tpu.vector_store %arg4[%c0_8, %c0_9], %14 {strides = array<i32>} : memref<128x64xbf16, #tpu.memory_space<vmem>>, vector<128x64xbf16>,
    return
  }
  func.func @transform_0(%arg0: i32) -> (i32, i32) {
    %c0_i32 = arith.constant 0 : i32
    %c0_i32_0 = arith.constant 0 : i32
    return %arg0, %c0_i32 : i32, i32
  }
  func.func @transform_1(%arg0: i32) -> (i32, i32) {
    %c0_i32 = arith.constant 0 : i32
    %c0_i32_0 = arith.constant 0 : i32
    %c0_i32_1 = arith.constant 0 : i32
    return %c0_i32, %c0_i32_0 : i32, i32
  }
  func.func @transform_2(%arg0: i32) -> (i32, i32) {
    %c0_i32 = arith.constant 0 : i32
    %c0_i32_0 = arith.constant 0 : i32
    %c0_i32_1 = arith.constant 0 : i32
    return %c0_i32, %c0_i32_0 : i32, i32
  }
  func.func @transform_3(%arg0: i32) -> (i32, i32) {
    %c0_i32 = arith.constant 0 : i32
    %c0_i32_0 = arith.constant 0 : i32
    return %arg0, %c0_i32 : i32, i32
  }
}

module attributes {stable_mosaic.version = 11 : i64} {
  func.func @_conv3x3_kernel(%arg0: i32, %arg1: memref<1x10x10x64xbf16, #tpu.memory_space<vmem>>, %arg2: memref<576x64xbf16, #tpu.memory_space<vmem>>, %arg3: memref<3x64xf32, #tpu.memory_space<vmem>>, %arg4: memref<1x8x8x64xbf16, #tpu.memory_space<vmem>>) attributes {dimension_semantics = [#tpu.dimension_semantics<parallel>], iteration_bounds = array<i64: 2>, scalar_prefetch = 0 : i64, scratch_operands = 0 : i64, tpu.core_type = #tpu.core_type<tc>, window_params = [{transform_indices = @transform_0, window_bounds = array<i64: 1, 10, 10, 64>}, {pipeline_mode = #tpu.pipeline_mode<synchronous>, transform_indices = @transform_1, window_bounds = array<i64: 576, 64>}, {pipeline_mode = #tpu.pipeline_mode<synchronous>, transform_indices = @transform_2, window_bounds = array<i64: 3, 64>}, {transform_indices = @transform_3, window_bounds = array<i64: 1, 8, 8, 64>}]} {
    %c0 = arith.constant 0 : index
    %c0_0 = arith.constant 0 : index
    %c0_1 = arith.constant 0 : index
    %c0_2 = arith.constant 0 : index
    %0 = vector.load %arg1[%c0, %c0_0, %c0_1, %c0_2] : memref<1x10x10x64xbf16, #tpu.memory_space<vmem>>, vector<1x8x8x64xbf16>
    %1 = vector.shape_cast %0 : vector<1x8x8x64xbf16> to vector<8x8x64xbf16>
    %2 = vector.shape_cast %1 : vector<8x8x64xbf16> to vector<64x64xbf16>
    %c0_3 = arith.constant 0 : index
    %c0_4 = arith.constant 0 : index
    %c1 = arith.constant 1 : index
    %c0_5 = arith.constant 0 : index
    %3 = vector.load %arg1[%c0_3, %c0_4, %c1, %c0_5] : memref<1x10x10x64xbf16, #tpu.memory_space<vmem>>, vector<1x8x8x64xbf16>
    %4 = vector.shape_cast %3 : vector<1x8x8x64xbf16> to vector<8x8x64xbf16>
    %5 = vector.shape_cast %4 : vector<8x8x64xbf16> to vector<64x64xbf16>
    %c0_6 = arith.constant 0 : index
    %c0_7 = arith.constant 0 : index
    %c2 = arith.constant 2 : index
    %c0_8 = arith.constant 0 : index
    %6 = vector.load %arg1[%c0_6, %c0_7, %c2, %c0_8] : memref<1x10x10x64xbf16, #tpu.memory_space<vmem>>, vector<1x8x8x64xbf16>
    %7 = vector.shape_cast %6 : vector<1x8x8x64xbf16> to vector<8x8x64xbf16>
    %8 = vector.shape_cast %7 : vector<8x8x64xbf16> to vector<64x64xbf16>
    %c0_9 = arith.constant 0 : index
    %c1_10 = arith.constant 1 : index
    %c0_11 = arith.constant 0 : index
    %c0_12 = arith.constant 0 : index
    %9 = vector.load %arg1[%c0_9, %c1_10, %c0_11, %c0_12] : memref<1x10x10x64xbf16, #tpu.memory_space<vmem>>, vector<1x8x8x64xbf16>
    %10 = vector.shape_cast %9 : vector<1x8x8x64xbf16> to vector<8x8x64xbf16>
    %11 = vector.shape_cast %10 : vector<8x8x64xbf16> to vector<64x64xbf16>
    %c0_13 = arith.constant 0 : index
    %c1_14 = arith.constant 1 : index
    %c1_15 = arith.constant 1 : index
    %c0_16 = arith.constant 0 : index
    %12 = vector.load %arg1[%c0_13, %c1_14, %c1_15, %c0_16] : memref<1x10x10x64xbf16, #tpu.memory_space<vmem>>, vector<1x8x8x64xbf16>
    %13 = vector.shape_cast %12 : vector<1x8x8x64xbf16> to vector<8x8x64xbf16>
    %14 = vector.shape_cast %13 : vector<8x8x64xbf16> to vector<64x64xbf16>
    %c0_17 = arith.constant 0 : index
    %c1_18 = arith.constant 1 : index
    %c2_19 = arith.constant 2 : index
    %c0_20 = arith.constant 0 : index
    %15 = vector.load %arg1[%c0_17, %c1_18, %c2_19, %c0_20] : memref<1x10x10x64xbf16, #tpu.memory_space<vmem>>, vector<1x8x8x64xbf16>
    %16 = vector.shape_cast %15 : vector<1x8x8x64xbf16> to vector<8x8x64xbf16>
    %17 = vector.shape_cast %16 : vector<8x8x64xbf16> to vector<64x64xbf16>
    %c0_21 = arith.constant 0 : index
    %c2_22 = arith.constant 2 : index
    %c0_23 = arith.constant 0 : index
    %c0_24 = arith.constant 0 : index
    %18 = vector.load %arg1[%c0_21, %c2_22, %c0_23, %c0_24] : memref<1x10x10x64xbf16, #tpu.memory_space<vmem>>, vector<1x8x8x64xbf16>
    %19 = vector.shape_cast %18 : vector<1x8x8x64xbf16> to vector<8x8x64xbf16>
    %20 = vector.shape_cast %19 : vector<8x8x64xbf16> to vector<64x64xbf16>
    %c0_25 = arith.constant 0 : index
    %c2_26 = arith.constant 2 : index
    %c1_27 = arith.constant 1 : index
    %c0_28 = arith.constant 0 : index
    %21 = vector.load %arg1[%c0_25, %c2_26, %c1_27, %c0_28] : memref<1x10x10x64xbf16, #tpu.memory_space<vmem>>, vector<1x8x8x64xbf16>
    %22 = vector.shape_cast %21 : vector<1x8x8x64xbf16> to vector<8x8x64xbf16>
    %23 = vector.shape_cast %22 : vector<8x8x64xbf16> to vector<64x64xbf16>
    %c0_29 = arith.constant 0 : index
    %c2_30 = arith.constant 2 : index
    %c2_31 = arith.constant 2 : index
    %c0_32 = arith.constant 0 : index
    %24 = vector.load %arg1[%c0_29, %c2_30, %c2_31, %c0_32] : memref<1x10x10x64xbf16, #tpu.memory_space<vmem>>, vector<1x8x8x64xbf16>
    %25 = vector.shape_cast %24 : vector<1x8x8x64xbf16> to vector<8x8x64xbf16>
    %26 = vector.shape_cast %25 : vector<8x8x64xbf16> to vector<64x64xbf16>
    %27 = tpu.concatenate %2, %5, %8, %11, %14, %17, %20, %23, %26 in 1 : vector<64x64xbf16>, vector<64x64xbf16>, vector<64x64xbf16>, vector<64x64xbf16>, vector<64x64xbf16>, vector<64x64xbf16>, vector<64x64xbf16>, vector<64x64xbf16>, vector<64x64xbf16> -> vector<64x576xbf16>
    %c0_33 = arith.constant 0 : index
    %c0_34 = arith.constant 0 : index
    %28 = vector.load %arg2[%c0_33, %c0_34] : memref<576x64xbf16, #tpu.memory_space<vmem>>, vector<576x64xbf16>
    %cst = arith.constant dense<0.000000e+00> : vector<64x64xf32>
    %29 = tpu.matmul %27, %28, %cst {dimension_numbers = #tpu.dot_dimension_numbers<[1], [0], [0], [1], [0, 0, 1, 1], [], []>} : vector<64x576xbf16>, vector<576x64xbf16>, vector<64x64xf32> -> vector<64x64xf32>
    %c0_35 = arith.constant 0 : index
    %c0_36 = arith.constant 0 : index
    %30 = vector.load %arg3[%c0_35, %c0_36] : memref<3x64xf32, #tpu.memory_space<vmem>>, vector<1x64xf32>
    %31 = vector.broadcast %30 : vector<1x64xf32> to vector<64x64xf32>
    %32 = arith.addf %29, %31 : vector<64x64xf32>
    %cst_37 = arith.constant 0.000000e+00 : f32
    %33 = vector.broadcast %cst_37 : f32 to vector<64x64xf32>
    %34 = arith.maximumf %32, %33 : vector<64x64xf32>
    %c1_38 = arith.constant 1 : index
    %c0_39 = arith.constant 0 : index
    %35 = vector.load %arg3[%c1_38, %c0_39] : memref<3x64xf32, #tpu.memory_space<vmem>>, vector<1x64xf32>
    %36 = vector.broadcast %35 : vector<1x64xf32> to vector<64x64xf32>
    %37 = arith.mulf %34, %36 : vector<64x64xf32>
    %c2_40 = arith.constant 2 : index
    %c0_41 = arith.constant 0 : index
    %38 = vector.load %arg3[%c2_40, %c0_41] : memref<3x64xf32, #tpu.memory_space<vmem>>, vector<1x64xf32>
    %39 = vector.broadcast %38 : vector<1x64xf32> to vector<64x64xf32>
    %40 = arith.addf %37, %39 : vector<64x64xf32>
    %41 = vector.shape_cast %40 : vector<64x64xf32> to vector<8x8x64xf32>
    %42 = arith.truncf %41 : vector<8x8x64xf32> to vector<8x8x64xbf16>
    %c0_42 = arith.constant 0 : index
    %c0_43 = arith.constant 0 : index
    %c0_44 = arith.constant 0 : index
    %c0_45 = arith.constant 0 : index
    %43 = vector.load %arg4[%c0_42, %c0_43, %c0_44, %c0_45] : memref<1x8x8x64xbf16, #tpu.memory_space<vmem>>, vector<1x8x8x64xbf16>
    %44 = vector.shape_cast %43 : vector<1x8x8x64xbf16> to vector<8x8x64xbf16>
    %45 = vector.shape_cast %42 : vector<8x8x64xbf16> to vector<1x8x8x64xbf16>
    tpu.vector_store %arg4[%c0_42, %c0_43, %c0_44, %c0_45], %45 {strides = array<i32>} : memref<1x8x8x64xbf16, #tpu.memory_space<vmem>>, vector<1x8x8x64xbf16>,
    return
  }
  func.func @transform_0(%arg0: i32) -> (i32, i32, i32, i32) {
    %c0_i32 = arith.constant 0 : i32
    %c0_i32_0 = arith.constant 0 : i32
    %c0_i32_1 = arith.constant 0 : i32
    %c0_i32_2 = arith.constant 0 : i32
    return %arg0, %c0_i32, %c0_i32_0, %c0_i32_1 : i32, i32, i32, i32
  }
  func.func @transform_1(%arg0: i32) -> (i32, i32) {
    %c0_i32 = arith.constant 0 : i32
    %c0_i32_0 = arith.constant 0 : i32
    %c0_i32_1 = arith.constant 0 : i32
    return %c0_i32, %c0_i32_0 : i32, i32
  }
  func.func @transform_2(%arg0: i32) -> (i32, i32) {
    %c0_i32 = arith.constant 0 : i32
    %c0_i32_0 = arith.constant 0 : i32
    %c0_i32_1 = arith.constant 0 : i32
    return %c0_i32, %c0_i32_0 : i32, i32
  }
  func.func @transform_3(%arg0: i32) -> (i32, i32, i32, i32) {
    %c0_i32 = arith.constant 0 : i32
    %c0_i32_0 = arith.constant 0 : i32
    %c0_i32_1 = arith.constant 0 : i32
    %c0_i32_2 = arith.constant 0 : i32
    return %arg0, %c0_i32, %c0_i32_0, %c0_i32_1 : i32, i32, i32, i32
  }
}

module attributes {stable_mosaic.version = 11 : i64} {
  func.func @_conv3x3_skip_kernel(%arg0: i32, %arg1: memref<1x10x10x64xbf16, #tpu.memory_space<vmem>>, %arg2: memref<576x64xbf16, #tpu.memory_space<vmem>>, %arg3: memref<3x64xf32, #tpu.memory_space<vmem>>, %arg4: memref<1x8x8x64xbf16, #tpu.memory_space<vmem>>, %arg5: memref<1x8x8x64xbf16, #tpu.memory_space<vmem>>) attributes {dimension_semantics = [#tpu.dimension_semantics<parallel>], iteration_bounds = array<i64: 2>, scalar_prefetch = 0 : i64, scratch_operands = 0 : i64, tpu.core_type = #tpu.core_type<tc>, window_params = [{transform_indices = @transform_0, window_bounds = array<i64: 1, 10, 10, 64>}, {pipeline_mode = #tpu.pipeline_mode<synchronous>, transform_indices = @transform_1, window_bounds = array<i64: 576, 64>}, {pipeline_mode = #tpu.pipeline_mode<synchronous>, transform_indices = @transform_2, window_bounds = array<i64: 3, 64>}, {transform_indices = @transform_3, window_bounds = array<i64: 1, 8, 8, 64>}, {transform_indices = @transform_4, window_bounds = array<i64: 1, 8, 8, 64>}]} {
    %c0 = arith.constant 0 : index
    %c0_0 = arith.constant 0 : index
    %c0_1 = arith.constant 0 : index
    %c0_2 = arith.constant 0 : index
    %0 = vector.load %arg1[%c0, %c0_0, %c0_1, %c0_2] : memref<1x10x10x64xbf16, #tpu.memory_space<vmem>>, vector<1x8x8x64xbf16>
    %1 = vector.shape_cast %0 : vector<1x8x8x64xbf16> to vector<8x8x64xbf16>
    %2 = vector.shape_cast %1 : vector<8x8x64xbf16> to vector<64x64xbf16>
    %c0_3 = arith.constant 0 : index
    %c0_4 = arith.constant 0 : index
    %c1 = arith.constant 1 : index
    %c0_5 = arith.constant 0 : index
    %3 = vector.load %arg1[%c0_3, %c0_4, %c1, %c0_5] : memref<1x10x10x64xbf16, #tpu.memory_space<vmem>>, vector<1x8x8x64xbf16>
    %4 = vector.shape_cast %3 : vector<1x8x8x64xbf16> to vector<8x8x64xbf16>
    %5 = vector.shape_cast %4 : vector<8x8x64xbf16> to vector<64x64xbf16>
    %c0_6 = arith.constant 0 : index
    %c0_7 = arith.constant 0 : index
    %c2 = arith.constant 2 : index
    %c0_8 = arith.constant 0 : index
    %6 = vector.load %arg1[%c0_6, %c0_7, %c2, %c0_8] : memref<1x10x10x64xbf16, #tpu.memory_space<vmem>>, vector<1x8x8x64xbf16>
    %7 = vector.shape_cast %6 : vector<1x8x8x64xbf16> to vector<8x8x64xbf16>
    %8 = vector.shape_cast %7 : vector<8x8x64xbf16> to vector<64x64xbf16>
    %c0_9 = arith.constant 0 : index
    %c1_10 = arith.constant 1 : index
    %c0_11 = arith.constant 0 : index
    %c0_12 = arith.constant 0 : index
    %9 = vector.load %arg1[%c0_9, %c1_10, %c0_11, %c0_12] : memref<1x10x10x64xbf16, #tpu.memory_space<vmem>>, vector<1x8x8x64xbf16>
    %10 = vector.shape_cast %9 : vector<1x8x8x64xbf16> to vector<8x8x64xbf16>
    %11 = vector.shape_cast %10 : vector<8x8x64xbf16> to vector<64x64xbf16>
    %c0_13 = arith.constant 0 : index
    %c1_14 = arith.constant 1 : index
    %c1_15 = arith.constant 1 : index
    %c0_16 = arith.constant 0 : index
    %12 = vector.load %arg1[%c0_13, %c1_14, %c1_15, %c0_16] : memref<1x10x10x64xbf16, #tpu.memory_space<vmem>>, vector<1x8x8x64xbf16>
    %13 = vector.shape_cast %12 : vector<1x8x8x64xbf16> to vector<8x8x64xbf16>
    %14 = vector.shape_cast %13 : vector<8x8x64xbf16> to vector<64x64xbf16>
    %c0_17 = arith.constant 0 : index
    %c1_18 = arith.constant 1 : index
    %c2_19 = arith.constant 2 : index
    %c0_20 = arith.constant 0 : index
    %15 = vector.load %arg1[%c0_17, %c1_18, %c2_19, %c0_20] : memref<1x10x10x64xbf16, #tpu.memory_space<vmem>>, vector<1x8x8x64xbf16>
    %16 = vector.shape_cast %15 : vector<1x8x8x64xbf16> to vector<8x8x64xbf16>
    %17 = vector.shape_cast %16 : vector<8x8x64xbf16> to vector<64x64xbf16>
    %c0_21 = arith.constant 0 : index
    %c2_22 = arith.constant 2 : index
    %c0_23 = arith.constant 0 : index
    %c0_24 = arith.constant 0 : index
    %18 = vector.load %arg1[%c0_21, %c2_22, %c0_23, %c0_24] : memref<1x10x10x64xbf16, #tpu.memory_space<vmem>>, vector<1x8x8x64xbf16>
    %19 = vector.shape_cast %18 : vector<1x8x8x64xbf16> to vector<8x8x64xbf16>
    %20 = vector.shape_cast %19 : vector<8x8x64xbf16> to vector<64x64xbf16>
    %c0_25 = arith.constant 0 : index
    %c2_26 = arith.constant 2 : index
    %c1_27 = arith.constant 1 : index
    %c0_28 = arith.constant 0 : index
    %21 = vector.load %arg1[%c0_25, %c2_26, %c1_27, %c0_28] : memref<1x10x10x64xbf16, #tpu.memory_space<vmem>>, vector<1x8x8x64xbf16>
    %22 = vector.shape_cast %21 : vector<1x8x8x64xbf16> to vector<8x8x64xbf16>
    %23 = vector.shape_cast %22 : vector<8x8x64xbf16> to vector<64x64xbf16>
    %c0_29 = arith.constant 0 : index
    %c2_30 = arith.constant 2 : index
    %c2_31 = arith.constant 2 : index
    %c0_32 = arith.constant 0 : index
    %24 = vector.load %arg1[%c0_29, %c2_30, %c2_31, %c0_32] : memref<1x10x10x64xbf16, #tpu.memory_space<vmem>>, vector<1x8x8x64xbf16>
    %25 = vector.shape_cast %24 : vector<1x8x8x64xbf16> to vector<8x8x64xbf16>
    %26 = vector.shape_cast %25 : vector<8x8x64xbf16> to vector<64x64xbf16>
    %27 = tpu.concatenate %2, %5, %8, %11, %14, %17, %20, %23, %26 in 1 : vector<64x64xbf16>, vector<64x64xbf16>, vector<64x64xbf16>, vector<64x64xbf16>, vector<64x64xbf16>, vector<64x64xbf16>, vector<64x64xbf16>, vector<64x64xbf16>, vector<64x64xbf16> -> vector<64x576xbf16>
    %c0_33 = arith.constant 0 : index
    %c0_34 = arith.constant 0 : index
    %28 = vector.load %arg2[%c0_33, %c0_34] : memref<576x64xbf16, #tpu.memory_space<vmem>>, vector<576x64xbf16>
    %cst = arith.constant dense<0.000000e+00> : vector<64x64xf32>
    %29 = tpu.matmul %27, %28, %cst {dimension_numbers = #tpu.dot_dimension_numbers<[1], [0], [0], [1], [0, 0, 1, 1], [], []>} : vector<64x576xbf16>, vector<576x64xbf16>, vector<64x64xf32> -> vector<64x64xf32>
    %c0_35 = arith.constant 0 : index
    %c0_36 = arith.constant 0 : index
    %30 = vector.load %arg3[%c0_35, %c0_36] : memref<3x64xf32, #tpu.memory_space<vmem>>, vector<1x64xf32>
    %31 = vector.broadcast %30 : vector<1x64xf32> to vector<64x64xf32>
    %32 = arith.addf %29, %31 : vector<64x64xf32>
    %cst_37 = arith.constant 0.000000e+00 : f32
    %33 = vector.broadcast %cst_37 : f32 to vector<64x64xf32>
    %34 = arith.maximumf %32, %33 : vector<64x64xf32>
    %c1_38 = arith.constant 1 : index
    %c0_39 = arith.constant 0 : index
    %35 = vector.load %arg3[%c1_38, %c0_39] : memref<3x64xf32, #tpu.memory_space<vmem>>, vector<1x64xf32>
    %36 = vector.broadcast %35 : vector<1x64xf32> to vector<64x64xf32>
    %37 = arith.mulf %34, %36 : vector<64x64xf32>
    %c2_40 = arith.constant 2 : index
    %c0_41 = arith.constant 0 : index
    %38 = vector.load %arg3[%c2_40, %c0_41] : memref<3x64xf32, #tpu.memory_space<vmem>>, vector<1x64xf32>
    %39 = vector.broadcast %38 : vector<1x64xf32> to vector<64x64xf32>
    %40 = arith.addf %37, %39 : vector<64x64xf32>
    %41 = vector.shape_cast %40 : vector<64x64xf32> to vector<8x8x64xf32>
    %c0_42 = arith.constant 0 : index
    %c0_43 = arith.constant 0 : index
    %c0_44 = arith.constant 0 : index
    %c0_45 = arith.constant 0 : index
    %42 = vector.load %arg4[%c0_42, %c0_43, %c0_44, %c0_45] : memref<1x8x8x64xbf16, #tpu.memory_space<vmem>>, vector<1x8x8x64xbf16>
    %43 = vector.shape_cast %42 : vector<1x8x8x64xbf16> to vector<8x8x64xbf16>
    %44 = arith.extf %43 : vector<8x8x64xbf16> to vector<8x8x64xf32>
    %45 = arith.addf %41, %44 : vector<8x8x64xf32>
    %cst_46 = arith.constant 0.000000e+00 : f32
    %46 = vector.broadcast %cst_46 : f32 to vector<8x8x64xf32>
    %47 = arith.maximumf %45, %46 : vector<8x8x64xf32>
    %48 = arith.truncf %47 : vector<8x8x64xf32> to vector<8x8x64xbf16>
    %c0_47 = arith.constant 0 : index
    %c0_48 = arith.constant 0 : index
    %c0_49 = arith.constant 0 : index
    %c0_50 = arith.constant 0 : index
    %49 = vector.load %arg5[%c0_47, %c0_48, %c0_49, %c0_50] : memref<1x8x8x64xbf16, #tpu.memory_space<vmem>>, vector<1x8x8x64xbf16>
    %50 = vector.shape_cast %49 : vector<1x8x8x64xbf16> to vector<8x8x64xbf16>
    %51 = vector.shape_cast %48 : vector<8x8x64xbf16> to vector<1x8x8x64xbf16>
    tpu.vector_store %arg5[%c0_47, %c0_48, %c0_49, %c0_50], %51 {strides = array<i32>} : memref<1x8x8x64xbf16, #tpu.memory_space<vmem>>, vector<1x8x8x64xbf16>,
    return
  }
  func.func @transform_0(%arg0: i32) -> (i32, i32, i32, i32) {
    %c0_i32 = arith.constant 0 : i32
    %c0_i32_0 = arith.constant 0 : i32
    %c0_i32_1 = arith.constant 0 : i32
    %c0_i32_2 = arith.constant 0 : i32
    return %arg0, %c0_i32, %c0_i32_0, %c0_i32_1 : i32, i32, i32, i32
  }
  func.func @transform_1(%arg0: i32) -> (i32, i32) {
    %c0_i32 = arith.constant 0 : i32
    %c0_i32_0 = arith.constant 0 : i32
    %c0_i32_1 = arith.constant 0 : i32
    return %c0_i32, %c0_i32_0 : i32, i32
  }
  func.func @transform_2(%arg0: i32) -> (i32, i32) {
    %c0_i32 = arith.constant 0 : i32
    %c0_i32_0 = arith.constant 0 : i32
    %c0_i32_1 = arith.constant 0 : i32
    return %c0_i32, %c0_i32_0 : i32, i32
  }
  func.func @transform_3(%arg0: i32) -> (i32, i32, i32, i32) {
    %c0_i32 = arith.constant 0 : i32
    %c0_i32_0 = arith.constant 0 : i32
    %c0_i32_1 = arith.constant 0 : i32
    %c0_i32_2 = arith.constant 0 : i32
    return %arg0, %c0_i32, %c0_i32_0, %c0_i32_1 : i32, i32, i32, i32
  }
  func.func @transform_4(%arg0: i32) -> (i32, i32, i32, i32) {
    %c0_i32 = arith.constant 0 : i32
    %c0_i32_0 = arith.constant 0 : i32
    %c0_i32_1 = arith.constant 0 : i32
    %c0_i32_2 = arith.constant 0 : i32
    return %arg0, %c0_i32, %c0_i32_0, %c0_i32_1 : i32, i32, i32, i32
  }
}

module attributes {stable_mosaic.version = 11 : i64} {
  func.func @_final_deconv_kernel(%arg0: i32, %arg1: memref<128x256xbf16, #tpu.memory_space<vmem>>, %arg2: memref<256x12xbf16, #tpu.memory_space<vmem>>, %arg3: memref<1x12xf32, #tpu.memory_space<vmem>>, %arg4: memref<128x12xf32, #tpu.memory_space<vmem>>, %arg5: memref<128x12xf32, #tpu.memory_space<vmem>>) attributes {dimension_semantics = [#tpu.dimension_semantics<parallel>], iteration_bounds = array<i64: 1>, scalar_prefetch = 0 : i64, scratch_operands = 0 : i64, tpu.core_type = #tpu.core_type<tc>, window_params = [{transform_indices = @transform_0, window_bounds = array<i64: 128, 256>}, {pipeline_mode = #tpu.pipeline_mode<synchronous>, transform_indices = @transform_1, window_bounds = array<i64: 256, 12>}, {pipeline_mode = #tpu.pipeline_mode<synchronous>, transform_indices = @transform_2, window_bounds = array<i64: 1, 12>}, {transform_indices = @transform_3, window_bounds = array<i64: 128, 12>}, {transform_indices = @transform_4, window_bounds = array<i64: 128, 12>}]} {
    %c0 = arith.constant 0 : index
    %c0_0 = arith.constant 0 : index
    %0 = vector.load %arg1[%c0, %c0_0] : memref<128x256xbf16, #tpu.memory_space<vmem>>, vector<128x256xbf16>
    %c0_1 = arith.constant 0 : index
    %c0_2 = arith.constant 0 : index
    %1 = vector.load %arg2[%c0_1, %c0_2] : memref<256x12xbf16, #tpu.memory_space<vmem>>, vector<256x12xbf16>
    %cst = arith.constant dense<0.000000e+00> : vector<128x12xf32>
    %2 = tpu.matmul %0, %1, %cst {dimension_numbers = #tpu.dot_dimension_numbers<[1], [0], [0], [1], [0, 0, 1, 1], [], []>} : vector<128x256xbf16>, vector<256x12xbf16>, vector<128x12xf32> -> vector<128x12xf32>
    %c0_3 = arith.constant 0 : index
    %c0_4 = arith.constant 0 : index
    %3 = vector.load %arg3[%c0_3, %c0_4] : memref<1x12xf32, #tpu.memory_space<vmem>>, vector<1x12xf32>
    %4 = vector.broadcast %3 : vector<1x12xf32> to vector<128x12xf32>
    %5 = arith.addf %2, %4 : vector<128x12xf32>
    %c0_5 = arith.constant 0 : index
    %c0_6 = arith.constant 0 : index
    %6 = vector.load %arg4[%c0_5, %c0_6] : memref<128x12xf32, #tpu.memory_space<vmem>>, vector<128x12xf32>
    %7 = arith.addf %5, %6 : vector<128x12xf32>
    %cst_7 = arith.constant 0.000000e+00 : f32
    %8 = vector.broadcast %cst_7 : f32 to vector<128x12xf32>
    %9 = arith.maximumf %7, %8 : vector<128x12xf32>
    %c0_8 = arith.constant 0 : index
    %c0_9 = arith.constant 0 : index
    %10 = vector.load %arg5[%c0_8, %c0_9] : memref<128x12xf32, #tpu.memory_space<vmem>>, vector<128x12xf32>
    tpu.vector_store %arg5[%c0_8, %c0_9], %9 {strides = array<i32>} : memref<128x12xf32, #tpu.memory_space<vmem>>, vector<128x12xf32>,
    return
  }
  func.func @transform_0(%arg0: i32) -> (i32, i32) {
    %c0_i32 = arith.constant 0 : i32
    %c0_i32_0 = arith.constant 0 : i32
    return %arg0, %c0_i32 : i32, i32
  }
  func.func @transform_1(%arg0: i32) -> (i32, i32) {
    %c0_i32 = arith.constant 0 : i32
    %c0_i32_0 = arith.constant 0 : i32
    %c0_i32_1 = arith.constant 0 : i32
    return %c0_i32, %c0_i32_0 : i32, i32
  }
  func.func @transform_2(%arg0: i32) -> (i32, i32) {
    %c0_i32 = arith.constant 0 : i32
    %c0_i32_0 = arith.constant 0 : i32
    %c0_i32_1 = arith.constant 0 : i32
    return %c0_i32, %c0_i32_0 : i32, i32
  }
  func.func @transform_3(%arg0: i32) -> (i32, i32) {
    %c0_i32 = arith.constant 0 : i32
    %c0_i32_0 = arith.constant 0 : i32
    return %arg0, %c0_i32 : i32, i32
  }
  func.func @transform_4(%arg0: i32) -> (i32, i32) {
    %c0_i32 = arith.constant 0 : i32
    %c0_i32_0 = arith.constant 0 : i32
    return %arg0, %c0_i32 : i32, i32
  }
}

</mosaic_0001>

<bundles_post_ra>
// kernel: _lambda_.30
= control target key start
LH: loop header
LB: loop body
LE: loop exit
PB: predicated region body
PF: predicated region fallthrough
CT: control target
= control target key end

     0   :  { %vm116_vm0 = vcmask 1044480   ;;  %vm117_vm1 = vcmask 1045504   ;;  %vm91_vm2 = vcmask 220160   ;;  %v461_v1 = vmov 65535   ;;  %s647_s1 = inlined_call_operand.vmem [shape: bf16[27,64], index: 1, kind: input, shape index: {}]   ;;  %s648_s0 = inlined_call_operand.vmem [shape: bf16[128,27], index: 0, kind: input, shape index: {}]   ;;  %s649_s2 = inlined_call_operand.vmem [shape: f32[3,64], index: 2, kind: input, shape index: {}]   ;;  %s650_s3 = inlined_call_operand.vmem [shape: bf16[128,64], index: 3, kind: output, shape index: {}]  }
   0x1   :  { %v451_v0 = vld [vmem:[%s647_s1] sm:$0xff]   ;;  %v118_v2 = vsel %vm116_vm0, 4294967295, %v461_v1  ;;  %v452_v3 = vld [vmem:[%s647_s1 + $0x8] sm:$0x3f]   ;;  %v457_v10 = vld [vmem:[%s648_s0 + $0x10] sm:$0xff]   ;;  %vm342_vm3 = vcmask 519168  }
   0x2   :  { %426 = vmatprep.subr.bf16.mxu0 %v451_v0  ;;  %446 = vmatprep.subr.bf16.mxu1 %v451_v0  ;;  %v119_v4 = vsel %vm117_vm1, %v118_v2, 0  ;;  %v453_v5 = vld [vmem:[%s648_s0] sm:$0xff]   ;;  %v455_v8 = vld [vmem:[%s648_s0 + $0x8] sm:$0xff]   ;;  %v458_v11 = vld [vmem:[%s648_s0 + $0x30] sm:$0xff]  }
   0x3   :  { %427 = vmatpush3.bf16.msra.mxu0 %v451_v0  ;;  %448 = vmatpush3.bf16.msra.mxu1 %v451_v0  ;;  %v121_v6 = vand.u32 %v452_v3, %v119_v4  ;;  %v454_v7 = vld [vmem:[%s648_s0 + $0x20] sm:$0xff]   ;;  %v456_v9 = vld [vmem:[%s648_s0 + $0x28] sm:$0xff]   ;;  %v459_v12 = vld [vmem:[%s648_s0 + $0x18] sm:$0xff]  }
   0x4   :  { %430 = vmatprep.mubr.msk.bf16.mxu0 %vm91_vm2, %v453_v5  ;;  %438 = vmatprep.mubr.msk.bf16.mxu1 %vm91_vm2, %v454_v7  ;;  %v460_v13 = vld [vmem:[%s648_s0 + $0x38] sm:$0xff]   ;;  %v523_v14 = vld [vmem:[%s649_s2] ss:$0 sm:$0xff]  ;;  %v530_v21 = vld [vmem:[%s649_s2 + $0x1] ss:$0 sm:$0xff] }
   0x5   :  { %428 = vmatprep.subr.bf16.mxu0 %v121_v6  ;;  %447 = vmatprep.subr.bf16.mxu1 %v121_v6  ;;  %v539_v32 = vld [vmem:[%s649_s2 + $0x2] ss:$0 sm:$0xff] }
   0x7   :  { %429 = vmatpush3.bf16.msra.mxu0 %v121_v6  ;;  %449 = vmatpush3.bf16.msra.mxu1 %v121_v6 }
   0xa   :  { %431 = vmatmul.mubr.msk.bf16.vlgmr.msra.gmra.mrb[0].mxu0 %vm91_vm2, %v455_v8  ;;  %439 = vmatmul.mubr.msk.bf16.vlgmr.msra.gmra.mrb[0].mxu1 %vm91_vm2, %v456_v9 }
   0xb   :  { %434 = vmatprep.mubr.msk.bf16.mxu0 %vm91_vm2, %v457_v10  ;;  %442 = vmatprep.mubr.msk.bf16.mxu1 %vm91_vm2, %v458_v11 }
  0x12   :  { %435 = vmatmul.mubr.msk.bf16.gmra.mrb[4].mxu0 %vm91_vm2, %v459_v12  ;;  %443 = vmatmul.mubr.msk.bf16.gmra.mrb[4].mxu1 %vm91_vm2, %v460_v13 }
  0xdd   :  { %v432_v15 = vpop.f32.mrb[0].mxu0  ;;  %v440_v16 = vpop.f32.mrb[0].mxu1 }
  0xde   :  { %v166_v17 = vadd.f32 %v432_v15, %v523_v14  ;;  %v198_v18 = vadd.f32 %v440_v16, %v523_v14  ;;  %v157_v19 = vpop.f32.mrb[1].mxu0  ;;  %v189_v20 = vpop.f32.mrb[1].mxu1 }
  0xdf   :  { %v158_v22 = vadd.f32 %v523_v14, %v157_v19  ;;  %v190_v23 = vadd.f32 %v523_v14, %v189_v20  ;;  %v433_v24 = vpop.f32.mrb[2].mxu0  ;;  %v441_v25 = vpop.f32.mrb[2].mxu1 }
  0xe0   :  { %v222_v26 = vmax.f32 %v166_v17, 0.0  ;;  %v230_v27 = vmax.f32 %v198_v18, 0.0  ;;  %v169_v28 = vadd.f32 %v433_v24, %v523_v14  ;;  %v201_v29 = vadd.f32 %v441_v25, %v523_v14  ;;  %v160_v30 = vpop.f32.mrb[3].mxu0  ;;  %v192_v31 = vpop.f32.mrb[3].mxu1 }
  0xe1   :  { %v220_v33 = vmax.f32 %v158_v22, 0.0  ;;  %v228_v34 = vmax.f32 %v190_v23, 0.0  ;;  %v161_v35 = vadd.f32 %v523_v14, %v160_v30  ;;  %v193_v36 = vadd.f32 %v523_v14, %v192_v31 }
  0xe2   :  { %v243_v37 = vmul.f32 %v530_v21, %v222_v26  ;;  %v251_v38 = vmul.f32 %v530_v21, %v230_v27  ;;  %v223_v39 = vmax.f32 %v169_v28, 0.0  ;;  %v231_v40 = vmax.f32 %v201_v29, 0.0 }
  0xe3   :  { %v241_v41 = vmul.f32 %v530_v21, %v220_v33  ;;  %v249_v42 = vmul.f32 %v530_v21, %v228_v34  ;;  %v221_v43 = vmax.f32 %v161_v35, 0.0  ;;  %v229_v44 = vmax.f32 %v193_v36, 0.0 }
  0xe4   :  { %v264_v45 = vadd.f32 %v539_v32, %v243_v37  ;;  %v272_v46 = vadd.f32 %v539_v32, %v251_v38  ;;  %v244_v47 = vmul.f32 %v530_v21, %v223_v39  ;;  %v252_v48 = vmul.f32 %v530_v21, %v231_v40 }
  0xe5   :  { %v262_v49 = vadd.f32 %v539_v32, %v241_v41  ;;  %v270_v50 = vadd.f32 %v539_v32, %v249_v42  ;;  %v242_v51 = vmul.f32 %v530_v21, %v221_v43  ;;  %v250_v52 = vmul.f32 %v530_v21, %v229_v44  ;;  %v436_v53 = vpop.f32.mrb[4].mxu0  ;;  %v444_v54 = vpop.f32.mrb[4].mxu1 }
  0xe6   :  { %v402_v55 = vpack.c.bf16 %v264_v45, %v264_v45  ;;  %v410_v56 = vpack.c.bf16 %v272_v46, %v272_v46  ;;  %v265_v57 = vadd.f32 %v539_v32, %v244_v47  ;;  %v273_v58 = vadd.f32 %v539_v32, %v252_v48  ;;  %v173_v59 = vpop.f32.mrb[5].mxu0  ;;  %v205_v60 = vpop.f32.mrb[5].mxu1 }
  0xe7   :  { %v400_v61 = vpack.c.bf16 %v262_v49, %v262_v49  ;;  %v408_v62 = vpack.c.bf16 %v270_v50, %v270_v50  ;;  %v263_v63 = vadd.f32 %v539_v32, %v242_v51  ;;  %v271_v0 = vadd.f32 %v539_v32, %v250_v52  ;;  %v437_v1 = vpop.f32.mrb[6].mxu0  ;;  %v445_v2 = vpop.f32.mrb[6].mxu1 }
  0xe8   :  { %345 = vst.msk [vmem:[%s650_s3 + $0x8] sm:$0xf] %vm342_vm3, %v402_v55  ;;  %353 = vst.msk [vmem:[%s650_s3 + $0x28] sm:$0xf] %vm342_vm3, %v410_v56  ;;  %v403_v3 = vpack.c.bf16 %v265_v57, %v265_v57  ;;  %v411_v4 = vpack.c.bf16 %v273_v58, %v273_v58  ;;  %v182_v5 = vadd.f32 %v436_v53, %v523_v14  ;;  %v176_v7 = vpop.f32.mrb[7].mxu0  ;;  %v208_v8 = vpop.f32.mrb[7].mxu1 }
  0xe9   :  { %v214_v6 = vadd.f32 %v444_v54, %v523_v14  ;;  %343 = vst.msk [vmem:[%s650_s3] sm:$0xf] %vm342_vm3, %v400_v61  ;;  %351 = vst.msk [vmem:[%s650_s3 + $0x20] sm:$0xf] %vm342_vm3, %v408_v62  ;;  %v401_v9 = vpack.c.bf16 %v263_v63, %v263_v63  ;;  %v409_v10 = vpack.c.bf16 %v271_v0, %v271_v0 }
  0xea   :  { %v174_v11 = vadd.f32 %v523_v14, %v173_v59  ;;  %v206_v12 = vadd.f32 %v523_v14, %v205_v60  ;;  %346 = vst.msk [vmem:[%s650_s3 + $0xc] sm:$0xf] %vm342_vm3, %v403_v3  ;;  %354 = vst.msk [vmem:[%s650_s3 + $0x2c] sm:$0xf] %vm342_vm3, %v411_v4  ;;  %v226_v13 = vmax.f32 %v182_v5, 0.0  ;;  %v185_v16 = vadd.f32 %v437_v1, %v523_v14 }
  0xeb   :  { %v234_v15 = vmax.f32 %v214_v6, 0.0  ;;  %v217_v17 = vadd.f32 %v445_v2, %v523_v14  ;;  %344 = vst.msk [vmem:[%s650_s3 + $0x4] sm:$0xf] %vm342_vm3, %v401_v9  ;;  %352 = vst.msk [vmem:[%s650_s3 + $0x24] sm:$0xf] %vm342_vm3, %v409_v10  ;;  %v177_v20 = vadd.f32 %v523_v14, %v176_v7  ;;  %v209_v22 = vadd.f32 %v523_v14, %v208_v8 }
  0xec   :  { %v224_v18 = vmax.f32 %v174_v11, 0.0  ;;  %v232_v19 = vmax.f32 %v206_v12, 0.0  ;;  %v247_v23 = vmul.f32 %v530_v21, %v226_v13  ;;  %v227_v25 = vmax.f32 %v185_v16, 0.0 }
  0xed   :  { %v255_v24 = vmul.f32 %v530_v21, %v234_v15  ;;  %v235_v26 = vmax.f32 %v217_v17, 0.0  ;;  %v225_v29 = vmax.f32 %v177_v20, 0.0  ;;  %v233_v30 = vmax.f32 %v209_v22, 0.0 }
  0xee   :  { %v245_v27 = vmul.f32 %v530_v21, %v224_v18  ;;  %v253_v28 = vmul.f32 %v530_v21, %v232_v19  ;;  %v268_v31 = vadd.f32 %v539_v32, %v247_v23  ;;  %v248_v34 = vmul.f32 %v530_v21, %v227_v25 }
  0xef   :  { %v276_v33 = vadd.f32 %v539_v32, %v255_v24  ;;  %v256_v14 = vmul.f32 %v530_v21, %v235_v26  ;;  %v246_v37 = vmul.f32 %v530_v21, %v225_v29  ;;  %v254_v38 = vmul.f32 %v530_v21, %v233_v30 }
  0xf0   :  { %v266_v35 = vadd.f32 %v539_v32, %v245_v27  ;;  %v274_v36 = vadd.f32 %v539_v32, %v253_v28  ;;  %v406_v39 = vpack.c.bf16 %v268_v31, %v268_v31  ;;  %v269_v41 = vadd.f32 %v539_v32, %v248_v34 }
  0xf1   :  { %v414_v40 = vpack.c.bf16 %v276_v33, %v276_v33  ;;  %v277_v42 = vadd.f32 %v539_v32, %v256_v14  ;;  %v267_v45 = vadd.f32 %v539_v32, %v246_v37  ;;  %v275_v46 = vadd.f32 %v539_v32, %v254_v38 }
  0xf2   :  { %v404_v43 = vpack.c.bf16 %v266_v35, %v266_v35  ;;  %v412_v44 = vpack.c.bf16 %v274_v36, %v274_v36  ;;  %349 = vst.msk [vmem:[%s650_s3 + $0x18] sm:$0xf] %vm342_vm3, %v406_v39  ;;  %v407_v21 = vpack.c.bf16 %v269_v41, %v269_v41 }
  0xf3   :  { %357 = vst.msk [vmem:[%s650_s3 + $0x38] sm:$0xf] %vm342_vm3, %v414_v40  ;;  %v415_v47 = vpack.c.bf16 %v277_v42, %v277_v42  ;;  %v405_v32 = vpack.c.bf16 %v267_v45, %v267_v45  ;;  %v413_v48 = vpack.c.bf16 %v275_v46, %v275_v46 }
  0xf4   :  { %347 = vst.msk [vmem:[%s650_s3 + $0x10] sm:$0xf] %vm342_vm3, %v404_v43  ;;  %355 = vst.msk [vmem:[%s650_s3 + $0x30] sm:$0xf] %vm342_vm3, %v412_v44 }
  0xf5   :  { %350 = vst.msk [vmem:[%s650_s3 + $0x1c] sm:$0xf] %vm342_vm3, %v407_v21  ;;  %358 = vst.msk [vmem:[%s650_s3 + $0x3c] sm:$0xf] %vm342_vm3, %v415_v47 }
  0xf6   :  { %348 = vst.msk [vmem:[%s650_s3 + $0x14] sm:$0xf] %vm342_vm3, %v405_v32  ;;  %356 = vst.msk [vmem:[%s650_s3 + $0x34] sm:$0xf] %vm342_vm3, %v413_v48 }

// kernel: _lambda_.45
= control target key start
LH: loop header
LB: loop body
LE: loop exit
PB: predicated region body
PF: predicated region fallthrough
CT: control target
= control target key end

     0   :  { %s2046_s15 = smov 0   ;;  %s2786_s0 = inlined_call_operand.vmem [shape: bf16[2,10,10,64], index: 0, kind: input, shape index: {}]   ;;  %s2787_s1 = inlined_call_operand.vmem [shape: bf16[576,64], index: 1, kind: input, shape index: {}]   ;;  %s2788_s2 = inlined_call_operand.vmem [shape: f32[3,64], index: 2, kind: input, shape index: {}]   ;;  %s2789_s3 = inlined_call_operand.vmem [shape: bf16[2,8,8,64], index: 3, kind: input, shape index: {}]   ;;  %s2790_s4 = inlined_call_operand.vmem [shape: bf16[2,8,8,64], index: 4, kind: output, shape index: {}]  }
   0x1 LB: > { %s1658_s16 = sadd.s32 4294967295, %s2018_s15   ;;  %p1662_p0 = scmp.ge.s32.totalorder %s2018_s15, 1  ;;  %s2018_s15 = sphi %s2046_s15, %s14_s15  }
   0x2   : > { %p172_p1 = scmp.lt.s32.totalorder %s2018_s15, 3 }
   0x4   : > { %p173_p2 = pnand %p1662_p0, %p172_p1 }
   0x6   : > { %176 = sbr.rel (%p173_p2) target bundleno = 442 (0x1ba), region = 36 }
   0xd   : > { %p203_p3 = scmp.lt.s32.totalorder %s1658_s16, 1  ;;  %vm374_vm0 = vcmask 1042432   ;;  %vm375_vm1 = vcmask 1046532   ;;  %v1968_v1 = vld [vmem:[%s2787_s1 + $0x40] sm:$0xff]   ;;  %v1972_v5 = vld [vmem:[%s2787_s1 + $0x48] sm:$0xff]   ;;  %s2020_s9 = smov 64  }
   0xe   : > { %vm2056_vm2 = vmor %vm374_vm0, %vm375_vm1  ;;  %v1969_v2 = vld [vmem:[%s2787_s1 + $0xc0] sm:$0xff]   ;;  %1842 = vmatprep.subr.bf16.mxu0 %v1968_v1  ;;  %vm235_vm3 = vsmask.f32 3328  ;;  %vm236_vm4 = vsmask.f32 7440  ;;  %v1973_v23 = vld [vmem:[%s2787_s1 + $0xc8] sm:$0xff]  }
   0xf   : > { %s2835_s16 = smov (!%p203_p3, %s1658_s16), 1  ;;  %v1970_v3 = vld [vmem:[%s2787_s1] sm:$0xff]   ;;  %1882 = vmatprep.subr.bf16.mxu1 %v1969_v2  ;;  %v1974_v35 = vld [vmem:[%s2787_s1 + $0x8] sm:$0xff]   ;;  %v1976_v55 = vld [vmem:[%s2787_s1 + $0x50] sm:$0xff]   ;;  %vm943_vm6 = vcmask 523264   ;;  %vm1582_vm7 = vcmask 519168  }
  0x10   : > { %s1954_s21 = smul.u32 80, %s2835_s16  ;;  %v1971_v4 = vld [vmem:[%s2787_s1 + $0x80] sm:$0xff]   ;;  %1843 = vmatpush3.bf16.msra.mxu0 %v1970_v3  ;;  %v1975_v45 = vld [vmem:[%s2787_s1 + $0x88] sm:$0xff]   ;;  %v1977_v61 = vld [vmem:[%s2787_s1 + $0xd0] sm:$0xff]   ;;  %s1821_s26 = sshll.u32 %s2835_s16, 5 }
  0x11   : > { %1883 = vmatpush3.bf16.msra.mxu1 %v1971_v4  ;;  %1844 = vmatprep.subr.bf16.mxu0 %v1972_v5  ;;  %vm2153_vm5 = vmor %vm235_vm3, %vm236_vm4  ;;  %v1978_v4 = vld [vmem:[%s2787_s1 + $0x10] sm:$0xff]   ;;  %v2005_v0 = vld [vmem:[%s2787_s1 + $0x108] sm:$0xff]   ;;  %s212_s30 = scalar_lea.vmem %s2789_s3, %s1821_s26  ;;  %s217_s12 = scalar_lea.vmem %s2790_s4, %s1821_s26 }
  0x12   : > { %s2076_s28 = scalar_lea.vmem %s2786_s0, %s1954_s21  ;;  %1884 = vmatprep.subr.bf16.mxu1 %v1973_v23 }
  0x13   : > { %v1684_v6 = vld [vmem:[%s2076_s28 + $0xc] sm:$0x1]  ;;  %v1685_v7 = vld [vmem:[%s2076_s28 + $0x14] sm:$0x1]  ;;  %v1692_v8 = vld [vmem:[%s2076_s28 + $0x8] sm:$0xe] }
  0x14   : > { %v450_v9 = vshll.u32 %v1685_v7, 16  ;;  %v1693_v10 = vld [vmem:[%s2076_s28 + $0x10] sm:$0xe]  ;;  %v1700_v11 = vrot.slane %v1692_v8, 9  ;;  %v564_v12 = vrot.slane %v1684_v6, 5  ;;  %v568_v13 = vrot.slane %v1685_v7, 5  ;;  %1845 = vmatpush3.bf16.msra.mxu0 %v1974_v35 }
  0x15   : > { %v1701_v14 = vrot.slane %v1693_v10, 9  ;;  %v436_v15 = vshll.u32 %v1684_v6, 16  ;;  %v1676_v16 = vld [vmem:[%s2076_s28 + $0x8] sm:$0xf]  ;;  %v1677_v17 = vld [vmem:[%s2076_s28 + $0x10] sm:$0xf]  ;;  %1885 = vmatpush3.bf16.msra.mxu1 %v1975_v45  ;;  %1846 = vmatprep.subr.bf16.mxu0 %v1976_v55 }
  0x16   : > { %v2087_v18 = vrot.slane %v450_v9, 5  ;;  %v565_v19 = vsel %vm2056_vm2, %v1700_v11, %v564_v12  ;;  %v441_v20 = vshrl.u32 %v1677_v17, 16  ;;  %v444_v21 = vshll.u32 %v1677_v17, 16  ;;  %v2092_v22 = vld [vmem:[%s2076_s28 + $0x10] sm:$0xf]  ;;  %1886 = vmatprep.subr.bf16.mxu1 %v1977_v61 }
  0x17   : > { %v569_v24 = vsel %vm2056_vm2, %v1701_v14, %v568_v13  ;;  %v2099_v25 = vrot.slane %v436_v15, 5  ;;  %v1752_v26 = vcombine.low %v1676_v16, %v1677_v17  ;;  %v427_v27 = vshrl.u32 %v1676_v16, 16  ;;  %v2102_v28 = vld [vmem:[%s2076_s28 + $0x18] sm:$0xf]  ;;  %v2105_v29 = vld [vmem:[%s2076_s28 + $0x14] sm:$0x1] }
  0x18   : > { %2800 = vst [vmem:[#allocation2_spill] sm:$0xff] %v2105_v29  ;;  %v1760_v30 = vcombine.low %v565_v19, %v569_v24  ;;  %v443_v31 = vrot.slane %v441_v20, 4  ;;  %v446_v32 = vrot.slane %v444_v21, 5  ;;  %v430_v33 = vshll.u32 %v1676_v16, 16  ;;  %v2108_v34 = vld [vmem:[%s2076_s28 + $0x1c] sm:$0x1]  ;;  %1847 = vmatpush3.bf16.msra.mxu0 %v1978_v4 }
  0x19   : > { %2801 = vst [vmem:[#allocation3_spill] sm:$0xff] %v2108_v34  ;;  %851 = vrot.lane.b32.xlu0 %v1752_v26, %s2020_s9  ;;  %v2114_v36 = vrot.slane %v427_v27, 4  ;;  %v612_v37 = vshrl.u32 %v2092_v22, 16  ;;  %v615_v38 = vshll.u32 %v2092_v22, 16  ;;  %v621_v39 = vshll.u32 %v2105_v29, 16  ;;  %v1979_v20 = vld [vmem:[%s2787_s1 + $0x90] sm:$0xff]  }
  0x1a   : > { %883 = vrot.lane.b32.xlu1 %v1760_v30, %s2020_s9  ;;  %v447_v40 = vor.u32 %v446_v32, %v443_v31  ;;  %v2120_v41 = vrot.slane %v430_v33, 5  ;;  %v626_v42 = vshrl.u32 %v2102_v28, 16  ;;  %v629_v43 = vshll.u32 %v2102_v28, 16  ;;  %v2125_v44 = vld [vmem:[%s2076_s28] sm:$0xf]  ;;  %1887 = vmatpush3.bf16.msra.mxu1 %v1979_v20 }
  0x1b   : > { %v614_v46 = vrot.slane %v612_v37, 4  ;;  %v617_v47 = vrot.slane %v615_v38, 5  ;;  %v623_v48 = vrot.slane %v621_v39, 5  ;;  %v635_v49 = vshll.u32 %v2108_v34, 16  ;;  %v2132_v50 = vld [vmem:[%s2076_s28 + $0x8] sm:$0xf] }
  0x1c   : > { %v2134_v51 = vrot.slane %v447_v40, 4  ;;  %v628_v52 = vrot.slane %v626_v42, 4  ;;  %v631_v53 = vrot.slane %v629_v43, 5  ;;  %v2137_v54 = vld [vmem:[%s2076_s28 + $0x4] sm:$0x1]  ;;  %v433_v56 = vor.u32 %v2120_v41, %v2114_v36  ;;  %v1980_v43 = vld [vmem:[%s2787_s1 + $0x58] sm:$0xff]  }
  0x1d   : > { %v618_v57 = vor.u32 %v617_v47, %v614_v46  ;;  %v637_v58 = vrot.slane %v635_v49, 5  ;;  %v2146_v60 = vld [vmem:[%s2076_s28 + $0xc] sm:$0x1]  ;;  %v239_v2 = vshrl.u32 %v2125_v44, 16  ;;  %v242_v3 = vshll.u32 %v2125_v44, 16  ;;  %1848 = vmatprep.subr.bf16.mxu0 %v1980_v43 }
  0x1e   : > { %v632_v63 = vor.u32 %v631_v53, %v628_v52  ;;  %v248_v6 = vshll.u32 %v2137_v54, 16  ;;  %v253_v7 = vshrl.u32 %v2132_v50, 16  ;;  %v256_v8 = vshll.u32 %v2132_v50, 16  ;;  %v1678_v13 = vld [vmem:[%s2076_s28 + $0x18] sm:$0xf] }
  0x1f   : > { %v619_v5 = vrot.slane %v618_v57, 4  ;;  %v241_v10 = vrot.slane %v239_v2, 4  ;;  %v244_v11 = vrot.slane %v242_v3, 5  ;;  %v262_v12 = vshll.u32 %v2146_v60, 16  ;;  %v1679_v19 = vld [vmem:[%s2076_s28 + $0x20] sm:$0xf] }
  0x20   : > { %v633_v9 = vrot.slane %v632_v63, 4  ;;  %v250_v15 = vrot.slane %v248_v6, 5  ;;  %v255_v16 = vrot.slane %v253_v7, 4  ;;  %v258_v17 = vrot.slane %v256_v8, 5  ;;  %v2177_v27 = vld [vmem:[%s2076_s28 + $0x20] sm:$0xf] }
  0x21   : > { %v624_v14 = vsel %vm2153_vm5, %v619_v5, %v623_v48  ;;  %v245_v23 = vor.u32 %v244_v11, %v241_v10  ;;  %v264_v24 = vrot.slane %v262_v12, 5  ;;  %v455_v26 = vshrl.u32 %v1678_v13, 16  ;;  %v1718_v35 = vld [vmem:[%s2076_s28 + $0x24] sm:$0x1]  ;;  %v2181_v42 = vld [vmem:[%s2076_s28 + $0x28] sm:$0xf] }
  0x22   : > { %v638_v21 = vsel %vm2153_vm5, %v633_v9, %v637_v58  ;;  %v259_v31 = vor.u32 %v258_v17, %v255_v16  ;;  %v458_v32 = vshll.u32 %v1678_v13, 16  ;;  %v469_v33 = vshrl.u32 %v1679_v19, 16  ;;  %v2191_v53 = vld [vmem:[%s2076_s28 + $0x2c] sm:$0x1]  ;;  %v1981_v58 = vld [vmem:[%s2787_s1 + $0xd8] sm:$0xff]  }
  0x23   : > { %v1768_v30 = vcombine.low %v624_v14, %v638_v21  ;;  %v246_v37 = vrot.slane %v245_v23, 4  ;;  %v457_v38 = vrot.slane %v455_v26, 4  ;;  %v472_v39 = vshll.u32 %v1679_v19, 16  ;;  %v1726_v4 = vld [vmem:[%s2076_s28 + $0x20] sm:$0xe]  ;;  %1888 = vmatprep.subr.bf16.mxu1 %v1981_v58 }
  0x24   : > { %v1753_v40 = vcombine.low %v1678_v13, %v1679_v19  ;;  %v260_v45 = vrot.slane %v259_v31, 4  ;;  %v460_v46 = vrot.slane %v458_v32, 5  ;;  %v471_v47 = vrot.slane %v469_v33, 4  ;;  %v2207_v9 = vld [vmem:[%s2076_s28 + $0x28] sm:$0xe]  ;;  %v1982_v19 = vld [vmem:[%s2787_s1 + $0x18] sm:$0xff]  }
  0x25   : > { %923 = vrot.lane.b32.xlu0 %v1768_v30, %s2020_s9  ;;  %v640_v48 = vshrl.u32 %v2177_v27, 16  ;;  %v251_v49 = vsel %vm2153_vm5, %v246_v37, %v250_v15  ;;  %v474_v52 = vrot.slane %v472_v39, 5  ;;  %v643_v55 = vshll.u32 %v2177_v27, 16  ;;  %v2210_v10 = vld [vmem:[%s2076_s28 + $0x10] sm:$0xf]  ;;  %1849 = vmatpush3.bf16.msra.mxu0 %v1982_v19 }
  0x26   : > { %v649_v57 = vshll.u32 %v1718_v35, 16  ;;  %v265_v61 = vsel %vm2153_vm5, %v260_v45, %v264_v24  ;;  %v461_v63 = vor.u32 %v460_v46, %v457_v38  ;;  %v654_v3 = vshrl.u32 %v2181_v42, 16  ;;  %v2216_v41 = vld [vmem:[%s2076_s28 + $0x18] sm:$0xf]  ;;  %v2222_v17 = vld [vmem:[%s2076_s28 + $0x14] sm:$0x1] }
  0x27   : > { %v642_v2 = vrot.slane %v640_v48, 4  ;;  %v2204_v5 = vrot.slane %v433_v56, 4  ;;  %v1744_v6 = vcombine.low %v251_v49, %v265_v61  ;;  %v475_v7 = vor.u32 %v474_v52, %v471_v47  ;;  %v2231_v26 = vld [vmem:[%s2076_s28 + $0x1c] sm:$0x1]  ;;  %v2249_v45 = vld [vmem:[%s2076_s28 + $0x24] sm:$0x1] }
  0x28   : > { %v645_v8 = vrot.slane %v643_v55, 5  ;;  %v651_v11 = vrot.slane %v649_v57, 5  ;;  %v656_v12 = vrot.slane %v654_v3, 4  ;;  %v657_v13 = vshll.u32 %v2181_v42, 16  ;;  %v2246_v43 = vld [vmem:[%s2076_s28 + $0x1c] sm:$0x1] }
  0x29   : > { %853 = vrot.lane.b32.xlu0 %v1753_v40, %s2020_s9  ;;  %v663_v36 = vshll.u32 %v2191_v53, 16  ;;  %811 = vrot.lane.b32.xlu1 %v1744_v6, %s2020_s9  ;;  %v2219_v56 = vrot.slane %v461_v63, 4  ;;  %v1734_v15 = vrot.slane %v1726_v4, 9  ;;  %v757_v16 = vrot.slane %v1718_v35, 5  ;;  %v1983_v35 = vld [vmem:[%s2787_s1 + $0x98] sm:$0xff]   ;;  %v1984_v55 = vld [vmem:[%s2787_s1 + $0x60] sm:$0xff]  }
  0x2a   : > { %v646_v14 = vor.u32 %v645_v8, %v642_v2  ;;  %v2227_v20 = vrot.slane %v475_v7, 4  ;;  %v659_v21 = vrot.slane %v657_v13, 5  ;;  %v267_v32 = vshrl.u32 %v2210_v10, 16  ;;  %v1694_v52 = vld [vmem:[%s2076_s28 + $0x18] sm:$0xe]  ;;  %1889 = vmatpush3.bf16.msra.mxu1 %v1983_v35  ;;  %1850 = vmatprep.subr.bf16.mxu0 %v1984_v55  ;;  %v1985_v8 = vld [vmem:[%s2787_s1 + $0xe0] sm:$0xff]  }
  0x2b   : > { %v665_v23 = vrot.slane %v663_v36, 5  ;;  %v270_v33 = vshll.u32 %v2210_v10, 16  ;;  %v2241_v38 = vsel %vm2056_vm2, %v1734_v15, %v757_v16  ;;  %v276_v39 = vshll.u32 %v2222_v17, 16  ;;  %v1695_v2 = vld [vmem:[%s2076_s28 + $0x20] sm:$0xe]  ;;  %1890 = vmatprep.subr.bf16.mxu1 %v1985_v8 }
  0x2c   : > { %v647_v30 = vrot.slane %v646_v14, 4  ;;  %v660_v37 = vor.u32 %v659_v21, %v656_v12  ;;  %v281_v40 = vshrl.u32 %v2216_v41, 16  ;;  %v269_v47 = vrot.slane %v267_v32, 4  ;;  %v1986_v14 = vld [vmem:[%s2787_s1 + $0x20] sm:$0xff]   ;;  %v2275_v32 = vld [vmem:[%s2076_s28 + $0x30] sm:$0xf] }
  0x2d   : > { %v272_v48 = vrot.slane %v270_v33, 5  ;;  %v284_v49 = vshll.u32 %v2216_v41, 16  ;;  %v278_v58 = vrot.slane %v276_v39, 5  ;;  %v290_v63 = vshll.u32 %v2231_v26, 16  ;;  %1851 = vmatpush3.bf16.msra.mxu0 %v1986_v14  ;;  %v1987_v39 = vld [vmem:[%s2787_s1 + $0xa0] sm:$0xff]  }
  0x2e   : > { %v652_v46 = vsel %vm2153_vm5, %v647_v30, %v651_v11  ;;  %v661_v57 = vrot.slane %v660_v37, 4  ;;  %v283_v61 = vrot.slane %v281_v40, 4  ;;  %v1702_v13 = vrot.slane %v1694_v52, 9  ;;  %v2272_v30 = vld [vmem:[%s2076_s28 + $0x28] sm:$0xf]  ;;  %1891 = vmatpush3.bf16.msra.mxu1 %v1987_v39 }
  0x2f   : > { %v273_v3 = vor.u32 %v272_v48, %v269_v47  ;;  %v286_v4 = vrot.slane %v284_v49, 5  ;;  %v292_v12 = vrot.slane %v290_v63, 5  ;;  %v572_v36 = vrot.slane %v2246_v43, 5  ;;  %v2291_v49 = vld [vmem:[%s2076_s28 + $0x30] sm:$0xf]  ;;  %v1988_v52 = vld [vmem:[%s2787_s1 + $0x68] sm:$0xff]  }
  0x30   : > { %v666_v11 = vsel %vm2153_vm5, %v661_v57, %v665_v23  ;;  %v1703_v21 = vrot.slane %v1695_v2, 9  ;;  %v576_v33 = vrot.slane %v2249_v45, 5  ;;  %v483_v35 = vshrl.u32 %v2272_v30, 16  ;;  %v2301_v63 = vld [vmem:[%s2076_s28 + $0x38] sm:$0xf]  ;;  %1852 = vmatprep.subr.bf16.mxu0 %v1988_v52 }
  0x31   : > { %v1769_v15 = vcombine.low %v652_v46, %v666_v11  ;;  %v274_v16 = vrot.slane %v273_v3, 4  ;;  %v287_v19 = vor.u32 %v286_v4, %v283_v61  ;;  %v573_v23 = vsel %vm2056_vm2, %v1702_v13, %v572_v36  ;;  %v2304_v2 = vld [vmem:[%s2076_s28 + $0x34] sm:$0x1]  ;;  %v2309_v13 = vld [vmem:[%s2076_s28 + $0x3c] sm:$0x1] }
  0x32   : > { %v486_v37 = vshll.u32 %v2272_v30, 16  ;;  %v497_v47 = vshrl.u32 %v2275_v32, 16  ;;  %v500_v48 = vshll.u32 %v2275_v32, 16  ;;  %v577_v55 = vsel %vm2056_vm2, %v1703_v21, %v576_v33  ;;  %2804 = vst [vmem:[#allocation4_spill] sm:$0xff] %v2304_v2  ;;  %2805 = vst [vmem:[#allocation5_spill] sm:$0xff] %v2309_v13  ;;  %v1989_v33 = vld [vmem:[%s2787_s1 + $0xe8] sm:$0xff]  }
  0x33   : > { %925 = vrot.lane.b32.xlu1 %v1769_v15, %s2020_s9  ;;  %v279_v40 = vsel %vm2153_vm5, %v274_v16, %v278_v58  ;;  %v288_v46 = vrot.slane %v287_v19, 4  ;;  %v485_v57 = vrot.slane %v483_v35, 4  ;;  %v1754_v58 = vcombine.low %v2272_v30, %v2275_v32  ;;  %v2314_v19 = vld [vmem:[%s2076_s28 + $0x20] sm:$0xf]  ;;  %1892 = vmatprep.subr.bf16.mxu1 %v1989_v33  ;;  %v1697_v7 = vld [vmem:[%s2076_s28 + $0x30] sm:$0xe] }
  0x34   : > { %v488_v61 = vrot.slane %v486_v37, 5  ;;  %v1761_v4 = vcombine.low %v573_v23, %v577_v55  ;;  %v499_v8 = vrot.slane %v497_v47, 4  ;;  %v502_v11 = vrot.slane %v500_v48, 5  ;;  %v2321_v23 = vld [vmem:[%s2076_s28 + $0x28] sm:$0xf] }
  0x35   : > { %v293_v3 = vsel %vm2153_vm5, %v288_v46, %v292_v12  ;;  %v668_v15 = vshrl.u32 %v2291_v49, 16  ;;  %v671_v16 = vshll.u32 %v2291_v49, 16  ;;  %v677_v12 = vshll.u32 %v2304_v2, 16  ;;  %v2331_v46 = vld [vmem:[%s2076_s28 + $0x24] sm:$0x1] }
  0x36   : > { %v1745_v36 = vcombine.low %v279_v40, %v293_v3  ;;  %v489_v14 = vor.u32 %v488_v61, %v485_v57  ;;  %v503_v21 = vor.u32 %v502_v11, %v499_v8  ;;  %v682_v30 = vshrl.u32 %v2301_v63, 16  ;;  %v2336_v57 = vld [vmem:[%s2076_s28 + $0x2c] sm:$0x1]  ;;  %v2378_v6 = vld [vmem:[%s2076_s28 + $0x40] sm:$0xf] }
  0x37   : > { %885 = vrot.lane.b32.xlu1 %v1761_v4, %s2020_s9  ;;  %v685_v32 = vshll.u32 %v2301_v63, 16  ;;  %v670_v37 = vrot.slane %v668_v15, 4  ;;  %v673_v39 = vrot.slane %v671_v16, 5  ;;  %v691_v40 = vshll.u32 %v2309_v13, 16  ;;  %v1990_v11 = vld [vmem:[%s2787_s1 + $0x28] sm:$0xff]  }
  0x38   : > { %813 = vrot.lane.b32.xlu0 %v1745_v36, %s2020_s9  ;;  %v2327_v35 = vrot.slane %v489_v14, 4  ;;  %v2333_v47 = vrot.slane %v503_v21, 4  ;;  %v679_v48 = vrot.slane %v677_v12, 5  ;;  %v684_v52 = vrot.slane %v682_v30, 4  ;;  %v2347_v21 = vld [vmem:[%s2076_s28 + $0x2c] sm:$0x1]  ;;  %1853 = vmatpush3.bf16.msra.mxu0 %v1990_v11 }
  0x39   : > { %v687_v55 = vrot.slane %v685_v32, 5  ;;  %v674_v61 = vor.u32 %v673_v39, %v670_v37  ;;  %v693_v3 = vrot.slane %v691_v40, 5  ;;  %v295_v14 = vshrl.u32 %v2314_v19, 16  ;;  %v1991_v12 = vld [vmem:[%s2787_s1 + $0xa8] sm:$0xff]   ;;  %v2357_v39 = vld [vmem:[%s2076_s28 + $0x34] sm:$0x1] }
  0x3a   : > { %2806 = vst [vmem:[#allocation6_spill] sm:$0xff] %v2327_v35  ;;  %2807 = vst [vmem:[#allocation7_spill] sm:$0xff] %v2333_v47  ;;  %v298_v15 = vshll.u32 %v2314_v19, 16  ;;  %v304_v16 = vshll.u32 %v2331_v46, 16  ;;  %v309_v32 = vshrl.u32 %v2321_v23, 16  ;;  %v312_v33 = vshll.u32 %v2321_v23, 16  ;;  %1893 = vmatpush3.bf16.msra.mxu1 %v1991_v12 }
  0x3b   : > { %v688_v36 = vor.u32 %v687_v55, %v684_v52  ;;  %v675_v30 = vrot.slane %v674_v61, 4  ;;  %v318_v37 = vshll.u32 %v2336_v57, 16  ;;  %2808 = vst [vmem:[#allocation8_spill] sm:$0xff] %v2357_v39  ;;  %v297_v52 = vrot.slane %v295_v14, 4  ;;  %v1696_v4 = vld [vmem:[%s2076_s28 + $0x28] sm:$0xe] }
  0x3c   : > { %855 = vrot.lane.b32.xlu0 %v1754_v58, %s2020_s9  ;;  %v300_v55 = vrot.slane %v298_v15, 5  ;;  %v306_v8 = vrot.slane %v304_v16, 5  ;;  %v311_v61 = vrot.slane %v309_v32, 4  ;;  %v314_v1 = vrot.slane %v312_v33, 5  ;;  %v1992_v11 = vld [vmem:[%s2787_s1 + $0x70] sm:$0xff]  }
  0x3d   : > { %v689_v40 = vrot.slane %v688_v36, 4  ;;  %v680_v58 = vsel %vm2153_vm5, %v675_v30, %v679_v48  ;;  %v320_v59 = vrot.slane %v318_v37, 5  ;;  %v2371_v48 = vld [vmem:[%s2076_s28 + $0x38] sm:$0xf]  ;;  %v2374_v12 = vld [vmem:[%s2076_s28 + $0x40] sm:$0xf]  ;;  %1854 = vmatprep.subr.bf16.mxu0 %v1992_v11 }
  0x3e   : > { %v301_v14 = vor.u32 %v300_v55, %v297_v52  ;;  %v315_v32 = vor.u32 %v314_v1, %v311_v61  ;;  %v1704_v33 = vrot.slane %v1696_v4, 9  ;;  %v580_v37 = vrot.slane %v2347_v21, 5  ;;  %v2383_v16 = vld [vmem:[%s2076_s28 + $0x48] sm:$0xf]  ;;  %v2386_v15 = vld [vmem:[%s2076_s28 + $0x44] sm:$0x1] }
  0x3f   : > { %v694_v36 = vsel %vm2153_vm5, %v689_v40, %v693_v3  ;;  %v1705_v40 = vrot.slane %v1697_v7, 9  ;;  %v584_v52 = vrot.slane %v2357_v39, 5  ;;  %v511_v55 = vshrl.u32 %v2371_v48, 16  ;;  %v2394_v7 = vld [vmem:[%s2076_s28 + $0x4c] sm:$0x1]  ;;  %v1993_v11 = vld [vmem:[%s2787_s1 + $0xf0] sm:$0xff]  }
  0x40   : > { %v1770_v30 = vcombine.low %v680_v58, %v694_v36  ;;  %v302_v3 = vrot.slane %v301_v14, 4  ;;  %v316_v1 = vrot.slane %v315_v32, 4  ;;  %v581_v4 = vsel %vm2056_vm2, %v1704_v33, %v580_v37  ;;  %v1730_v13 = vld [vmem:[%s2076_s28 + $0x40] sm:$0xe]  ;;  %1894 = vmatprep.subr.bf16.mxu1 %v1993_v11  ;;  %v2438_v29 = vld [vmem:[%s2076_s28 + $0x3c] sm:$0x1] }
  0x41   : > { %v514_v58 = vshll.u32 %v2371_v48, 16  ;;  %v525_v61 = vshrl.u32 %v2374_v12, 16  ;;  %v585_v14 = vsel %vm2056_vm2, %v1705_v40, %v584_v52  ;;  %v528_v32 = vshll.u32 %v2374_v12, 16  ;;  %v1731_v40 = vld [vmem:[%s2076_s28 + $0x48] sm:$0xe]  ;;  %2812 = vst [vmem:[#allocation12_spill] sm:$0xff] %v2438_v29 }
  0x42   : > { %927 = vrot.lane.b32.xlu1 %v1770_v30, %s2020_s9  ;;  %v307_v36 = vsel %vm2153_vm5, %v302_v3, %v306_v8  ;;  %v513_v30 = vrot.slane %v511_v55, 4  ;;  %v321_v33 = vsel %vm2153_vm5, %v316_v1, %v320_v59  ;;  %v1762_v37 = vcombine.low %v581_v4, %v585_v14  ;;  %v2416_v4 = vld [vmem:[%s2076_s28 + $0x30] sm:$0xf] }
  0x43   : > { %v516_v24 = vrot.slane %v514_v58, 5  ;;  %v527_v31 = vrot.slane %v525_v61, 4  ;;  %v1746_v2 = vcombine.low %v307_v36, %v321_v33  ;;  %v530_v34 = vrot.slane %v528_v32, 5  ;;  %v2419_v58 = vld [vmem:[%s2076_s28 + $0x34] sm:$0x1] }
  0x44   : > { %v1755_v8 = vcombine.low %v2371_v48, %v2374_v12  ;;  %v696_v3 = vshrl.u32 %v2378_v6, 16  ;;  %v699_v59 = vshll.u32 %v2378_v6, 16  ;;  %v705_v55 = vshll.u32 %v2386_v15, 16  ;;  %2809 = vst [vmem:[#allocation9_spill] sm:$0xff] %v2419_v58  ;;  %v1994_v48 = vld [vmem:[%s2787_s1 + $0x30] sm:$0xff]  }
  0x45   : > { %v517_v52 = vor.u32 %v516_v24, %v513_v30  ;;  %v710_v1 = vshrl.u32 %v2383_v16, 16  ;;  %815 = vrot.lane.b32.xlu0 %v1746_v2, %s2020_s9  ;;  %v531_v12 = vor.u32 %v530_v34, %v527_v31  ;;  %v713_v24 = vshll.u32 %v2383_v16, 16  ;;  %v2428_v36 = vld [vmem:[%s2076_s28 + $0x38] sm:$0xf]  ;;  %v1995_v14 = vld [vmem:[%s2787_s1 + $0xb0] sm:$0xff]   ;;  %1855 = vmatpush3.bf16.msra.mxu0 %v1994_v48 }
  0x46   : > { %887 = vrot.lane.b32.xlu1 %v1762_v37, %s2020_s9  ;;  %v698_v61 = vrot.slane %v696_v3, 4  ;;  %v719_v11 = vshll.u32 %v2394_v7, 16  ;;  %v701_v32 = vrot.slane %v699_v59, 5  ;;  %v707_v33 = vrot.slane %v705_v55, 5  ;;  %1895 = vmatpush3.bf16.msra.mxu1 %v1995_v14  ;;  %v1996_v55 = vld [vmem:[%s2787_s1 + $0x78] sm:$0xff]  }
  0x47   : > { %v2433_v30 = vrot.slane %v517_v52, 4  ;;  %v712_v37 = vrot.slane %v710_v1, 4  ;;  %v2435_v2 = vrot.slane %v531_v12, 4  ;;  %v715_v34 = vrot.slane %v713_v24, 5  ;;  %1856 = vmatprep.subr.bf16.mxu0 %v1996_v55  ;;  %v1998_v55 = vld [vmem:[%s2787_s1 + $0x38] sm:$0xff]  }
  0x48   : > { %v721_v31 = vrot.slane %v719_v11, 5  ;;  %v1738_v3 = vrot.slane %v1730_v13, 9  ;;  %v702_v47 = vor.u32 %v701_v32, %v698_v61  ;;  %v773_v35 = vrot.slane %v2386_v15, 5  ;;  %v1698_v61 = vld [vmem:[%s2076_s28 + $0x38] sm:$0xe] }
  0x49   : > { %2810 = vst [vmem:[#allocation10_spill] sm:$0xff] %v2433_v30  ;;  %2811 = vst [vmem:[#allocation11_spill] sm:$0xff] %v2435_v2  ;;  %v1739_v52 = vrot.slane %v1731_v40, 9  ;;  %v777_v59 = vrot.slane %v2394_v7, 5  ;;  %857 = vrot.lane.b32.xlu0 %v1755_v8, %s2020_s9  ;;  %v716_v1 = vor.u32 %v715_v34, %v712_v37  ;;  %v323_v13 = vshrl.u32 %v2416_v4, 16  ;;  %v1997_v15 = vld [vmem:[%s2787_s1 + $0xf8] sm:$0xff]   ;;  %1857 = vmatpush3.bf16.msra.mxu0 %v1998_v55 }
  0x4a   : > { %v326_v48 = vshll.u32 %v2416_v4, 16  ;;  %v332_v12 = vshll.u32 %v2419_v58, 16  ;;  %v2813_v7 = vrot.slane %v2191_v53, 5  ;;  %v2814_v40 = vrot.slane %v2207_v9, 9  ;;  %v2467_v32 = vld [vmem:[%s2076_s28 + $0x3c] sm:$0x1]  ;;  %1896 = vmatprep.subr.bf16.mxu1 %v1997_v15 }
  0x4b   : > { %v703_v8 = vrot.slane %v702_v47, 4  ;;  %v2463_v11 = vsel %vm2056_vm2, %v1738_v3, %v773_v35  ;;  %v337_v14 = vshrl.u32 %v2428_v36, 16  ;;  %v2470_v37 = vld [vmem:[%s2076_s28 + $0x44] sm:$0x1]  ;;  %v1699_v34 = vld [vmem:[%s2076_s28 + $0x40] sm:$0xe]  ;;  %v2475_v9 = vsel %vm2056_vm2, %v1739_v52, %v777_v59 }
  0x4c   : > { %v2459_v24 = vsel %vm2056_vm2, %v2814_v40, %v2813_v7  ;;  %v717_v53 = vrot.slane %v716_v1, 4  ;;  %v325_v7 = vrot.slane %v323_v13, 4  ;;  %v328_v40 = vrot.slane %v326_v48, 5 }
  0x4d   : > { %v708_v35 = vsel %vm2153_vm5, %v703_v8, %v707_v33  ;;  %v339_v47 = vrot.slane %v337_v14, 4  ;;  %v340_v3 = vshll.u32 %v2428_v36, 16  ;;  %v346_v2 = vshll.u32 %v2438_v29, 16  ;;  %v1999_v8 = vld [vmem:[%s2787_s1 + $0xb8] sm:$0xff]  }
  0x4e   : > { %v722_v1 = vsel %vm2153_vm5, %v717_v53, %v721_v31  ;;  %v329_v52 = vor.u32 %v328_v40, %v325_v7  ;;  %v334_v59 = vrot.slane %v332_v12, 5  ;;  %v520_v13 = vshll.u32 %v2467_v32, 16  ;;  %1897 = vmatpush3.bf16.msra.mxu1 %v1999_v8 }
  0x4f   : > { %v1771_v48 = vcombine.low %v708_v35, %v722_v1  ;;  %v342_v15 = vrot.slane %v340_v3, 5  ;;  %v348_v30 = vrot.slane %v346_v2, 5  ;;  %v1706_v33 = vrot.slane %v1698_v61, 9 }
  0x50   : > { %v330_v14 = vrot.slane %v329_v52, 4  ;;  %v588_v29 = vrot.slane %v2467_v32, 5  ;;  %v1707_v58 = vrot.slane %v1699_v34, 9  ;;  %v592_v39 = vrot.slane %v2470_v37, 5  ;;  %v350_v52 = vld [vmem:[%s2076_s28] sm:$0xe] }
  0x51   : > { %929 = vrot.lane.b32.xlu1 %v1771_v48, %s2020_s9  ;;  %v343_v31 = vor.u32 %v342_v15, %v339_v47  ;;  %v1740_v12 = vcombine.low %v2125_v44, %v2132_v50  ;;  %v1764_v2 = vcombine.low %v2092_v22, %v2102_v28  ;;  %v439_v7 = vsel %vm2153_vm5, %v2204_v5, %v2099_v25  ;;  %v2540_v15 = vld [vmem:[%s2787_s1 + $0x100] sm:$0xff]   ;;  %v2008_v28 = vld [vmem:[%s2787_s1 + $0x110] sm:$0xff]  }
  0x52   : > { %v335_v61 = vsel %vm2153_vm5, %v330_v14, %v334_v59  ;;  %v589_v53 = vsel %vm2056_vm2, %v1706_v33, %v588_v29  ;;  %v593_v34 = vsel %vm2056_vm2, %v1707_v58, %v592_v39  ;;  %v379_v47 = vrot.slane %v2137_v54, 5  ;;  %v351_v59 = vld [vmem:[%s2076_s28 + $0x8] sm:$0xe]  ;;  %1930 = vmatprep.subr.bf16.mxu0 %v2540_v15  ;;  %1946 = vmatprep.subr.bf16.mxu1 %v2540_v15 }
  0x53   : > { %v344_v40 = vrot.slane %v343_v31, 4  ;;  %v1763_v35 = vcombine.low %v589_v53, %v593_v34  ;;  %v453_v3 = vsel %vm2153_vm5, %v2134_v51, %v2087_v18  ;;  %v1765_v39 = vcombine.low %v2177_v27, %v2181_v42  ;;  %v353_v53 = vld [vmem:[%s2076_s28 + $0x18] sm:$0xe] }
  0x54   : > { %v2512_v29 = vcombine.low %v439_v7, %v453_v3  ;;  %v1741_v58 = vcombine.low %v2210_v10, %v2216_v41  ;;  %v1766_v25 = vcombine.low %v2291_v49, %v2301_v63  ;;  %v1742_v5 = vcombine.low %v2314_v19, %v2321_v23 }
  0x55   : > { %v349_v54 = vsel %vm2153_vm5, %v344_v40, %v348_v30  ;;  %889 = vrot.lane.b32.xlu1 %v1763_v35, %s2020_s9  ;;  %v1767_v18 = vcombine.low %v2378_v6, %v2383_v16  ;;  %v1743_v51 = vcombine.low %v2416_v4, %v2428_v36  ;;  %v1773_v1 = vcombine.low %v2241_v38, %v2459_v24 }
  0x56   : > { %v1747_v55 = vcombine.low %v335_v61, %v349_v54  ;;  %v1775_v30 = vcombine.low %v2463_v11, %v2475_v9  ;;  %v383_v48 = vrot.slane %v2146_v60, 5  ;;  %v1668_v33 = vrot.slane %v350_v52, 9  ;;  %v352_v61 = vld [vmem:[%s2076_s28 + $0x10] sm:$0xe] }
  0x57   : > { %v1669_v8 = vrot.slane %v351_v59, 9  ;;  %v387_v34 = vrot.slane %v2222_v17, 5  ;;  %v391_v7 = vrot.slane %v2231_v26, 5  ;;  %v1670_v40 = vrot.slane %v352_v61, 9  ;;  %v354_v59 = vld [vmem:[%s2076_s28 + $0x20] sm:$0xe] }
  0x58   : > { %817 = vrot.lane.b32.xlu0 %v1747_v55, %s2020_s9  ;;  %v2546_v14 = vsel %vm2056_vm2, %v1668_v33, %v379_v47  ;;  %v1671_v35 = vrot.slane %v353_v53, 9  ;;  %v534_v47 = vshll.u32 %v2470_v37, 16  ;;  %v2815_v3 = vshll.u32 %v2246_v43, 16  ;;  %v355_v33 = vld [vmem:[%s2076_s28 + $0x28] sm:$0xe] }
  0x59   : > { %v2550_v60 = vsel %vm2056_vm2, %v1669_v8, %v383_v48  ;;  %v2816_v55 = vshll.u32 %v2249_v45, 16  ;;  %v395_v48 = vrot.slane %v2331_v46, 5  ;;  %v388_v17 = vsel %vm2056_vm2, %v1670_v40, %v387_v34 }
  0x5a   : > { %v1748_v31 = vcombine.low %v2546_v14, %v2550_v60  ;;  %v466_v54 = vrot.slane %v2815_v3, 5  ;;  %v392_v26 = vsel %vm2056_vm2, %v1671_v35, %v391_v7  ;;  %v1672_v8 = vrot.slane %v354_v59, 9  ;;  %v356_v60 = vld [vmem:[%s2076_s28 + $0x30] sm:$0xe]  ;;  %v357_v35 = vld [vmem:[%s2076_s28 + $0x38] sm:$0xe] }
  0x5b   : > { %v480_v52 = vrot.slane %v2816_v55, 5  ;;  %v399_v37 = vrot.slane %v2336_v57, 5  ;;  %v1749_v14 = vcombine.low %v388_v17, %v392_v26  ;;  %v1673_v46 = vrot.slane %v355_v33, 9  ;;  %v2818_v7 = vld [vmem:[#allocation8_spill] sm:$0xff]  ;;  %v2822_v17 = vld [vmem:[#allocation7_spill] sm:$0xff] }
  0x5c   : > { %v467_v43 = vsel %vm2153_vm5, %v2219_v56, %v466_v54  ;;  %v2582_v53 = vsel %vm2056_vm2, %v1672_v8, %v395_v48  ;;  %v2817_v57 = vshll.u32 %v2347_v21, 16  ;;  %v2819_v40 = vshll.u32 %v2818_v7, 16  ;;  %v2820_v54 = vld [vmem:[#allocation9_spill] sm:$0xff]  ;;  %v2821_v48 = vld [vmem:[#allocation6_spill] sm:$0xff]  ;;  %v2823_v33 = vld [vmem:[#allocation12_spill] sm:$0xff] }
  0x5d   : > { %v481_v45 = vsel %vm2153_vm5, %v2227_v20, %v480_v52  ;;  %v2591_v20 = vsel %vm2056_vm2, %v1673_v46, %v399_v37  ;;  %v1674_v3 = vrot.slane %v356_v60, 9  ;;  %v403_v55 = vrot.slane %v2820_v54, 5  ;;  %v1725_v37 = vld [vmem:[%s2076_s28 + $0x18] sm:$0xe]  ;;  %v1728_v7 = vld [vmem:[%s2076_s28 + $0x30] sm:$0xe] }
  0x5e   : > { %v2578_v61 = vcombine.low %v467_v43, %v481_v45  ;;  %v494_v34 = vrot.slane %v2817_v57, 5  ;;  %v508_v56 = vrot.slane %v2819_v40, 5  ;;  %v1675_v52 = vrot.slane %v357_v35, 9  ;;  %v1724_v43 = vld [vmem:[%s2076_s28 + $0x10] sm:$0xe] }
  0x5f   : > { %v1750_v59 = vcombine.low %v2582_v53, %v2591_v20  ;;  %v407_v8 = vrot.slane %v2823_v33, 5  ;;  %v2609_v46 = vsel %vm2056_vm2, %v1674_v3, %v403_v55  ;;  %v522_v60 = vrot.slane %v520_v13, 5  ;;  %v2825_v55 = vld [vmem:[#allocation11_spill] sm:$0xff] }
  0x60   : > { %v495_v21 = vsel %vm2153_vm5, %v2821_v48, %v494_v34  ;;  %v509_v26 = vsel %vm2153_vm5, %v2822_v17, %v508_v56  ;;  %v536_v57 = vrot.slane %v534_v47, 5  ;;  %v1729_v34 = vld [vmem:[%s2076_s28 + $0x38] sm:$0xe]  ;;  %v1732_v56 = vrot.slane %v1724_v43, 9  ;;  %v2826_v17 = vld [vmem:[#allocation2_spill] sm:$0xff]  ;;  %v2828_v33 = vld [vmem:[#allocation3_spill] sm:$0xff] }
  0x61   : > { %v2605_v45 = vcombine.low %v495_v21, %v509_v26  ;;  %v2617_v40 = vsel %vm2056_vm2, %v1675_v52, %v407_v8  ;;  %v1733_v35 = vrot.slane %v1725_v37, 9  ;;  %v1736_v54 = vrot.slane %v1728_v7, 9  ;;  %v2824_v21 = vld [vmem:[#allocation10_spill] sm:$0xff]  ;;  %v2830_v37 = vld [vmem:[#allocation4_spill] sm:$0xff]  ;;  %v2832_v7 = vld [vmem:[#allocation5_spill] sm:$0xff] }
  0x62   : > { %v1751_v48 = vcombine.low %v2609_v46, %v2617_v40  ;;  %v523_v3 = vsel %vm2153_vm5, %v2824_v21, %v522_v60  ;;  %v537_v32 = vsel %vm2153_vm5, %v2825_v55, %v536_v57  ;;  %v1737_v13 = vrot.slane %v1729_v34, 9 }
  0x63   : > { %v2627_v47 = vcombine.low %v523_v3, %v537_v32  ;;  %v2827_v52 = vrot.slane %v2826_v17, 5  ;;  %v2829_v8 = vrot.slane %v2828_v33, 5  ;;  %v2831_v60 = vrot.slane %v2830_v37, 5 }
  0x64   : > { %v2833_v34 = vrot.slane %v2832_v7, 5 }
  0x65   : > { %v2633_v26 = vsel %vm2056_vm2, %v1732_v56, %v2827_v52  ;;  %v2639_v43 = vsel %vm2056_vm2, %v1733_v35, %v2829_v8  ;;  %v2645_v62 = vsel %vm2056_vm2, %v1736_v54, %v2831_v60 }
  0x66   : > { %v1772_v57 = vcombine.low %v2633_v26, %v2639_v43  ;;  %v2653_v56 = vsel %vm2056_vm2, %v1737_v13, %v2833_v34 }
  0x67   : > { %v1774_v21 = vcombine.low %v2645_v62, %v2653_v56 }
  0x8b   : > { %v852_v35 = vpop.permute.xlu0 %851 }
  0x8c   : > { %v962_v3 = vsel %vm943_vm6, %v1748_v31, %v852_v35  ;;  %v884_v55 = vpop.permute.xlu1 %883 }
  0x8d   : > { %1345 = vmatprep.mubr.bf16.mxu0 %v962_v3  ;;  %v978_v13 = vsel %vm943_vm6, %v2512_v29, %v884_v55 }
  0x97   : > { %v924_v54 = vpop.permute.xlu0 %923 }
  0x98   : > { %v994_v32 = vsel %vm943_vm6, %v1764_v2, %v924_v54  ;;  %v2011_v2 = vld [vmem:[%s2787_s1 + $0x118] sm:$0xff]  }
  0x99   : > { %1410 = vmatprep.mubr.bf16.mxu1 %v994_v32 }
  0x9a   : > { %1411 = vmatmul.mubr.bf16.vlgmr.msra.gmra.mrb[0].mxu1 %v978_v13 }
  0x9b   : > { %1950 = vmatpush3.bf16.msra.mxu1 %v2540_v15  ;;  %v854_v31 = vpop.permute.xlu0 %853  ;;  %v812_v17 = vpop.permute.xlu1 %811 }
  0x9c   : > { %v966_v52 = vsel %vm943_vm6, %v1749_v14, %v854_v31  ;;  %1947 = vmatprep.subr.bf16.mxu1 %v2005_v0  ;;  %v946_v22 = vsel %vm943_vm6, %v1740_v12, %v812_v17 }
  0x9d   : > { %1346 = vmatmul.mubr.bf16.vlgmr.msra.gmra.mrb[0].mxu0 %v946_v22 }
  0x9e   : > { %1931 = vmatpush3.bf16.msra.mxu0 %v2540_v15  ;;  %1353 = vmatprep.mubr.bf16.mxu0 %v966_v52 }
  0x9f   : > { %1932 = vmatprep.subr.bf16.mxu0 %v2005_v0  ;;  %1951 = vmatpush3.bf16.msra.mxu1 %v2005_v0 }
  0xa0   : > { %1948 = vmatprep.subr.bf16.mxu1 %v2008_v28 }
  0xa2   : > { %1933 = vmatpush3.bf16.msra.mxu0 %v2005_v0 }
  0xa3   : > { %1934 = vmatprep.subr.bf16.mxu0 %v2008_v28  ;;  %1952 = vmatpush3.bf16.msra.mxu1 %v2008_v28 }
  0xa4   : > { %1949 = vmatprep.subr.bf16.mxu1 %v2011_v2 }
  0xa5   : > { %v926_v44 = vpop.permute.xlu1 %925 }
  0xa6   : > { %v998_v50 = vsel %vm943_vm6, %v1765_v39, %v926_v44  ;;  %1935 = vmatpush3.bf16.msra.mxu0 %v2008_v28 }
  0xa7   : > { %1418 = vmatprep.mubr.bf16.mxu1 %v998_v50  ;;  %1936 = vmatprep.subr.bf16.mxu0 %v2011_v2 }
  0xa8   : > { %1953 = vmatpush3.bf16.msra.mxu1 %v2011_v2 }
  0xa9   : > { %v886_v12 = vpop.permute.xlu1 %885 }
  0xaa   : > { %v814_v29 = vpop.permute.xlu0 %813  ;;  %v982_v15 = vsel %vm943_vm6, %v2578_v61, %v886_v12  ;;  %1937 = vmatpush3.bf16.msra.mxu0 %v2011_v2 }
  0xab   : > { %v950_v14 = vsel %vm943_vm6, %v1741_v58, %v814_v29  ;;  %1419 = vmatmul.mubr.bf16.gmra.mrb[4].mxu1 %v982_v15 }
  0xac   : > { %1354 = vmatmul.mubr.bf16.gmra.mrb[4].mxu0 %v950_v14 }
  0xae   : > { %v856_v27 = vpop.permute.xlu0 %855 }
  0xaf   : > { %v970_v42 = vsel %vm943_vm6, %v1750_v59, %v856_v27 }
  0xb0   : > { %1361 = vmatprep.mubr.bf16.mxu0 %v970_v42 }
  0xb4   : > { %v928_v39 = vpop.permute.xlu1 %927 }
  0xb5   : > { %v1002_v61 = vsel %vm943_vm6, %v1766_v25, %v928_v39 }
  0xb6   : > { %1426 = vmatprep.mubr.bf16.mxu1 %v1002_v61 }
  0xb7   : > { %v816_v10 = vpop.permute.xlu0 %815 }
  0xb8   : > { %v888_v33 = vpop.permute.xlu1 %887  ;;  %v954_v58 = vsel %vm943_vm6, %v1742_v5, %v816_v10 }
  0xb9   : > { %v986_v41 = vsel %vm943_vm6, %v2605_v45, %v888_v33  ;;  %1362 = vmatmul.mubr.bf16.gmra.mrb[8].mxu0 %v954_v58  ;;  %v1776_v45 = vld [vmem:[%s2788_s2] ss:$0 sm:$0xff] }
  0xba   : > { %1427 = vmatmul.mubr.bf16.gmra.mrb[8].mxu1 %v986_v41 }
  0xbb   : > { %v858_v53 = vpop.permute.xlu0 %857 }
  0xbc   : > { %v974_v49 = vsel %vm943_vm6, %v1751_v48, %v858_v53 }
  0xbd   : > { %1369 = vmatprep.mubr.bf16.mxu0 %v974_v49 }
  0xc3   : > { %v930_v63 = vpop.permute.xlu1 %929 }
  0xc4   : > { %v1006_v25 = vsel %vm943_vm6, %v1767_v18, %v930_v63 }
  0xc5   : > { %1434 = vmatprep.mubr.bf16.mxu1 %v1006_v25 }
  0xc7   : > { %v890_v20 = vpop.permute.xlu1 %889 }
  0xc8   : > { %v990_v19 = vsel %vm943_vm6, %v2627_v47, %v890_v20  ;;  %v2749_v20 = vld [vmem:[%s212_s30 + $0x8] sm:$0xff]  }
  0xc9   : > { %1435 = vmatmul.mubr.bf16.gmra.mrb[12].mxu1 %v990_v19 }
  0xca   : > { %v818_v23 = vpop.permute.xlu0 %817  ;;  %1942 = vmatprep.mubr.msk.bf16.mxu1 %vm943_vm6, %v1774_v21 }
  0xcb   : > { %v958_v5 = vsel %vm943_vm6, %v1743_v51, %v818_v23 }
  0xcc   : > { %1370 = vmatmul.mubr.bf16.gmra.mrb[12].mxu0 %v958_v5  ;;  %v2751_v5 = vld [vmem:[%s212_s30] sm:$0xff]  }
  0xcd   : > { %1938 = vmatprep.mubr.msk.bf16.mxu0 %vm943_vm6, %v1772_v57 }
  0xd1   : > { %1943 = vmatmul.mubr.msk.bf16.vlgmr.msra.gmra.mrb[16].mxu1 %vm943_vm6, %v1775_v30 }
  0xd4   : > { %1939 = vmatmul.mubr.msk.bf16.vlgmr.msra.gmra.mrb[16].mxu0 %vm943_vm6, %v1773_v1 }
 0x16d   : > { %v1898_v6 = vpop.f32.mrb[0].mxu1 }
 0x16e   : > { %v1899_v16 = vpop.f32.mrb[1].mxu1 }
 0x16f   : > { %v1900_v4 = vadd.f32 %v1899_v16, %v1898_v6  ;;  %v1901_v36 = vpop.f32.mrb[2].mxu1  ;;  %v2753_v6 = vld [vmem:[%s212_s30 + $0x18] sm:$0xff]  }
 0x170   : > { %v1902_v18 = vpop.f32.mrb[3].mxu1  ;;  %v1858_v51 = vpop.f32.mrb[0].mxu0 }
 0x171   : > { %v1903_v59 = vadd.f32 %v1902_v18, %v1901_v36  ;;  %v1859_v46 = vpop.f32.mrb[1].mxu0  ;;  %v1829_v18 = vunpack.c.l.bf16 %v2749_v20 }
 0x172   : > { %v1860_v11 = vadd.f32 %v1859_v46, %v1858_v51  ;;  %v1861_v9 = vpop.f32.mrb[2].mxu0  ;;  %v1825_v46 = vunpack.c.l.bf16 %v2751_v5 }
 0x173   : > { %v1862_v30 = vpop.f32.mrb[3].mxu0 }
 0x174   : > { %v1348_v40 = vadd.f32 %v1860_v11, %v1776_v45  ;;  %v1863_v48 = vadd.f32 %v1862_v30, %v1861_v9  ;;  %v1837_v11 = vunpack.c.l.bf16 %v2753_v6  ;;  %v1830_v9 = vunpack.c.h.bf16 %v2749_v20 }
 0x176   : > { %v1351_v38 = vadd.f32 %v1863_v48, %v1776_v45  ;;  %v2737_v24 = vadd.f32 %v1900_v4, %v1348_v40  ;;  %v1840_v4 = vld [vmem:[%s212_s30 + $0x10] sm:$0xff]  }
 0x178   : > { %v2739_v1 = vadd.f32 %v1903_v59, %v1351_v38 }
 0x17e   : > { %v1904_v47 = vpop.f32.mrb[4].mxu1 }
 0x17f   : > { %v1864_v26 = vpop.f32.mrb[4].mxu0  ;;  %v1905_v8 = vpop.f32.mrb[5].mxu1 }
 0x180   : > { %v1865_v43 = vpop.f32.mrb[5].mxu0  ;;  %v1906_v37 = vadd.f32 %v1905_v8, %v1904_v47  ;;  %v1907_v60 = vpop.f32.mrb[6].mxu1  ;;  %v1833_v47 = vunpack.c.l.bf16 %v1840_v4 }
 0x181   : > { %v1866_v62 = vadd.f32 %v1865_v43, %v1864_v26  ;;  %v1867_v57 = vpop.f32.mrb[6].mxu0  ;;  %v1908_v7 = vpop.f32.mrb[7].mxu1  ;;  %v1826_v26 = vunpack.c.h.bf16 %v2751_v5 }
 0x182   : > { %v1868_v34 = vpop.f32.mrb[7].mxu0  ;;  %v1909_v56 = vadd.f32 %v1908_v7, %v1907_v60 }
 0x183   : > { %v1356_v21 = vadd.f32 %v1866_v62, %v1776_v45  ;;  %v1869_v35 = vadd.f32 %v1868_v34, %v1867_v57  ;;  %v1838_v57 = vunpack.c.h.bf16 %v2753_v6 }
 0x185   : > { %v1359_v3 = vadd.f32 %v1869_v35, %v1776_v45  ;;  %v1421_v55 = vadd.f32 %v1906_v37, %v1356_v21  ;;  %v1817_v37 = vld [vmem:[%s2788_s2 + $0x1] ss:$0 sm:$0xff] }
 0x187   : > { %v2741_v54 = vadd.f32 %v1909_v56, %v1359_v3  ;;  %v1834_v3 = vunpack.c.h.bf16 %v1840_v4 }
 0x18c   : > { %v1870_v0 = vpop.f32.mrb[8].mxu0 }
 0x18d   : > { %v1910_v32 = vpop.f32.mrb[8].mxu1  ;;  %v1871_v31 = vpop.f32.mrb[9].mxu0 }
 0x18e   : > { %v1911_v13 = vpop.f32.mrb[9].mxu1  ;;  %v1872_v22 = vadd.f32 %v1871_v31, %v1870_v0  ;;  %v1873_v28 = vpop.f32.mrb[10].mxu0 }
 0x18f   : > { %v1912_v17 = vadd.f32 %v1911_v13, %v1910_v32  ;;  %v1913_v52 = vpop.f32.mrb[10].mxu1  ;;  %v1874_v44 = vpop.f32.mrb[11].mxu0 }
 0x190   : > { %v1914_v2 = vpop.f32.mrb[11].mxu1  ;;  %v1364_v12 = vadd.f32 %v1872_v22, %v1776_v45  ;;  %v1875_v29 = vadd.f32 %v1874_v44, %v1873_v28 }
 0x191   : > { %v1915_v50 = vadd.f32 %v1914_v2, %v1913_v52 }
 0x192   : > { %v1367_v15 = vadd.f32 %v1875_v29, %v1776_v45  ;;  %v1429_v14 = vadd.f32 %v1912_v17, %v1364_v12 }
 0x194   : > { %v1432_v27 = vadd.f32 %v1915_v50, %v1367_v15 }
 0x19c   : > { %v1916_v42 = vpop.f32.mrb[12].mxu1 }
 0x19d   : > { %v1917_v39 = vpop.f32.mrb[13].mxu1 }
 0x19e   : > { %v1918_v61 = vadd.f32 %v1917_v39, %v1916_v42  ;;  %v1919_v33 = vpop.f32.mrb[14].mxu1 }
 0x19f   : > { %v1876_v10 = vpop.f32.mrb[12].mxu0  ;;  %v1920_v41 = vpop.f32.mrb[15].mxu1 }
 0x1a0   : > { %v1877_v58 = vpop.f32.mrb[13].mxu0  ;;  %v1921_v53 = vadd.f32 %v1920_v41, %v1919_v33 }
 0x1a1   : > { %v1878_v49 = vadd.f32 %v1877_v58, %v1876_v10  ;;  %v1879_v63 = vpop.f32.mrb[14].mxu0 }
 0x1a2   : > { %v1880_v25 = vpop.f32.mrb[15].mxu0 }
 0x1a3   : > { %v1372_v19 = vadd.f32 %v1878_v49, %v1776_v45  ;;  %v1881_v23 = vadd.f32 %v1880_v25, %v1879_v63 }
 0x1a4   : > { %v1944_v16 = vpop.f32.mrb[16].mxu1 }
 0x1a5   : > { %v1375_v36 = vadd.f32 %v1881_v23, %v1776_v45  ;;  %v1437_v51 = vadd.f32 %v1918_v61, %v1372_v19  ;;  %v1493_v59 = vpop.f32.mrb[17].mxu1 }
 0x1a6   : > { %v1494_v30 = vadd.f32 %v1493_v59, %v1429_v14  ;;  %v1945_v40 = vpop.f32.mrb[18].mxu1 }
 0x1a7   : > { %v1940_v48 = vpop.f32.mrb[16].mxu0  ;;  %v1502_v38 = vadd.f32 %v1944_v16, %v1437_v51  ;;  %v1440_v8 = vadd.f32 %v1921_v53, %v1375_v36  ;;  %v1496_v43 = vpop.f32.mrb[19].mxu1 }
 0x1a8   : > { %v1486_v45 = vadd.f32 %v1940_v48, %v1421_v55  ;;  %v1477_v60 = vpop.f32.mrb[17].mxu0  ;;  %v1512_v62 = vmax.f32 %v1494_v30, 0.0  ;;  %v1497_v7 = vadd.f32 %v1496_v43, %v1432_v27  ;;  %v1818_v55 = vld [vmem:[%s2788_s2 + $0x2] ss:$0 sm:$0xff] }
 0x1a9   : > { %v1478_v34 = vadd.f32 %v1477_v60, %v2737_v24  ;;  %v1514_v56 = vmax.f32 %v1502_v38, 0.0  ;;  %v1941_v21 = vpop.f32.mrb[18].mxu0  ;;  %v1505_v35 = vadd.f32 %v1945_v40, %v1440_v8 }
 0x1aa   : > { %v1510_v32 = vmax.f32 %v1486_v45, 0.0  ;;  %v1489_v0 = vadd.f32 %v1941_v21, %v2741_v54  ;;  %v1525_v13 = vmul.f32 %v1817_v37, %v1512_v62  ;;  %v1480_v31 = vpop.f32.mrb[19].mxu0  ;;  %v1513_v17 = vmax.f32 %v1497_v7, 0.0 }
 0x1ab   : > { %v1508_v52 = vmax.f32 %v1478_v34, 0.0  ;;  %v1527_v22 = vmul.f32 %v1817_v37, %v1514_v56  ;;  %v1481_v28 = vadd.f32 %v1480_v31, %v2739_v1  ;;  %v1515_v24 = vmax.f32 %v1505_v35, 0.0 }
 0x1ac   : > { %v1523_v2 = vmul.f32 %v1817_v37, %v1510_v32  ;;  %v1511_v44 = vmax.f32 %v1489_v0, 0.0  ;;  %v1538_v50 = vadd.f32 %v1818_v55, %v1525_v13  ;;  %v1526_v12 = vmul.f32 %v1817_v37, %v1513_v17 }
 0x1ad   : > { %v1521_v29 = vmul.f32 %v1817_v37, %v1508_v52  ;;  %v1540_v15 = vadd.f32 %v1818_v55, %v1527_v22  ;;  %v1509_v14 = vmax.f32 %v1481_v28, 0.0  ;;  %v1528_v27 = vmul.f32 %v1817_v37, %v1515_v24 }
 0x1ae   : > { %v1536_v42 = vadd.f32 %v1818_v55, %v1523_v2  ;;  %v1524_v39 = vmul.f32 %v1817_v37, %v1511_v44  ;;  %v1562_v54 = vadd.f32 %v1833_v47, %v1538_v50  ;;  %v1539_v61 = vadd.f32 %v1818_v55, %v1526_v12 }
 0x1af   : > { %v1534_v33 = vadd.f32 %v1818_v55, %v1521_v29  ;;  %v1564_v10 = vadd.f32 %v1837_v11, %v1540_v15  ;;  %v1522_v41 = vmul.f32 %v1817_v37, %v1509_v14  ;;  %v1541_v58 = vadd.f32 %v1818_v55, %v1528_v27 }
 0x1b0   : > { %v1560_v53 = vadd.f32 %v1829_v18, %v1536_v42  ;;  %v1537_v1 = vadd.f32 %v1818_v55, %v1524_v39  ;;  %v1570_v49 = vmax.f32 %v1562_v54, 0.0  ;;  %v1563_v63 = vadd.f32 %v1834_v3, %v1539_v61 }
 0x1b1   : > { %v1558_v25 = vadd.f32 %v1825_v46, %v1534_v33  ;;  %v1572_v20 = vmax.f32 %v1564_v10, 0.0  ;;  %v1535_v19 = vadd.f32 %v1818_v55, %v1522_v41  ;;  %v1565_v23 = vadd.f32 %v1838_v57, %v1541_v58 }
 0x1b2   : > { %v1568_v5 = vmax.f32 %v1560_v53, 0.0  ;;  %v1561_v6 = vadd.f32 %v1830_v9, %v1537_v1  ;;  %v1578_v16 = vpack.c.bf16 %v1570_v49, %v1570_v49  ;;  %v1571_v4 = vmax.f32 %v1563_v63, 0.0 }
 0x1b3   : > { %v1566_v36 = vmax.f32 %v1558_v25, 0.0  ;;  %v1580_v51 = vpack.c.bf16 %v1572_v20, %v1572_v20  ;;  %v1559_v59 = vadd.f32 %v1826_v26, %v1535_v19  ;;  %v1573_v18 = vmax.f32 %v1565_v23, 0.0 }
 0x1b4   : > { %v1576_v11 = vpack.c.bf16 %v1568_v5, %v1568_v5  ;;  %v1569_v30 = vmax.f32 %v1561_v6, 0.0  ;;  %1587 = vst.msk [vmem:[%s217_s12 + $0x10] sm:$0xf] %vm1582_vm7, %v1578_v16  ;;  %v1579_v46 = vpack.c.bf16 %v1571_v4, %v1571_v4 }
 0x1b5   : > { %v1574_v40 = vpack.c.bf16 %v1566_v36, %v1566_v36  ;;  %1589 = vst.msk [vmem:[%s217_s12 + $0x18] sm:$0xf] %vm1582_vm7, %v1580_v51  ;;  %v1567_v48 = vmax.f32 %v1559_v59, 0.0  ;;  %v1581_v38 = vpack.c.bf16 %v1573_v18, %v1573_v18 }
 0x1b6   : > { %1585 = vst.msk [vmem:[%s217_s12 + $0x8] sm:$0xf] %vm1582_vm7, %v1576_v11  ;;  %v1577_v47 = vpack.c.bf16 %v1569_v30, %v1569_v30  ;;  %1588 = vst.msk [vmem:[%s217_s12 + $0x14] sm:$0xf] %vm1582_vm7, %v1579_v46 }
 0x1b7   : > { %1583 = vst.msk [vmem:[%s217_s12] sm:$0xf] %vm1582_vm7, %v1574_v40  ;;  %v1575_v9 = vpack.c.bf16 %v1567_v48, %v1567_v48  ;;  %1590 = vst.msk [vmem:[%s217_s12 + $0x1c] sm:$0xf] %vm1582_vm7, %v1581_v38 }
 0x1b8   : > { %1586 = vst.msk [vmem:[%s217_s12 + $0xc] sm:$0xf] %vm1582_vm7, %v1577_v47 }
 0x1b9   : > { %1584 = vst.msk [vmem:[%s217_s12 + $0x4] sm:$0xf] %vm1582_vm7, %v1575_v9 }
 0x1ba PF: > { %s14_s15 = sadd.s32 1, %s2018_s15  }
 0x1bb   : > { %p11_p4 = scmp.ge.s32.totalorder %s14_s15, 4  }
 0x1bd   :  { %13 = sbr.rel (!%p11_p4) target bundleno = 1 (0x1), region = 71 }

// kernel: _lambda_.31
= control target key start
LH: loop header
LB: loop body
LE: loop exit
PB: predicated region body
PF: predicated region fallthrough
CT: control target
= control target key end

     0   :  { %s1928_s12 = smov 0   ;;  %s2646_s0 = inlined_call_operand.vmem [shape: bf16[2,10,10,64], index: 0, kind: input, shape index: {}]   ;;  %s2647_s1 = inlined_call_operand.vmem [shape: bf16[576,64], index: 1, kind: input, shape index: {}]   ;;  %s2648_s2 = inlined_call_operand.vmem [shape: f32[3,64], index: 2, kind: input, shape index: {}]   ;;  %s2649_s3 = inlined_call_operand.vmem [shape: bf16[2,8,8,64], index: 3, kind: output, shape index: {}]  }
   0x1 LB: > { %s1567_s13 = sadd.s32 4294967295, %s1905_s12   ;;  %p1571_p0 = scmp.ge.s32.totalorder %s1905_s12, 1  ;;  %s1905_s12 = sphi %s1928_s12, %s13_s12  }
   0x2   : > { %p137_p1 = scmp.lt.s32.totalorder %s1905_s12, 3 }
   0x4   : > { %p138_p2 = pnand %p1571_p0, %p137_p1 }
   0x6   : > { %141 = sbr.rel (%p138_p2) target bundleno = 438 (0x1b6), region = 32 }
   0xd   : > { %p161_p3 = scmp.lt.s32.totalorder %s1567_s13, 1  ;;  %vm327_vm0 = vcmask 1042432   ;;  %vm328_vm1 = vcmask 1046532   ;;  %v1855_v1 = vld [vmem:[%s2647_s1 + $0x40] sm:$0xff]   ;;  %v1859_v5 = vld [vmem:[%s2647_s1 + $0x48] sm:$0xff]   ;;  %s1907_s5 = smov 64  }
   0xe   : > { %vm1938_vm2 = vmor %vm327_vm0, %vm328_vm1  ;;  %v1856_v2 = vld [vmem:[%s2647_s1 + $0xc0] sm:$0xff]   ;;  %1729 = vmatprep.subr.bf16.mxu0 %v1855_v1  ;;  %vm188_vm3 = vsmask.f32 3328  ;;  %vm189_vm4 = vsmask.f32 7440  ;;  %v1860_v23 = vld [vmem:[%s2647_s1 + $0xc8] sm:$0xff]  }
   0xf   : > { %s2694_s13 = smov (!%p161_p3, %s1567_s13), 1  ;;  %v1857_v3 = vld [vmem:[%s2647_s1] sm:$0xff]   ;;  %1769 = vmatprep.subr.bf16.mxu1 %v1856_v2  ;;  %v1861_v35 = vld [vmem:[%s2647_s1 + $0x8] sm:$0xff]   ;;  %v1863_v55 = vld [vmem:[%s2647_s1 + $0x50] sm:$0xff]   ;;  %vm896_vm6 = vcmask 523264   ;;  %vm1503_vm7 = vcmask 519168  }
  0x10   : > { %s1841_s18 = smul.u32 80, %s2694_s13  ;;  %v1858_v4 = vld [vmem:[%s2647_s1 + $0x80] sm:$0xff]   ;;  %1730 = vmatpush3.bf16.msra.mxu0 %v1857_v3  ;;  %v1862_v45 = vld [vmem:[%s2647_s1 + $0x88] sm:$0xff]   ;;  %v1864_v61 = vld [vmem:[%s2647_s1 + $0xd0] sm:$0xff]   ;;  %s1728_s24 = sshll.u32 %s2694_s13, 5 }
  0x11   : > { %1770 = vmatpush3.bf16.msra.mxu1 %v1858_v4  ;;  %1731 = vmatprep.subr.bf16.mxu0 %v1859_v5  ;;  %vm2035_vm5 = vmor %vm188_vm3, %vm189_vm4  ;;  %v1865_v4 = vld [vmem:[%s2647_s1 + $0x10] sm:$0xff]   ;;  %v1892_v0 = vld [vmem:[%s2647_s1 + $0x108] sm:$0xff]   ;;  %s170_s28 = scalar_lea.vmem %s2649_s3, %s1728_s24 }
  0x12   : > { %s1958_s25 = scalar_lea.vmem %s2646_s0, %s1841_s18  ;;  %1771 = vmatprep.subr.bf16.mxu1 %v1860_v23 }
  0x13   : > { %v1591_v6 = vld [vmem:[%s1958_s25 + $0xc] sm:$0x1]  ;;  %v1592_v7 = vld [vmem:[%s1958_s25 + $0x14] sm:$0x1]  ;;  %v1599_v8 = vld [vmem:[%s1958_s25 + $0x8] sm:$0xe] }
  0x14   : > { %v403_v9 = vshll.u32 %v1592_v7, 16  ;;  %v1600_v10 = vld [vmem:[%s1958_s25 + $0x10] sm:$0xe]  ;;  %v1607_v11 = vrot.slane %v1599_v8, 9  ;;  %v517_v12 = vrot.slane %v1591_v6, 5  ;;  %v521_v13 = vrot.slane %v1592_v7, 5  ;;  %1732 = vmatpush3.bf16.msra.mxu0 %v1861_v35 }
  0x15   : > { %v1608_v14 = vrot.slane %v1600_v10, 9  ;;  %v389_v15 = vshll.u32 %v1591_v6, 16  ;;  %v1583_v16 = vld [vmem:[%s1958_s25 + $0x8] sm:$0xf]  ;;  %v1584_v17 = vld [vmem:[%s1958_s25 + $0x10] sm:$0xf]  ;;  %1772 = vmatpush3.bf16.msra.mxu1 %v1862_v45  ;;  %1733 = vmatprep.subr.bf16.mxu0 %v1863_v55 }
  0x16   : > { %v1969_v18 = vrot.slane %v403_v9, 5  ;;  %v518_v19 = vsel %vm1938_vm2, %v1607_v11, %v517_v12  ;;  %v394_v20 = vshrl.u32 %v1584_v17, 16  ;;  %v397_v21 = vshll.u32 %v1584_v17, 16  ;;  %v1974_v22 = vld [vmem:[%s1958_s25 + $0x10] sm:$0xf]  ;;  %1773 = vmatprep.subr.bf16.mxu1 %v1864_v61 }
  0x17   : > { %v522_v24 = vsel %vm1938_vm2, %v1608_v14, %v521_v13  ;;  %v1981_v25 = vrot.slane %v389_v15, 5  ;;  %v1659_v26 = vcombine.low %v1583_v16, %v1584_v17  ;;  %v380_v27 = vshrl.u32 %v1583_v16, 16  ;;  %v1984_v28 = vld [vmem:[%s1958_s25 + $0x18] sm:$0xf]  ;;  %v1987_v29 = vld [vmem:[%s1958_s25 + $0x14] sm:$0x1] }
  0x18   : > { %2659 = vst [vmem:[#allocation2_spill] sm:$0xff] %v1987_v29  ;;  %v1667_v30 = vcombine.low %v518_v19, %v522_v24  ;;  %v396_v31 = vrot.slane %v394_v20, 4  ;;  %v399_v32 = vrot.slane %v397_v21, 5  ;;  %v383_v33 = vshll.u32 %v1583_v16, 16  ;;  %v1990_v34 = vld [vmem:[%s1958_s25 + $0x1c] sm:$0x1]  ;;  %1734 = vmatpush3.bf16.msra.mxu0 %v1865_v4 }
  0x19   : > { %2660 = vst [vmem:[#allocation3_spill] sm:$0xff] %v1990_v34  ;;  %804 = vrot.lane.b32.xlu0 %v1659_v26, %s1907_s5  ;;  %v1996_v36 = vrot.slane %v380_v27, 4  ;;  %v565_v37 = vshrl.u32 %v1974_v22, 16  ;;  %v568_v38 = vshll.u32 %v1974_v22, 16  ;;  %v574_v39 = vshll.u32 %v1987_v29, 16  ;;  %v1866_v20 = vld [vmem:[%s2647_s1 + $0x90] sm:$0xff]  }
  0x1a   : > { %836 = vrot.lane.b32.xlu1 %v1667_v30, %s1907_s5  ;;  %v400_v40 = vor.u32 %v399_v32, %v396_v31  ;;  %v2002_v41 = vrot.slane %v383_v33, 5  ;;  %v579_v42 = vshrl.u32 %v1984_v28, 16  ;;  %v582_v43 = vshll.u32 %v1984_v28, 16  ;;  %v2007_v44 = vld [vmem:[%s1958_s25] sm:$0xf]  ;;  %1774 = vmatpush3.bf16.msra.mxu1 %v1866_v20 }
  0x1b   : > { %v567_v46 = vrot.slane %v565_v37, 4  ;;  %v570_v47 = vrot.slane %v568_v38, 5  ;;  %v576_v48 = vrot.slane %v574_v39, 5  ;;  %v588_v49 = vshll.u32 %v1990_v34, 16  ;;  %v2014_v50 = vld [vmem:[%s1958_s25 + $0x8] sm:$0xf] }
  0x1c   : > { %v2016_v51 = vrot.slane %v400_v40, 4  ;;  %v581_v52 = vrot.slane %v579_v42, 4  ;;  %v584_v53 = vrot.slane %v582_v43, 5  ;;  %v2019_v54 = vld [vmem:[%s1958_s25 + $0x4] sm:$0x1]  ;;  %v386_v56 = vor.u32 %v2002_v41, %v1996_v36  ;;  %v1867_v43 = vld [vmem:[%s2647_s1 + $0x58] sm:$0xff]  }
  0x1d   : > { %v571_v57 = vor.u32 %v570_v47, %v567_v46  ;;  %v590_v58 = vrot.slane %v588_v49, 5  ;;  %v2028_v60 = vld [vmem:[%s1958_s25 + $0xc] sm:$0x1]  ;;  %v192_v2 = vshrl.u32 %v2007_v44, 16  ;;  %v195_v3 = vshll.u32 %v2007_v44, 16  ;;  %1735 = vmatprep.subr.bf16.mxu0 %v1867_v43 }
  0x1e   : > { %v585_v63 = vor.u32 %v584_v53, %v581_v52  ;;  %v201_v6 = vshll.u32 %v2019_v54, 16  ;;  %v206_v7 = vshrl.u32 %v2014_v50, 16  ;;  %v209_v8 = vshll.u32 %v2014_v50, 16  ;;  %v1585_v13 = vld [vmem:[%s1958_s25 + $0x18] sm:$0xf] }
  0x1f   : > { %v572_v5 = vrot.slane %v571_v57, 4  ;;  %v194_v10 = vrot.slane %v192_v2, 4  ;;  %v197_v11 = vrot.slane %v195_v3, 5  ;;  %v215_v12 = vshll.u32 %v2028_v60, 16  ;;  %v1586_v19 = vld [vmem:[%s1958_s25 + $0x20] sm:$0xf] }
  0x20   : > { %v586_v9 = vrot.slane %v585_v63, 4  ;;  %v203_v15 = vrot.slane %v201_v6, 5  ;;  %v208_v16 = vrot.slane %v206_v7, 4  ;;  %v211_v17 = vrot.slane %v209_v8, 5  ;;  %v2059_v27 = vld [vmem:[%s1958_s25 + $0x20] sm:$0xf] }
  0x21   : > { %v577_v14 = vsel %vm2035_vm5, %v572_v5, %v576_v48  ;;  %v198_v23 = vor.u32 %v197_v11, %v194_v10  ;;  %v217_v24 = vrot.slane %v215_v12, 5  ;;  %v408_v26 = vshrl.u32 %v1585_v13, 16  ;;  %v1625_v35 = vld [vmem:[%s1958_s25 + $0x24] sm:$0x1]  ;;  %v2063_v42 = vld [vmem:[%s1958_s25 + $0x28] sm:$0xf] }
  0x22   : > { %v591_v21 = vsel %vm2035_vm5, %v586_v9, %v590_v58  ;;  %v212_v31 = vor.u32 %v211_v17, %v208_v16  ;;  %v411_v32 = vshll.u32 %v1585_v13, 16  ;;  %v422_v33 = vshrl.u32 %v1586_v19, 16  ;;  %v2073_v53 = vld [vmem:[%s1958_s25 + $0x2c] sm:$0x1]  ;;  %v1868_v58 = vld [vmem:[%s2647_s1 + $0xd8] sm:$0xff]  }
  0x23   : > { %v1675_v30 = vcombine.low %v577_v14, %v591_v21  ;;  %v199_v37 = vrot.slane %v198_v23, 4  ;;  %v410_v38 = vrot.slane %v408_v26, 4  ;;  %v425_v39 = vshll.u32 %v1586_v19, 16  ;;  %v1633_v4 = vld [vmem:[%s1958_s25 + $0x20] sm:$0xe]  ;;  %1775 = vmatprep.subr.bf16.mxu1 %v1868_v58 }
  0x24   : > { %v1660_v40 = vcombine.low %v1585_v13, %v1586_v19  ;;  %v213_v45 = vrot.slane %v212_v31, 4  ;;  %v413_v46 = vrot.slane %v411_v32, 5  ;;  %v424_v47 = vrot.slane %v422_v33, 4  ;;  %v2089_v9 = vld [vmem:[%s1958_s25 + $0x28] sm:$0xe]  ;;  %v1869_v19 = vld [vmem:[%s2647_s1 + $0x18] sm:$0xff]  }
  0x25   : > { %876 = vrot.lane.b32.xlu0 %v1675_v30, %s1907_s5  ;;  %v593_v48 = vshrl.u32 %v2059_v27, 16  ;;  %v204_v49 = vsel %vm2035_vm5, %v199_v37, %v203_v15  ;;  %v427_v52 = vrot.slane %v425_v39, 5  ;;  %v596_v55 = vshll.u32 %v2059_v27, 16  ;;  %v2092_v10 = vld [vmem:[%s1958_s25 + $0x10] sm:$0xf]  ;;  %1736 = vmatpush3.bf16.msra.mxu0 %v1869_v19 }
  0x26   : > { %v602_v57 = vshll.u32 %v1625_v35, 16  ;;  %v218_v61 = vsel %vm2035_vm5, %v213_v45, %v217_v24  ;;  %v414_v63 = vor.u32 %v413_v46, %v410_v38  ;;  %v607_v3 = vshrl.u32 %v2063_v42, 16  ;;  %v2098_v41 = vld [vmem:[%s1958_s25 + $0x18] sm:$0xf]  ;;  %v2104_v17 = vld [vmem:[%s1958_s25 + $0x14] sm:$0x1] }
  0x27   : > { %v595_v2 = vrot.slane %v593_v48, 4  ;;  %v2086_v5 = vrot.slane %v386_v56, 4  ;;  %v1651_v6 = vcombine.low %v204_v49, %v218_v61  ;;  %v428_v7 = vor.u32 %v427_v52, %v424_v47  ;;  %v2113_v26 = vld [vmem:[%s1958_s25 + $0x1c] sm:$0x1]  ;;  %v2131_v45 = vld [vmem:[%s1958_s25 + $0x24] sm:$0x1] }
  0x28   : > { %v598_v8 = vrot.slane %v596_v55, 5  ;;  %v604_v11 = vrot.slane %v602_v57, 5  ;;  %v609_v12 = vrot.slane %v607_v3, 4  ;;  %v610_v13 = vshll.u32 %v2063_v42, 16  ;;  %v2128_v43 = vld [vmem:[%s1958_s25 + $0x1c] sm:$0x1] }
  0x29   : > { %806 = vrot.lane.b32.xlu0 %v1660_v40, %s1907_s5  ;;  %v616_v36 = vshll.u32 %v2073_v53, 16  ;;  %764 = vrot.lane.b32.xlu1 %v1651_v6, %s1907_s5  ;;  %v2101_v56 = vrot.slane %v414_v63, 4  ;;  %v1641_v15 = vrot.slane %v1633_v4, 9  ;;  %v710_v16 = vrot.slane %v1625_v35, 5  ;;  %v1870_v35 = vld [vmem:[%s2647_s1 + $0x98] sm:$0xff]   ;;  %v1871_v55 = vld [vmem:[%s2647_s1 + $0x60] sm:$0xff]  }
  0x2a   : > { %v599_v14 = vor.u32 %v598_v8, %v595_v2  ;;  %v2109_v20 = vrot.slane %v428_v7, 4  ;;  %v612_v21 = vrot.slane %v610_v13, 5  ;;  %v220_v32 = vshrl.u32 %v2092_v10, 16  ;;  %v1601_v52 = vld [vmem:[%s1958_s25 + $0x18] sm:$0xe]  ;;  %1776 = vmatpush3.bf16.msra.mxu1 %v1870_v35  ;;  %1737 = vmatprep.subr.bf16.mxu0 %v1871_v55  ;;  %v1872_v8 = vld [vmem:[%s2647_s1 + $0xe0] sm:$0xff]  }
  0x2b   : > { %v618_v23 = vrot.slane %v616_v36, 5  ;;  %v223_v33 = vshll.u32 %v2092_v10, 16  ;;  %v2123_v38 = vsel %vm1938_vm2, %v1641_v15, %v710_v16  ;;  %v229_v39 = vshll.u32 %v2104_v17, 16  ;;  %v1602_v2 = vld [vmem:[%s1958_s25 + $0x20] sm:$0xe]  ;;  %1777 = vmatprep.subr.bf16.mxu1 %v1872_v8 }
  0x2c   : > { %v600_v30 = vrot.slane %v599_v14, 4  ;;  %v613_v37 = vor.u32 %v612_v21, %v609_v12  ;;  %v234_v40 = vshrl.u32 %v2098_v41, 16  ;;  %v222_v47 = vrot.slane %v220_v32, 4  ;;  %v1873_v14 = vld [vmem:[%s2647_s1 + $0x20] sm:$0xff]   ;;  %v2157_v32 = vld [vmem:[%s1958_s25 + $0x30] sm:$0xf] }
  0x2d   : > { %v225_v48 = vrot.slane %v223_v33, 5  ;;  %v237_v49 = vshll.u32 %v2098_v41, 16  ;;  %v231_v58 = vrot.slane %v229_v39, 5  ;;  %v243_v63 = vshll.u32 %v2113_v26, 16  ;;  %1738 = vmatpush3.bf16.msra.mxu0 %v1873_v14  ;;  %v1874_v39 = vld [vmem:[%s2647_s1 + $0xa0] sm:$0xff]  }
  0x2e   : > { %v605_v46 = vsel %vm2035_vm5, %v600_v30, %v604_v11  ;;  %v614_v57 = vrot.slane %v613_v37, 4  ;;  %v236_v61 = vrot.slane %v234_v40, 4  ;;  %v1609_v13 = vrot.slane %v1601_v52, 9  ;;  %v2154_v30 = vld [vmem:[%s1958_s25 + $0x28] sm:$0xf]  ;;  %1778 = vmatpush3.bf16.msra.mxu1 %v1874_v39 }
  0x2f   : > { %v226_v3 = vor.u32 %v225_v48, %v222_v47  ;;  %v239_v4 = vrot.slane %v237_v49, 5  ;;  %v245_v12 = vrot.slane %v243_v63, 5  ;;  %v525_v36 = vrot.slane %v2128_v43, 5  ;;  %v2173_v49 = vld [vmem:[%s1958_s25 + $0x30] sm:$0xf]  ;;  %v1875_v52 = vld [vmem:[%s2647_s1 + $0x68] sm:$0xff]  }
  0x30   : > { %v619_v11 = vsel %vm2035_vm5, %v614_v57, %v618_v23  ;;  %v1610_v21 = vrot.slane %v1602_v2, 9  ;;  %v529_v33 = vrot.slane %v2131_v45, 5  ;;  %v436_v35 = vshrl.u32 %v2154_v30, 16  ;;  %v2183_v63 = vld [vmem:[%s1958_s25 + $0x38] sm:$0xf]  ;;  %1739 = vmatprep.subr.bf16.mxu0 %v1875_v52 }
  0x31   : > { %v1676_v15 = vcombine.low %v605_v46, %v619_v11  ;;  %v227_v16 = vrot.slane %v226_v3, 4  ;;  %v240_v19 = vor.u32 %v239_v4, %v236_v61  ;;  %v526_v23 = vsel %vm1938_vm2, %v1609_v13, %v525_v36  ;;  %v2186_v2 = vld [vmem:[%s1958_s25 + $0x34] sm:$0x1]  ;;  %v2191_v13 = vld [vmem:[%s1958_s25 + $0x3c] sm:$0x1] }
  0x32   : > { %v439_v37 = vshll.u32 %v2154_v30, 16  ;;  %v450_v47 = vshrl.u32 %v2157_v32, 16  ;;  %v453_v48 = vshll.u32 %v2157_v32, 16  ;;  %v530_v55 = vsel %vm1938_vm2, %v1610_v21, %v529_v33  ;;  %2663 = vst [vmem:[#allocation4_spill] sm:$0xff] %v2186_v2  ;;  %2664 = vst [vmem:[#allocation5_spill] sm:$0xff] %v2191_v13  ;;  %v1876_v33 = vld [vmem:[%s2647_s1 + $0xe8] sm:$0xff]  }
  0x33   : > { %878 = vrot.lane.b32.xlu1 %v1676_v15, %s1907_s5  ;;  %v232_v40 = vsel %vm2035_vm5, %v227_v16, %v231_v58  ;;  %v241_v46 = vrot.slane %v240_v19, 4  ;;  %v438_v57 = vrot.slane %v436_v35, 4  ;;  %v1661_v58 = vcombine.low %v2154_v30, %v2157_v32  ;;  %v2196_v19 = vld [vmem:[%s1958_s25 + $0x20] sm:$0xf]  ;;  %1779 = vmatprep.subr.bf16.mxu1 %v1876_v33  ;;  %v1604_v7 = vld [vmem:[%s1958_s25 + $0x30] sm:$0xe] }
  0x34   : > { %v441_v61 = vrot.slane %v439_v37, 5  ;;  %v1668_v4 = vcombine.low %v526_v23, %v530_v55  ;;  %v452_v8 = vrot.slane %v450_v47, 4  ;;  %v455_v11 = vrot.slane %v453_v48, 5  ;;  %v2203_v23 = vld [vmem:[%s1958_s25 + $0x28] sm:$0xf] }
  0x35   : > { %v246_v3 = vsel %vm2035_vm5, %v241_v46, %v245_v12  ;;  %v621_v15 = vshrl.u32 %v2173_v49, 16  ;;  %v624_v16 = vshll.u32 %v2173_v49, 16  ;;  %v630_v12 = vshll.u32 %v2186_v2, 16  ;;  %v2213_v46 = vld [vmem:[%s1958_s25 + $0x24] sm:$0x1] }
  0x36   : > { %v1652_v36 = vcombine.low %v232_v40, %v246_v3  ;;  %v442_v14 = vor.u32 %v441_v61, %v438_v57  ;;  %v456_v21 = vor.u32 %v455_v11, %v452_v8  ;;  %v635_v30 = vshrl.u32 %v2183_v63, 16  ;;  %v2218_v57 = vld [vmem:[%s1958_s25 + $0x2c] sm:$0x1]  ;;  %v2260_v6 = vld [vmem:[%s1958_s25 + $0x40] sm:$0xf] }
  0x37   : > { %838 = vrot.lane.b32.xlu1 %v1668_v4, %s1907_s5  ;;  %v638_v32 = vshll.u32 %v2183_v63, 16  ;;  %v623_v37 = vrot.slane %v621_v15, 4  ;;  %v626_v39 = vrot.slane %v624_v16, 5  ;;  %v644_v40 = vshll.u32 %v2191_v13, 16  ;;  %v1877_v11 = vld [vmem:[%s2647_s1 + $0x28] sm:$0xff]  }
  0x38   : > { %766 = vrot.lane.b32.xlu0 %v1652_v36, %s1907_s5  ;;  %v2209_v35 = vrot.slane %v442_v14, 4  ;;  %v2215_v47 = vrot.slane %v456_v21, 4  ;;  %v632_v48 = vrot.slane %v630_v12, 5  ;;  %v637_v52 = vrot.slane %v635_v30, 4  ;;  %v2229_v21 = vld [vmem:[%s1958_s25 + $0x2c] sm:$0x1]  ;;  %1740 = vmatpush3.bf16.msra.mxu0 %v1877_v11 }
  0x39   : > { %v640_v55 = vrot.slane %v638_v32, 5  ;;  %v627_v61 = vor.u32 %v626_v39, %v623_v37  ;;  %v646_v3 = vrot.slane %v644_v40, 5  ;;  %v248_v14 = vshrl.u32 %v2196_v19, 16  ;;  %v1878_v12 = vld [vmem:[%s2647_s1 + $0xa8] sm:$0xff]   ;;  %v2239_v39 = vld [vmem:[%s1958_s25 + $0x34] sm:$0x1] }
  0x3a   : > { %2665 = vst [vmem:[#allocation6_spill] sm:$0xff] %v2209_v35  ;;  %2666 = vst [vmem:[#allocation7_spill] sm:$0xff] %v2215_v47  ;;  %v251_v15 = vshll.u32 %v2196_v19, 16  ;;  %v257_v16 = vshll.u32 %v2213_v46, 16  ;;  %v262_v32 = vshrl.u32 %v2203_v23, 16  ;;  %v265_v33 = vshll.u32 %v2203_v23, 16  ;;  %1780 = vmatpush3.bf16.msra.mxu1 %v1878_v12 }
  0x3b   : > { %v641_v36 = vor.u32 %v640_v55, %v637_v52  ;;  %v628_v30 = vrot.slane %v627_v61, 4  ;;  %v271_v37 = vshll.u32 %v2218_v57, 16  ;;  %2667 = vst [vmem:[#allocation8_spill] sm:$0xff] %v2239_v39  ;;  %v250_v52 = vrot.slane %v248_v14, 4  ;;  %v1603_v4 = vld [vmem:[%s1958_s25 + $0x28] sm:$0xe] }
  0x3c   : > { %808 = vrot.lane.b32.xlu0 %v1661_v58, %s1907_s5  ;;  %v253_v55 = vrot.slane %v251_v15, 5  ;;  %v259_v8 = vrot.slane %v257_v16, 5  ;;  %v264_v61 = vrot.slane %v262_v32, 4  ;;  %v267_v1 = vrot.slane %v265_v33, 5  ;;  %v1879_v11 = vld [vmem:[%s2647_s1 + $0x70] sm:$0xff]  }
  0x3d   : > { %v642_v40 = vrot.slane %v641_v36, 4  ;;  %v633_v58 = vsel %vm2035_vm5, %v628_v30, %v632_v48  ;;  %v273_v59 = vrot.slane %v271_v37, 5  ;;  %v2253_v48 = vld [vmem:[%s1958_s25 + $0x38] sm:$0xf]  ;;  %v2256_v12 = vld [vmem:[%s1958_s25 + $0x40] sm:$0xf]  ;;  %1741 = vmatprep.subr.bf16.mxu0 %v1879_v11 }
  0x3e   : > { %v254_v14 = vor.u32 %v253_v55, %v250_v52  ;;  %v268_v32 = vor.u32 %v267_v1, %v264_v61  ;;  %v1611_v33 = vrot.slane %v1603_v4, 9  ;;  %v533_v37 = vrot.slane %v2229_v21, 5  ;;  %v2265_v16 = vld [vmem:[%s1958_s25 + $0x48] sm:$0xf]  ;;  %v2268_v15 = vld [vmem:[%s1958_s25 + $0x44] sm:$0x1] }
  0x3f   : > { %v647_v36 = vsel %vm2035_vm5, %v642_v40, %v646_v3  ;;  %v1612_v40 = vrot.slane %v1604_v7, 9  ;;  %v537_v52 = vrot.slane %v2239_v39, 5  ;;  %v464_v55 = vshrl.u32 %v2253_v48, 16  ;;  %v2276_v7 = vld [vmem:[%s1958_s25 + $0x4c] sm:$0x1]  ;;  %v1880_v11 = vld [vmem:[%s2647_s1 + $0xf0] sm:$0xff]  }
  0x40   : > { %v1677_v30 = vcombine.low %v633_v58, %v647_v36  ;;  %v255_v3 = vrot.slane %v254_v14, 4  ;;  %v269_v1 = vrot.slane %v268_v32, 4  ;;  %v534_v4 = vsel %vm1938_vm2, %v1611_v33, %v533_v37  ;;  %v1637_v13 = vld [vmem:[%s1958_s25 + $0x40] sm:$0xe]  ;;  %1781 = vmatprep.subr.bf16.mxu1 %v1880_v11  ;;  %v2320_v29 = vld [vmem:[%s1958_s25 + $0x3c] sm:$0x1] }
  0x41   : > { %v467_v58 = vshll.u32 %v2253_v48, 16  ;;  %v478_v61 = vshrl.u32 %v2256_v12, 16  ;;  %v538_v14 = vsel %vm1938_vm2, %v1612_v40, %v537_v52  ;;  %v481_v32 = vshll.u32 %v2256_v12, 16  ;;  %v1638_v40 = vld [vmem:[%s1958_s25 + $0x48] sm:$0xe]  ;;  %2671 = vst [vmem:[#allocation12_spill] sm:$0xff] %v2320_v29 }
  0x42   : > { %880 = vrot.lane.b32.xlu1 %v1677_v30, %s1907_s5  ;;  %v260_v36 = vsel %vm2035_vm5, %v255_v3, %v259_v8  ;;  %v466_v30 = vrot.slane %v464_v55, 4  ;;  %v274_v33 = vsel %vm2035_vm5, %v269_v1, %v273_v59  ;;  %v1669_v37 = vcombine.low %v534_v4, %v538_v14  ;;  %v2298_v4 = vld [vmem:[%s1958_s25 + $0x30] sm:$0xf] }
  0x43   : > { %v469_v24 = vrot.slane %v467_v58, 5  ;;  %v480_v31 = vrot.slane %v478_v61, 4  ;;  %v1653_v2 = vcombine.low %v260_v36, %v274_v33  ;;  %v483_v34 = vrot.slane %v481_v32, 5  ;;  %v2301_v58 = vld [vmem:[%s1958_s25 + $0x34] sm:$0x1] }
  0x44   : > { %v1662_v8 = vcombine.low %v2253_v48, %v2256_v12  ;;  %v649_v3 = vshrl.u32 %v2260_v6, 16  ;;  %v652_v59 = vshll.u32 %v2260_v6, 16  ;;  %v658_v55 = vshll.u32 %v2268_v15, 16  ;;  %2668 = vst [vmem:[#allocation9_spill] sm:$0xff] %v2301_v58  ;;  %v1881_v48 = vld [vmem:[%s2647_s1 + $0x30] sm:$0xff]  }
  0x45   : > { %v470_v52 = vor.u32 %v469_v24, %v466_v30  ;;  %v663_v1 = vshrl.u32 %v2265_v16, 16  ;;  %768 = vrot.lane.b32.xlu0 %v1653_v2, %s1907_s5  ;;  %v484_v12 = vor.u32 %v483_v34, %v480_v31  ;;  %v666_v24 = vshll.u32 %v2265_v16, 16  ;;  %v2310_v36 = vld [vmem:[%s1958_s25 + $0x38] sm:$0xf]  ;;  %v1882_v14 = vld [vmem:[%s2647_s1 + $0xb0] sm:$0xff]   ;;  %1742 = vmatpush3.bf16.msra.mxu0 %v1881_v48 }
  0x46   : > { %840 = vrot.lane.b32.xlu1 %v1669_v37, %s1907_s5  ;;  %v651_v61 = vrot.slane %v649_v3, 4  ;;  %v672_v11 = vshll.u32 %v2276_v7, 16  ;;  %v654_v32 = vrot.slane %v652_v59, 5  ;;  %v660_v33 = vrot.slane %v658_v55, 5  ;;  %1782 = vmatpush3.bf16.msra.mxu1 %v1882_v14  ;;  %v1883_v55 = vld [vmem:[%s2647_s1 + $0x78] sm:$0xff]  }
  0x47   : > { %v2315_v30 = vrot.slane %v470_v52, 4  ;;  %v665_v37 = vrot.slane %v663_v1, 4  ;;  %v2317_v2 = vrot.slane %v484_v12, 4  ;;  %v668_v34 = vrot.slane %v666_v24, 5  ;;  %1743 = vmatprep.subr.bf16.mxu0 %v1883_v55  ;;  %v1885_v55 = vld [vmem:[%s2647_s1 + $0x38] sm:$0xff]  }
  0x48   : > { %v674_v31 = vrot.slane %v672_v11, 5  ;;  %v1645_v3 = vrot.slane %v1637_v13, 9  ;;  %v655_v47 = vor.u32 %v654_v32, %v651_v61  ;;  %v726_v35 = vrot.slane %v2268_v15, 5  ;;  %v1605_v61 = vld [vmem:[%s1958_s25 + $0x38] sm:$0xe] }
  0x49   : > { %2669 = vst [vmem:[#allocation10_spill] sm:$0xff] %v2315_v30  ;;  %2670 = vst [vmem:[#allocation11_spill] sm:$0xff] %v2317_v2  ;;  %v1646_v52 = vrot.slane %v1638_v40, 9  ;;  %v730_v59 = vrot.slane %v2276_v7, 5  ;;  %810 = vrot.lane.b32.xlu0 %v1662_v8, %s1907_s5  ;;  %v669_v1 = vor.u32 %v668_v34, %v665_v37  ;;  %v276_v13 = vshrl.u32 %v2298_v4, 16  ;;  %v1884_v15 = vld [vmem:[%s2647_s1 + $0xf8] sm:$0xff]   ;;  %1744 = vmatpush3.bf16.msra.mxu0 %v1885_v55 }
  0x4a   : > { %v279_v48 = vshll.u32 %v2298_v4, 16  ;;  %v285_v12 = vshll.u32 %v2301_v58, 16  ;;  %v2672_v7 = vrot.slane %v2073_v53, 5  ;;  %v2673_v40 = vrot.slane %v2089_v9, 9  ;;  %v2349_v32 = vld [vmem:[%s1958_s25 + $0x3c] sm:$0x1]  ;;  %1783 = vmatprep.subr.bf16.mxu1 %v1884_v15 }
  0x4b   : > { %v656_v8 = vrot.slane %v655_v47, 4  ;;  %v2345_v11 = vsel %vm1938_vm2, %v1645_v3, %v726_v35  ;;  %v290_v14 = vshrl.u32 %v2310_v36, 16  ;;  %v2352_v37 = vld [vmem:[%s1958_s25 + $0x44] sm:$0x1]  ;;  %v1606_v34 = vld [vmem:[%s1958_s25 + $0x40] sm:$0xe]  ;;  %v2357_v9 = vsel %vm1938_vm2, %v1646_v52, %v730_v59 }
  0x4c   : > { %v2341_v24 = vsel %vm1938_vm2, %v2673_v40, %v2672_v7  ;;  %v670_v53 = vrot.slane %v669_v1, 4  ;;  %v278_v7 = vrot.slane %v276_v13, 4  ;;  %v281_v40 = vrot.slane %v279_v48, 5 }
  0x4d   : > { %v661_v35 = vsel %vm2035_vm5, %v656_v8, %v660_v33  ;;  %v292_v47 = vrot.slane %v290_v14, 4  ;;  %v293_v3 = vshll.u32 %v2310_v36, 16  ;;  %v299_v2 = vshll.u32 %v2320_v29, 16  ;;  %v1886_v8 = vld [vmem:[%s2647_s1 + $0xb8] sm:$0xff]  }
  0x4e   : > { %v675_v1 = vsel %vm2035_vm5, %v670_v53, %v674_v31  ;;  %v282_v52 = vor.u32 %v281_v40, %v278_v7  ;;  %v287_v59 = vrot.slane %v285_v12, 5  ;;  %v473_v13 = vshll.u32 %v2349_v32, 16  ;;  %1784 = vmatpush3.bf16.msra.mxu1 %v1886_v8 }
  0x4f   : > { %v1678_v48 = vcombine.low %v661_v35, %v675_v1  ;;  %v295_v15 = vrot.slane %v293_v3, 5  ;;  %v301_v30 = vrot.slane %v299_v2, 5  ;;  %v1613_v33 = vrot.slane %v1605_v61, 9 }
  0x50   : > { %v283_v14 = vrot.slane %v282_v52, 4  ;;  %v541_v29 = vrot.slane %v2349_v32, 5  ;;  %v1614_v58 = vrot.slane %v1606_v34, 9  ;;  %v545_v39 = vrot.slane %v2352_v37, 5  ;;  %v303_v52 = vld [vmem:[%s1958_s25] sm:$0xe] }
  0x51   : > { %882 = vrot.lane.b32.xlu1 %v1678_v48, %s1907_s5  ;;  %v296_v31 = vor.u32 %v295_v15, %v292_v47  ;;  %v1647_v12 = vcombine.low %v2007_v44, %v2014_v50  ;;  %v1671_v2 = vcombine.low %v1974_v22, %v1984_v28  ;;  %v392_v7 = vsel %vm2035_vm5, %v2086_v5, %v1981_v25  ;;  %v2422_v15 = vld [vmem:[%s2647_s1 + $0x100] sm:$0xff]   ;;  %v1895_v28 = vld [vmem:[%s2647_s1 + $0x110] sm:$0xff]  }
  0x52   : > { %v288_v61 = vsel %vm2035_vm5, %v283_v14, %v287_v59  ;;  %v542_v53 = vsel %vm1938_vm2, %v1613_v33, %v541_v29  ;;  %v546_v34 = vsel %vm1938_vm2, %v1614_v58, %v545_v39  ;;  %v332_v47 = vrot.slane %v2019_v54, 5  ;;  %v304_v59 = vld [vmem:[%s1958_s25 + $0x8] sm:$0xe]  ;;  %1817 = vmatprep.subr.bf16.mxu0 %v2422_v15  ;;  %1833 = vmatprep.subr.bf16.mxu1 %v2422_v15 }
  0x53   : > { %v297_v40 = vrot.slane %v296_v31, 4  ;;  %v1670_v35 = vcombine.low %v542_v53, %v546_v34  ;;  %v406_v3 = vsel %vm2035_vm5, %v2016_v51, %v1969_v18  ;;  %v1672_v39 = vcombine.low %v2059_v27, %v2063_v42  ;;  %v306_v53 = vld [vmem:[%s1958_s25 + $0x18] sm:$0xe] }
  0x54   : > { %v2394_v29 = vcombine.low %v392_v7, %v406_v3  ;;  %v1648_v58 = vcombine.low %v2092_v10, %v2098_v41  ;;  %v1673_v25 = vcombine.low %v2173_v49, %v2183_v63  ;;  %v1649_v5 = vcombine.low %v2196_v19, %v2203_v23 }
  0x55   : > { %v302_v54 = vsel %vm2035_vm5, %v297_v40, %v301_v30  ;;  %842 = vrot.lane.b32.xlu1 %v1670_v35, %s1907_s5  ;;  %v1674_v18 = vcombine.low %v2260_v6, %v2265_v16  ;;  %v1650_v51 = vcombine.low %v2298_v4, %v2310_v36  ;;  %v1680_v1 = vcombine.low %v2123_v38, %v2341_v24 }
  0x56   : > { %v1654_v55 = vcombine.low %v288_v61, %v302_v54  ;;  %v1682_v30 = vcombine.low %v2345_v11, %v2357_v9  ;;  %v336_v48 = vrot.slane %v2028_v60, 5  ;;  %v1575_v33 = vrot.slane %v303_v52, 9  ;;  %v305_v61 = vld [vmem:[%s1958_s25 + $0x10] sm:$0xe] }
  0x57   : > { %v1576_v8 = vrot.slane %v304_v59, 9  ;;  %v340_v34 = vrot.slane %v2104_v17, 5  ;;  %v344_v7 = vrot.slane %v2113_v26, 5  ;;  %v1577_v40 = vrot.slane %v305_v61, 9  ;;  %v307_v59 = vld [vmem:[%s1958_s25 + $0x20] sm:$0xe] }
  0x58   : > { %770 = vrot.lane.b32.xlu0 %v1654_v55, %s1907_s5  ;;  %v2428_v14 = vsel %vm1938_vm2, %v1575_v33, %v332_v47  ;;  %v1578_v35 = vrot.slane %v306_v53, 9  ;;  %v487_v47 = vshll.u32 %v2352_v37, 16  ;;  %v2674_v3 = vshll.u32 %v2128_v43, 16  ;;  %v308_v33 = vld [vmem:[%s1958_s25 + $0x28] sm:$0xe] }
  0x59   : > { %v2432_v60 = vsel %vm1938_vm2, %v1576_v8, %v336_v48  ;;  %v2675_v55 = vshll.u32 %v2131_v45, 16  ;;  %v348_v48 = vrot.slane %v2213_v46, 5  ;;  %v341_v17 = vsel %vm1938_vm2, %v1577_v40, %v340_v34 }
  0x5a   : > { %v1655_v31 = vcombine.low %v2428_v14, %v2432_v60  ;;  %v419_v54 = vrot.slane %v2674_v3, 5  ;;  %v345_v26 = vsel %vm1938_vm2, %v1578_v35, %v344_v7  ;;  %v1579_v8 = vrot.slane %v307_v59, 9  ;;  %v309_v60 = vld [vmem:[%s1958_s25 + $0x30] sm:$0xe]  ;;  %v310_v35 = vld [vmem:[%s1958_s25 + $0x38] sm:$0xe] }
  0x5b   : > { %v433_v52 = vrot.slane %v2675_v55, 5  ;;  %v352_v37 = vrot.slane %v2218_v57, 5  ;;  %v1656_v14 = vcombine.low %v341_v17, %v345_v26  ;;  %v1580_v46 = vrot.slane %v308_v33, 9  ;;  %v2677_v7 = vld [vmem:[#allocation8_spill] sm:$0xff]  ;;  %v2681_v17 = vld [vmem:[#allocation7_spill] sm:$0xff] }
  0x5c   : > { %v420_v43 = vsel %vm2035_vm5, %v2101_v56, %v419_v54  ;;  %v2464_v53 = vsel %vm1938_vm2, %v1579_v8, %v348_v48  ;;  %v2676_v57 = vshll.u32 %v2229_v21, 16  ;;  %v2678_v40 = vshll.u32 %v2677_v7, 16  ;;  %v2679_v54 = vld [vmem:[#allocation9_spill] sm:$0xff]  ;;  %v2680_v48 = vld [vmem:[#allocation6_spill] sm:$0xff]  ;;  %v2682_v33 = vld [vmem:[#allocation12_spill] sm:$0xff] }
  0x5d   : > { %v434_v45 = vsel %vm2035_vm5, %v2109_v20, %v433_v52  ;;  %v2473_v20 = vsel %vm1938_vm2, %v1580_v46, %v352_v37  ;;  %v1581_v3 = vrot.slane %v309_v60, 9  ;;  %v356_v55 = vrot.slane %v2679_v54, 5  ;;  %v1632_v37 = vld [vmem:[%s1958_s25 + $0x18] sm:$0xe]  ;;  %v1635_v7 = vld [vmem:[%s1958_s25 + $0x30] sm:$0xe] }
  0x5e   : > { %v2460_v61 = vcombine.low %v420_v43, %v434_v45  ;;  %v447_v34 = vrot.slane %v2676_v57, 5  ;;  %v461_v56 = vrot.slane %v2678_v40, 5  ;;  %v1582_v52 = vrot.slane %v310_v35, 9  ;;  %v1631_v43 = vld [vmem:[%s1958_s25 + $0x10] sm:$0xe] }
  0x5f   : > { %v1657_v59 = vcombine.low %v2464_v53, %v2473_v20  ;;  %v360_v8 = vrot.slane %v2682_v33, 5  ;;  %v2491_v46 = vsel %vm1938_vm2, %v1581_v3, %v356_v55  ;;  %v475_v60 = vrot.slane %v473_v13, 5  ;;  %v2684_v55 = vld [vmem:[#allocation11_spill] sm:$0xff] }
  0x60   : > { %v448_v21 = vsel %vm2035_vm5, %v2680_v48, %v447_v34  ;;  %v462_v26 = vsel %vm2035_vm5, %v2681_v17, %v461_v56  ;;  %v489_v57 = vrot.slane %v487_v47, 5  ;;  %v1636_v34 = vld [vmem:[%s1958_s25 + $0x38] sm:$0xe]  ;;  %v1639_v56 = vrot.slane %v1631_v43, 9  ;;  %v2685_v17 = vld [vmem:[#allocation2_spill] sm:$0xff]  ;;  %v2687_v33 = vld [vmem:[#allocation3_spill] sm:$0xff] }
  0x61   : > { %v2487_v45 = vcombine.low %v448_v21, %v462_v26  ;;  %v2499_v40 = vsel %vm1938_vm2, %v1582_v52, %v360_v8  ;;  %v1640_v35 = vrot.slane %v1632_v37, 9  ;;  %v1643_v54 = vrot.slane %v1635_v7, 9  ;;  %v2683_v21 = vld [vmem:[#allocation10_spill] sm:$0xff]  ;;  %v2689_v37 = vld [vmem:[#allocation4_spill] sm:$0xff]  ;;  %v2691_v7 = vld [vmem:[#allocation5_spill] sm:$0xff] }
  0x62   : > { %v1658_v48 = vcombine.low %v2491_v46, %v2499_v40  ;;  %v476_v3 = vsel %vm2035_vm5, %v2683_v21, %v475_v60  ;;  %v490_v32 = vsel %vm2035_vm5, %v2684_v55, %v489_v57  ;;  %v1644_v13 = vrot.slane %v1636_v34, 9 }
  0x63   : > { %v2509_v47 = vcombine.low %v476_v3, %v490_v32  ;;  %v2686_v52 = vrot.slane %v2685_v17, 5  ;;  %v2688_v8 = vrot.slane %v2687_v33, 5  ;;  %v2690_v60 = vrot.slane %v2689_v37, 5 }
  0x64   : > { %v2692_v34 = vrot.slane %v2691_v7, 5 }
  0x65   : > { %v2515_v26 = vsel %vm1938_vm2, %v1639_v56, %v2686_v52  ;;  %v2521_v43 = vsel %vm1938_vm2, %v1640_v35, %v2688_v8  ;;  %v2527_v62 = vsel %vm1938_vm2, %v1643_v54, %v2690_v60 }
  0x66   : > { %v1679_v57 = vcombine.low %v2515_v26, %v2521_v43  ;;  %v2535_v56 = vsel %vm1938_vm2, %v1644_v13, %v2692_v34 }
  0x67   : > { %v1681_v21 = vcombine.low %v2527_v62, %v2535_v56 }
  0x8b   : > { %v805_v35 = vpop.permute.xlu0 %804 }
  0x8c   : > { %v915_v3 = vsel %vm896_vm6, %v1655_v31, %v805_v35  ;;  %v837_v55 = vpop.permute.xlu1 %836 }
  0x8d   : > { %1298 = vmatprep.mubr.bf16.mxu0 %v915_v3  ;;  %v931_v13 = vsel %vm896_vm6, %v2394_v29, %v837_v55 }
  0x97   : > { %v877_v54 = vpop.permute.xlu0 %876 }
  0x98   : > { %v947_v32 = vsel %vm896_vm6, %v1671_v2, %v877_v54  ;;  %v1898_v2 = vld [vmem:[%s2647_s1 + $0x118] sm:$0xff]  }
  0x99   : > { %1363 = vmatprep.mubr.bf16.mxu1 %v947_v32 }
  0x9a   : > { %1364 = vmatmul.mubr.bf16.vlgmr.msra.gmra.mrb[0].mxu1 %v931_v13 }
  0x9b   : > { %1837 = vmatpush3.bf16.msra.mxu1 %v2422_v15  ;;  %v807_v31 = vpop.permute.xlu0 %806  ;;  %v765_v17 = vpop.permute.xlu1 %764 }
  0x9c   : > { %v919_v52 = vsel %vm896_vm6, %v1656_v14, %v807_v31  ;;  %1834 = vmatprep.subr.bf16.mxu1 %v1892_v0  ;;  %v899_v22 = vsel %vm896_vm6, %v1647_v12, %v765_v17 }
  0x9d   : > { %1299 = vmatmul.mubr.bf16.vlgmr.msra.gmra.mrb[0].mxu0 %v899_v22 }
  0x9e   : > { %1818 = vmatpush3.bf16.msra.mxu0 %v2422_v15  ;;  %1306 = vmatprep.mubr.bf16.mxu0 %v919_v52 }
  0x9f   : > { %1819 = vmatprep.subr.bf16.mxu0 %v1892_v0  ;;  %1838 = vmatpush3.bf16.msra.mxu1 %v1892_v0 }
  0xa0   : > { %1835 = vmatprep.subr.bf16.mxu1 %v1895_v28 }
  0xa2   : > { %1820 = vmatpush3.bf16.msra.mxu0 %v1892_v0 }
  0xa3   : > { %1821 = vmatprep.subr.bf16.mxu0 %v1895_v28  ;;  %1839 = vmatpush3.bf16.msra.mxu1 %v1895_v28 }
  0xa4   : > { %1836 = vmatprep.subr.bf16.mxu1 %v1898_v2 }
  0xa5   : > { %v879_v44 = vpop.permute.xlu1 %878 }
  0xa6   : > { %v951_v50 = vsel %vm896_vm6, %v1672_v39, %v879_v44  ;;  %1822 = vmatpush3.bf16.msra.mxu0 %v1895_v28 }
  0xa7   : > { %1371 = vmatprep.mubr.bf16.mxu1 %v951_v50  ;;  %1823 = vmatprep.subr.bf16.mxu0 %v1898_v2 }
  0xa8   : > { %1840 = vmatpush3.bf16.msra.mxu1 %v1898_v2 }
  0xa9   : > { %v839_v12 = vpop.permute.xlu1 %838 }
  0xaa   : > { %v767_v29 = vpop.permute.xlu0 %766  ;;  %v935_v15 = vsel %vm896_vm6, %v2460_v61, %v839_v12  ;;  %1824 = vmatpush3.bf16.msra.mxu0 %v1898_v2 }
  0xab   : > { %v903_v14 = vsel %vm896_vm6, %v1648_v58, %v767_v29  ;;  %1372 = vmatmul.mubr.bf16.gmra.mrb[4].mxu1 %v935_v15 }
  0xac   : > { %1307 = vmatmul.mubr.bf16.gmra.mrb[4].mxu0 %v903_v14 }
  0xae   : > { %v809_v27 = vpop.permute.xlu0 %808 }
  0xaf   : > { %v923_v42 = vsel %vm896_vm6, %v1657_v59, %v809_v27 }
  0xb0   : > { %1314 = vmatprep.mubr.bf16.mxu0 %v923_v42 }
  0xb4   : > { %v881_v39 = vpop.permute.xlu1 %880 }
  0xb5   : > { %v955_v61 = vsel %vm896_vm6, %v1673_v25, %v881_v39 }
  0xb6   : > { %1379 = vmatprep.mubr.bf16.mxu1 %v955_v61 }
  0xb7   : > { %v769_v10 = vpop.permute.xlu0 %768 }
  0xb8   : > { %v841_v33 = vpop.permute.xlu1 %840  ;;  %v907_v58 = vsel %vm896_vm6, %v1649_v5, %v769_v10 }
  0xb9   : > { %v939_v41 = vsel %vm896_vm6, %v2487_v45, %v841_v33  ;;  %1315 = vmatmul.mubr.bf16.gmra.mrb[8].mxu0 %v907_v58  ;;  %v1683_v45 = vld [vmem:[%s2648_s2] ss:$0 sm:$0xff] }
  0xba   : > { %1380 = vmatmul.mubr.bf16.gmra.mrb[8].mxu1 %v939_v41 }
  0xbb   : > { %v811_v53 = vpop.permute.xlu0 %810 }
  0xbc   : > { %v927_v49 = vsel %vm896_vm6, %v1658_v48, %v811_v53 }
  0xbd   : > { %1322 = vmatprep.mubr.bf16.mxu0 %v927_v49 }
  0xc3   : > { %v883_v63 = vpop.permute.xlu1 %882 }
  0xc4   : > { %v959_v25 = vsel %vm896_vm6, %v1674_v18, %v883_v63 }
  0xc5   : > { %1387 = vmatprep.mubr.bf16.mxu1 %v959_v25 }
  0xc7   : > { %v843_v20 = vpop.permute.xlu1 %842 }
  0xc8   : > { %v943_v19 = vsel %vm896_vm6, %v2509_v47, %v843_v20 }
  0xc9   : > { %1388 = vmatmul.mubr.bf16.gmra.mrb[12].mxu1 %v943_v19 }
  0xca   : > { %v771_v23 = vpop.permute.xlu0 %770  ;;  %1829 = vmatprep.mubr.msk.bf16.mxu1 %vm896_vm6, %v1681_v21 }
  0xcb   : > { %v911_v5 = vsel %vm896_vm6, %v1650_v51, %v771_v23 }
  0xcc   : > { %1323 = vmatmul.mubr.bf16.gmra.mrb[12].mxu0 %v911_v5 }
  0xcd   : > { %1825 = vmatprep.mubr.msk.bf16.mxu0 %vm896_vm6, %v1679_v57 }
  0xd1   : > { %1830 = vmatmul.mubr.msk.bf16.vlgmr.msra.gmra.mrb[16].mxu1 %vm896_vm6, %v1682_v30 }
  0xd4   : > { %1826 = vmatmul.mubr.msk.bf16.vlgmr.msra.gmra.mrb[16].mxu0 %vm896_vm6, %v1680_v1 }
 0x16d   : > { %v1785_v6 = vpop.f32.mrb[0].mxu1 }
 0x16e   : > { %v1786_v16 = vpop.f32.mrb[1].mxu1 }
 0x16f   : > { %v1787_v4 = vadd.f32 %v1786_v16, %v1785_v6  ;;  %v1788_v36 = vpop.f32.mrb[2].mxu1 }
 0x170   : > { %v1789_v18 = vpop.f32.mrb[3].mxu1  ;;  %v1745_v51 = vpop.f32.mrb[0].mxu0 }
 0x171   : > { %v1790_v59 = vadd.f32 %v1789_v18, %v1788_v36  ;;  %v1746_v46 = vpop.f32.mrb[1].mxu0 }
 0x172   : > { %v1747_v11 = vadd.f32 %v1746_v46, %v1745_v51  ;;  %v1748_v9 = vpop.f32.mrb[2].mxu0 }
 0x173   : > { %v1749_v30 = vpop.f32.mrb[3].mxu0 }
 0x174   : > { %v1301_v40 = vadd.f32 %v1747_v11, %v1683_v45  ;;  %v1750_v48 = vadd.f32 %v1749_v30, %v1748_v9  ;;  %v1724_v9 = vld [vmem:[%s2648_s2 + $0x1] ss:$0 sm:$0xff] }
 0x176   : > { %v1304_v38 = vadd.f32 %v1750_v48, %v1683_v45  ;;  %v2619_v24 = vadd.f32 %v1787_v4, %v1301_v40 }
 0x178   : > { %v2621_v1 = vadd.f32 %v1790_v59, %v1304_v38 }
 0x17e   : > { %v1791_v47 = vpop.f32.mrb[4].mxu1 }
 0x17f   : > { %v1751_v26 = vpop.f32.mrb[4].mxu0  ;;  %v1792_v8 = vpop.f32.mrb[5].mxu1 }
 0x180   : > { %v1752_v43 = vpop.f32.mrb[5].mxu0  ;;  %v1793_v37 = vadd.f32 %v1792_v8, %v1791_v47  ;;  %v1794_v60 = vpop.f32.mrb[6].mxu1 }
 0x181   : > { %v1753_v62 = vadd.f32 %v1752_v43, %v1751_v26  ;;  %v1754_v57 = vpop.f32.mrb[6].mxu0  ;;  %v1795_v7 = vpop.f32.mrb[7].mxu1  ;;  %v1725_v43 = vld [vmem:[%s2648_s2 + $0x2] ss:$0 sm:$0xff] }
 0x182   : > { %v1755_v34 = vpop.f32.mrb[7].mxu0  ;;  %v1796_v56 = vadd.f32 %v1795_v7, %v1794_v60 }
 0x183   : > { %v1309_v21 = vadd.f32 %v1753_v62, %v1683_v45  ;;  %v1756_v35 = vadd.f32 %v1755_v34, %v1754_v57 }
 0x185   : > { %v1312_v3 = vadd.f32 %v1756_v35, %v1683_v45  ;;  %v1374_v55 = vadd.f32 %v1793_v37, %v1309_v21 }
 0x187   : > { %v1377_v54 = vadd.f32 %v1796_v56, %v1312_v3 }
 0x18c   : > { %v1757_v0 = vpop.f32.mrb[8].mxu0 }
 0x18d   : > { %v1797_v32 = vpop.f32.mrb[8].mxu1  ;;  %v1758_v31 = vpop.f32.mrb[9].mxu0 }
 0x18e   : > { %v1798_v13 = vpop.f32.mrb[9].mxu1  ;;  %v1759_v22 = vadd.f32 %v1758_v31, %v1757_v0  ;;  %v1760_v28 = vpop.f32.mrb[10].mxu0 }
 0x18f   : > { %v1799_v17 = vadd.f32 %v1798_v13, %v1797_v32  ;;  %v1800_v52 = vpop.f32.mrb[10].mxu1  ;;  %v1761_v44 = vpop.f32.mrb[11].mxu0 }
 0x190   : > { %v1801_v2 = vpop.f32.mrb[11].mxu1  ;;  %v1317_v12 = vadd.f32 %v1759_v22, %v1683_v45  ;;  %v1762_v29 = vadd.f32 %v1761_v44, %v1760_v28 }
 0x191   : > { %v1802_v50 = vadd.f32 %v1801_v2, %v1800_v52 }
 0x192   : > { %v1320_v15 = vadd.f32 %v1762_v29, %v1683_v45  ;;  %v1382_v14 = vadd.f32 %v1799_v17, %v1317_v12 }
 0x194   : > { %v1385_v27 = vadd.f32 %v1802_v50, %v1320_v15 }
 0x19c   : > { %v1803_v42 = vpop.f32.mrb[12].mxu1 }
 0x19d   : > { %v1804_v39 = vpop.f32.mrb[13].mxu1 }
 0x19e   : > { %v1805_v61 = vadd.f32 %v1804_v39, %v1803_v42  ;;  %v1806_v33 = vpop.f32.mrb[14].mxu1 }
 0x19f   : > { %v1763_v10 = vpop.f32.mrb[12].mxu0  ;;  %v1807_v41 = vpop.f32.mrb[15].mxu1 }
 0x1a0   : > { %v1764_v58 = vpop.f32.mrb[13].mxu0  ;;  %v1808_v53 = vadd.f32 %v1807_v41, %v1806_v33 }
 0x1a1   : > { %v1765_v49 = vadd.f32 %v1764_v58, %v1763_v10  ;;  %v1766_v63 = vpop.f32.mrb[14].mxu0 }
 0x1a2   : > { %v1767_v25 = vpop.f32.mrb[15].mxu0 }
 0x1a3   : > { %v1325_v20 = vadd.f32 %v1765_v49, %v1683_v45  ;;  %v1768_v19 = vadd.f32 %v1767_v25, %v1766_v63 }
 0x1a4   : > { %v1831_v23 = vpop.f32.mrb[16].mxu1 }
 0x1a5   : > { %v1328_v5 = vadd.f32 %v1768_v19, %v1683_v45  ;;  %v1390_v6 = vadd.f32 %v1805_v61, %v1325_v20  ;;  %v1446_v16 = vpop.f32.mrb[17].mxu1 }
 0x1a6   : > { %v1447_v4 = vadd.f32 %v1446_v16, %v1382_v14  ;;  %v1832_v36 = vpop.f32.mrb[18].mxu1 }
 0x1a7   : > { %v1827_v18 = vpop.f32.mrb[16].mxu0  ;;  %v1455_v51 = vadd.f32 %v1831_v23, %v1390_v6  ;;  %v1393_v59 = vadd.f32 %v1808_v53, %v1328_v5  ;;  %v1449_v46 = vpop.f32.mrb[19].mxu1 }
 0x1a8   : > { %v1439_v11 = vadd.f32 %v1827_v18, %v1374_v55  ;;  %v1430_v30 = vpop.f32.mrb[17].mxu0  ;;  %v1465_v40 = vmax.f32 %v1447_v4, 0.0  ;;  %v1450_v48 = vadd.f32 %v1449_v46, %v1385_v27 }
 0x1a9   : > { %v1431_v45 = vadd.f32 %v1430_v30, %v2619_v24  ;;  %v1467_v38 = vmax.f32 %v1455_v51, 0.0  ;;  %v1828_v47 = vpop.f32.mrb[18].mxu0  ;;  %v1458_v26 = vadd.f32 %v1832_v36, %v1393_v59 }
 0x1aa   : > { %v1463_v8 = vmax.f32 %v1439_v11, 0.0  ;;  %v1442_v37 = vadd.f32 %v1828_v47, %v1377_v54  ;;  %v1478_v60 = vmul.f32 %v1724_v9, %v1465_v40  ;;  %v1433_v62 = vpop.f32.mrb[19].mxu0  ;;  %v1466_v57 = vmax.f32 %v1450_v48, 0.0 }
 0x1ab   : > { %v1461_v7 = vmax.f32 %v1431_v45, 0.0  ;;  %v1480_v34 = vmul.f32 %v1724_v9, %v1467_v38  ;;  %v1434_v56 = vadd.f32 %v1433_v62, %v2621_v1  ;;  %v1468_v21 = vmax.f32 %v1458_v26, 0.0 }
 0x1ac   : > { %v1476_v35 = vmul.f32 %v1724_v9, %v1463_v8  ;;  %v1464_v24 = vmax.f32 %v1442_v37, 0.0  ;;  %v1491_v3 = vadd.f32 %v1725_v43, %v1478_v60  ;;  %v1479_v55 = vmul.f32 %v1724_v9, %v1466_v57 }
 0x1ad   : > { %v1474_v32 = vmul.f32 %v1724_v9, %v1461_v7  ;;  %v1493_v0 = vadd.f32 %v1725_v43, %v1480_v34  ;;  %v1462_v13 = vmax.f32 %v1434_v56, 0.0  ;;  %v1481_v31 = vmul.f32 %v1724_v9, %v1468_v21 }
 0x1ae   : > { %v1489_v54 = vadd.f32 %v1725_v43, %v1476_v35  ;;  %v1477_v17 = vmul.f32 %v1724_v9, %v1464_v24  ;;  %v1499_v52 = vpack.c.bf16 %v1491_v3, %v1491_v3  ;;  %v1492_v22 = vadd.f32 %v1725_v43, %v1479_v55 }
 0x1af   : > { %v1487_v28 = vadd.f32 %v1725_v43, %v1474_v32  ;;  %v1501_v2 = vpack.c.bf16 %v1493_v0, %v1493_v0  ;;  %v1475_v1 = vmul.f32 %v1724_v9, %v1462_v13  ;;  %v1494_v44 = vadd.f32 %v1725_v43, %v1481_v31 }
 0x1b0   : > { %v1497_v50 = vpack.c.bf16 %v1489_v54, %v1489_v54  ;;  %v1490_v12 = vadd.f32 %v1725_v43, %v1477_v17  ;;  %1508 = vst.msk [vmem:[%s170_s28 + $0x10] sm:$0xf] %vm1503_vm7, %v1499_v52  ;;  %v1500_v29 = vpack.c.bf16 %v1492_v22, %v1492_v22 }
 0x1b1   : > { %v1495_v15 = vpack.c.bf16 %v1487_v28, %v1487_v28  ;;  %1510 = vst.msk [vmem:[%s170_s28 + $0x18] sm:$0xf] %vm1503_vm7, %v1501_v2  ;;  %v1488_v14 = vadd.f32 %v1725_v43, %v1475_v1  ;;  %v1502_v27 = vpack.c.bf16 %v1494_v44, %v1494_v44 }
 0x1b2   : > { %1506 = vst.msk [vmem:[%s170_s28 + $0x8] sm:$0xf] %vm1503_vm7, %v1497_v50  ;;  %v1498_v42 = vpack.c.bf16 %v1490_v12, %v1490_v12  ;;  %1509 = vst.msk [vmem:[%s170_s28 + $0x14] sm:$0xf] %vm1503_vm7, %v1500_v29 }
 0x1b3   : > { %1504 = vst.msk [vmem:[%s170_s28] sm:$0xf] %vm1503_vm7, %v1495_v15  ;;  %v1496_v39 = vpack.c.bf16 %v1488_v14, %v1488_v14  ;;  %1511 = vst.msk [vmem:[%s170_s28 + $0x1c] sm:$0xf] %vm1503_vm7, %v1502_v27 }
 0x1b4   : > { %1507 = vst.msk [vmem:[%s170_s28 + $0xc] sm:$0xf] %vm1503_vm7, %v1498_v42 }
 0x1b5   : > { %1505 = vst.msk [vmem:[%s170_s28 + $0x4] sm:$0xf] %vm1503_vm7, %v1496_v39 }
 0x1b6 PF: > { %s13_s12 = sadd.s32 1, %s1905_s12  }
 0x1b7   : > { %p10_p4 = scmp.ge.s32.totalorder %s13_s12, 4  }
 0x1b9   :  { %12 = sbr.rel (!%p10_p4) target bundleno = 1 (0x1), region = 64 }

// kernel: _lambda_.59
= control target key start
LH: loop header
LB: loop body
LE: loop exit
PB: predicated region body
PF: predicated region fallthrough
CT: control target
= control target key end

     0   :  { %vm394_vm0 = vcmask 97280   ;;  %s822_s1 = inlined_call_operand.vmem [shape: bf16[256,12], index: 1, kind: input, shape index: {}]   ;;  %s823_s0 = inlined_call_operand.vmem [shape: bf16[128,256], index: 0, kind: input, shape index: {}]   ;;  %s824_s2 = inlined_call_operand.vmem [shape: f32[1,12], index: 2, kind: input, shape index: {}]   ;;  %s825_s3 = inlined_call_operand.vmem [shape: f32[128,12], index: 3, kind: input, shape index: {}]   ;;  %s826_s4 = inlined_call_operand.vmem [shape: f32[128,12], index: 4, kind: output, shape index: {}]  }
   0x1   :  { %v528_v0 = vld [vmem:[%s822_s1 + $0x40] sm:$0xff]   ;;  %v530_v2 = vld [vmem:[%s822_s1 + $0x48] sm:$0xff]   ;;  %v532_v4 = vld [vmem:[%s822_s1 + $0x50] sm:$0xff]  }
   0x2   :  { %v529_v1 = vld [vmem:[%s822_s1] sm:$0xff]   ;;  %448 = vmatprep.subr.bf16.mxu0 %v528_v0  ;;  %512 = vmatprep.subr.bf16.mxu1 %v528_v0  ;;  %v531_v3 = vld [vmem:[%s822_s1 + $0x8] sm:$0xff]   ;;  %v533_v5 = vld [vmem:[%s822_s1 + $0x10] sm:$0xff]  }
   0x3   :  { %449 = vmatpush3.bf16.msra.mxu0 %v529_v1  ;;  %520 = vmatpush3.bf16.msra.mxu1 %v529_v1  ;;  %v534_v6 = vld [vmem:[%s822_s1 + $0x58] sm:$0xff]   ;;  %v536_v8 = vld [vmem:[%s822_s1 + $0x60] sm:$0xff]   ;;  %v538_v10 = vld [vmem:[%s822_s1 + $0x68] sm:$0xff]  }
   0x4   :  { %450 = vmatprep.subr.bf16.mxu0 %v530_v2  ;;  %513 = vmatprep.subr.bf16.mxu1 %v530_v2  ;;  %v535_v7 = vld [vmem:[%s822_s1 + $0x18] sm:$0xff]   ;;  %v537_v9 = vld [vmem:[%s822_s1 + $0x20] sm:$0xff]   ;;  %v539_v13 = vld [vmem:[%s822_s1 + $0x28] sm:$0xff]  }
   0x5   :  { %v546_v11 = vld [vmem:[%s823_s0 + $0x4] ss:$8 sps:$4 sm:$0xff]   ;;  %v540_v14 = vld [vmem:[%s822_s1 + $0x70] sm:$0xff]   ;;  %v542_v16 = vld [vmem:[%s822_s1 + $0x78] sm:$0xff]  }
   0x6   :  { %v549_v12 = vld [vmem:[%s823_s0 + $0x44] ss:$8 sps:$4 sm:$0xff]   ;;  %281 = vmatprep.mubr.bf16.mxu0 %v546_v11  ;;  %v541_v15 = vld [vmem:[%s822_s1 + $0x30] sm:$0xff]   ;;  %v543_v17 = vld [vmem:[%s822_s1 + $0x38] sm:$0xff]  }
   0x7   :  { %451 = vmatpush3.bf16.msra.mxu0 %v531_v3  ;;  %521 = vmatpush3.bf16.msra.mxu1 %v531_v3  ;;  %v544_v18 = vld [vmem:[%s823_s0] ss:$8 sps:$4 sm:$0xff]   ;;  %v550_v20 = vld [vmem:[%s823_s0 + $0x14] ss:$8 sps:$4 sm:$0xff]   ;;  %v554_v22 = vld [vmem:[%s823_s0 + $0x10] ss:$8 sps:$4 sm:$0xff]  }
   0x8   :  { %452 = vmatprep.subr.bf16.mxu0 %v532_v4  ;;  %514 = vmatprep.subr.bf16.mxu1 %v532_v4  ;;  %v547_v19 = vld [vmem:[%s823_s0 + $0x40] ss:$8 sps:$4 sm:$0xff]   ;;  %v552_v21 = vld [vmem:[%s823_s0 + $0x54] ss:$8 sps:$4 sm:$0xff]   ;;  %v555_v23 = vld [vmem:[%s823_s0 + $0x50] ss:$8 sps:$4 sm:$0xff]  }
   0x9   :  { %313 = vmatprep.mubr.bf16.mxu1 %v549_v12  ;;  %v556_v24 = vld [vmem:[%s823_s0 + $0x24] ss:$8 sps:$4 sm:$0xff]   ;;  %v560_v26 = vld [vmem:[%s823_s0 + $0x20] ss:$8 sps:$4 sm:$0xff]   ;;  %v562_v28 = vld [vmem:[%s823_s0 + $0x34] ss:$8 sps:$4 sm:$0xff]  }
   0xa   :  { %v558_v25 = vld [vmem:[%s823_s0 + $0x64] ss:$8 sps:$4 sm:$0xff]   ;;  %v561_v27 = vld [vmem:[%s823_s0 + $0x60] ss:$8 sps:$4 sm:$0xff]   ;;  %v564_v29 = vld [vmem:[%s823_s0 + $0x74] ss:$8 sps:$4 sm:$0xff]  }
   0xb   :  { %453 = vmatpush3.bf16.msra.mxu0 %v533_v5  ;;  %522 = vmatpush3.bf16.msra.mxu1 %v533_v5  ;;  %v566_v30 = vld [vmem:[%s823_s0 + $0x30] ss:$8 sps:$4 sm:$0xff]   ;;  %v692_v34 = vld [vmem:[%s824_s2] ss:$0 sm:$0xff]  ;;  %v347_v49 = vld [vmem:[%s825_s3 + $0x8] sm:$0xff] }
   0xc   :  { %454 = vmatprep.subr.bf16.mxu0 %v534_v6  ;;  %515 = vmatprep.subr.bf16.mxu1 %v534_v6  ;;  %v567_v31 = vld [vmem:[%s823_s0 + $0x70] ss:$8 sps:$4 sm:$0xff]   ;;  %v346_v41 = vld [vmem:[%s825_s3] sm:$0xff]  ;;  %v355_v50 = vld [vmem:[%s825_s3 + $0x48] sm:$0xff] }
   0xd   :  { %v354_v42 = vld [vmem:[%s825_s3 + $0x40] sm:$0xff]  ;;  %v348_v5 = vld [vmem:[%s825_s3 + $0x10] sm:$0xff] }
   0xe   :  { %v356_v6 = vld [vmem:[%s825_s3 + $0x50] sm:$0xff] }
   0xf   :  { %455 = vmatpush3.bf16.msra.mxu0 %v535_v7  ;;  %523 = vmatpush3.bf16.msra.mxu1 %v535_v7 }
  0x10   :  { %456 = vmatprep.subr.bf16.mxu0 %v536_v8  ;;  %516 = vmatprep.subr.bf16.mxu1 %v536_v8 }
  0x13   :  { %457 = vmatpush3.bf16.msra.mxu0 %v537_v9  ;;  %524 = vmatpush3.bf16.msra.mxu1 %v537_v9 }
  0x14   :  { %458 = vmatprep.subr.bf16.mxu0 %v538_v10  ;;  %517 = vmatprep.subr.bf16.mxu1 %v538_v10 }
  0x17   :  { %459 = vmatpush3.bf16.msra.mxu0 %v539_v13  ;;  %525 = vmatpush3.bf16.msra.mxu1 %v539_v13  ;;  %v349_v13 = vld [vmem:[%s825_s3 + $0x18] sm:$0xff] }
  0x18   :  { %460 = vmatprep.subr.bf16.mxu0 %v540_v14  ;;  %518 = vmatprep.subr.bf16.mxu1 %v540_v14  ;;  %v357_v14 = vld [vmem:[%s825_s3 + $0x58] sm:$0xff] }
  0x1b   :  { %461 = vmatpush3.bf16.msra.mxu0 %v541_v15  ;;  %526 = vmatpush3.bf16.msra.mxu1 %v541_v15 }
  0x1c   :  { %462 = vmatprep.subr.bf16.mxu0 %v542_v16  ;;  %519 = vmatprep.subr.bf16.mxu1 %v542_v16 }
  0x1f   :  { %463 = vmatpush3.bf16.msra.mxu0 %v543_v17  ;;  %527 = vmatpush3.bf16.msra.mxu1 %v543_v17 }
  0x22   :  { %282 = vmatmul.mubr.bf16.vlgmr.msra.gmra.mrb[0].mxu0 %v544_v18  ;;  %314 = vmatmul.mubr.bf16.vlgmr.msra.gmra.mrb[0].mxu1 %v547_v19 }
  0x23   :  { %289 = vmatprep.mubr.bf16.mxu0 %v550_v20  ;;  %321 = vmatprep.mubr.bf16.mxu1 %v552_v21 }
  0x2a   :  { %290 = vmatmul.mubr.bf16.gmra.mrb[4].mxu0 %v554_v22  ;;  %322 = vmatmul.mubr.bf16.gmra.mrb[4].mxu1 %v555_v23 }
  0x2b   :  { %297 = vmatprep.mubr.bf16.mxu0 %v556_v24  ;;  %329 = vmatprep.mubr.bf16.mxu1 %v558_v25 }
  0x32   :  { %298 = vmatmul.mubr.bf16.gmra.mrb[8].mxu0 %v560_v26  ;;  %330 = vmatmul.mubr.bf16.gmra.mrb[8].mxu1 %v561_v27 }
  0x33   :  { %305 = vmatprep.mubr.bf16.mxu0 %v562_v28  ;;  %337 = vmatprep.mubr.bf16.mxu1 %v564_v29 }
  0x3a   :  { %306 = vmatmul.mubr.bf16.gmra.mrb[12].mxu0 %v566_v30  ;;  %338 = vmatmul.mubr.bf16.gmra.mrb[12].mxu1 %v567_v31 }
  0xf5   :  { %v464_v32 = vpop.f32.mrb[0].mxu0  ;;  %v488_v33 = vpop.f32.mrb[0].mxu1 }
  0xf6   :  { %v465_v35 = vpop.f32.mrb[1].mxu0  ;;  %v489_v36 = vpop.f32.mrb[1].mxu1 }
  0xf7   :  { %v466_v37 = vadd.f32 %v465_v35, %v464_v32  ;;  %v490_v38 = vadd.f32 %v489_v36, %v488_v33  ;;  %v467_v39 = vpop.f32.mrb[2].mxu0  ;;  %v491_v40 = vpop.f32.mrb[2].mxu1  ;;  %v350_v33 = vld [vmem:[%s825_s3 + $0x20] sm:$0xff] }
  0xf8   :  { %v468_v43 = vpop.f32.mrb[3].mxu0  ;;  %v492_v44 = vpop.f32.mrb[3].mxu1  ;;  %v358_v35 = vld [vmem:[%s825_s3 + $0x60] sm:$0xff] }
  0xf9   :  { %v284_v45 = vadd.f32 %v466_v37, %v692_v34  ;;  %v316_v46 = vadd.f32 %v490_v38, %v692_v34  ;;  %v469_v47 = vadd.f32 %v468_v43, %v467_v39  ;;  %v493_v48 = vadd.f32 %v492_v44, %v491_v40  ;;  %v359_v43 = vld [vmem:[%s825_s3 + $0x68] sm:$0xff] }
  0xfb   :  { %v362_v51 = vadd.f32 %v346_v41, %v284_v45  ;;  %v370_v52 = vadd.f32 %v354_v42, %v316_v46  ;;  %v287_v53 = vadd.f32 %v469_v47, %v692_v34  ;;  %v319_v54 = vadd.f32 %v493_v48, %v692_v34  ;;  %v351_v42 = vld [vmem:[%s825_s3 + $0x28] sm:$0xff] }
  0xfd   :  { %v378_v55 = vmax.f32 %v362_v51, 0.0  ;;  %v386_v56 = vmax.f32 %v370_v52, 0.0  ;;  %v363_v57 = vadd.f32 %v347_v49, %v287_v53  ;;  %v371_v58 = vadd.f32 %v355_v50, %v319_v54  ;;  %v470_v59 = vpop.f32.mrb[4].mxu0  ;;  %v494_v60 = vpop.f32.mrb[4].mxu1 }
  0xfe   :  { %v471_v61 = vpop.f32.mrb[5].mxu0  ;;  %v495_v62 = vpop.f32.mrb[5].mxu1 }
  0xff   :  { %395 = vst.msk [vmem:[%s826_s4] sm:$0xff] %vm394_vm0, %v378_v55  ;;  %403 = vst.msk [vmem:[%s826_s4 + $0x40] sm:$0xff] %vm394_vm0, %v386_v56  ;;  %v379_v63 = vmax.f32 %v363_v57, 0.0  ;;  %v387_v0 = vmax.f32 %v371_v58, 0.0  ;;  %v472_v1 = vadd.f32 %v471_v61, %v470_v59  ;;  %v496_v2 = vadd.f32 %v495_v62, %v494_v60  ;;  %v473_v3 = vpop.f32.mrb[6].mxu0  ;;  %v497_v4 = vpop.f32.mrb[6].mxu1 }
 0x100   :  { %v474_v7 = vpop.f32.mrb[7].mxu0  ;;  %v498_v8 = vpop.f32.mrb[7].mxu1  ;;  %v352_v62 = vld [vmem:[%s825_s3 + $0x30] sm:$0xff] }
 0x101   :  { %396 = vst.msk [vmem:[%s826_s4 + $0x8] sm:$0xff] %vm394_vm0, %v379_v63  ;;  %404 = vst.msk [vmem:[%s826_s4 + $0x48] sm:$0xff] %vm394_vm0, %v387_v0  ;;  %v292_v9 = vadd.f32 %v472_v1, %v692_v34  ;;  %v324_v10 = vadd.f32 %v496_v2, %v692_v34  ;;  %v475_v11 = vadd.f32 %v474_v7, %v473_v3  ;;  %v360_v63 = vld [vmem:[%s825_s3 + $0x70] sm:$0xff]  ;;  %v361_v7 = vld [vmem:[%s825_s3 + $0x78] sm:$0xff] }
 0x102   :  { %v499_v12 = vadd.f32 %v498_v8, %v497_v4 }
 0x103   :  { %v364_v15 = vadd.f32 %v348_v5, %v292_v9  ;;  %v372_v16 = vadd.f32 %v356_v6, %v324_v10  ;;  %v295_v17 = vadd.f32 %v475_v11, %v692_v34  ;;  %v353_v6 = vld [vmem:[%s825_s3 + $0x38] sm:$0xff] }
 0x104   :  { %v327_v18 = vadd.f32 %v499_v12, %v692_v34 }
 0x105   :  { %v380_v19 = vmax.f32 %v364_v15, 0.0  ;;  %v388_v20 = vmax.f32 %v372_v16, 0.0  ;;  %v365_v21 = vadd.f32 %v349_v13, %v295_v17  ;;  %v476_v23 = vpop.f32.mrb[8].mxu0  ;;  %v500_v24 = vpop.f32.mrb[8].mxu1 }
 0x106   :  { %v373_v22 = vadd.f32 %v357_v14, %v327_v18  ;;  %v477_v25 = vpop.f32.mrb[9].mxu0  ;;  %v501_v26 = vpop.f32.mrb[9].mxu1 }
 0x107   :  { %397 = vst.msk [vmem:[%s826_s4 + $0x10] sm:$0xff] %vm394_vm0, %v380_v19  ;;  %405 = vst.msk [vmem:[%s826_s4 + $0x50] sm:$0xff] %vm394_vm0, %v388_v20  ;;  %v381_v27 = vmax.f32 %v365_v21, 0.0  ;;  %v478_v29 = vadd.f32 %v477_v25, %v476_v23  ;;  %v502_v30 = vadd.f32 %v501_v26, %v500_v24  ;;  %v479_v31 = vpop.f32.mrb[10].mxu0  ;;  %v503_v32 = vpop.f32.mrb[10].mxu1 }
 0x108   :  { %v389_v28 = vmax.f32 %v373_v22, 0.0  ;;  %v480_v36 = vpop.f32.mrb[11].mxu0  ;;  %v504_v37 = vpop.f32.mrb[11].mxu1 }
 0x109   :  { %398 = vst.msk [vmem:[%s826_s4 + $0x18] sm:$0xff] %vm394_vm0, %v381_v27  ;;  %v300_v38 = vadd.f32 %v478_v29, %v692_v34  ;;  %v332_v39 = vadd.f32 %v502_v30, %v692_v34  ;;  %v481_v40 = vadd.f32 %v480_v36, %v479_v31  ;;  %v505_v41 = vadd.f32 %v504_v37, %v503_v32 }
 0x10a   :  { %406 = vst.msk [vmem:[%s826_s4 + $0x58] sm:$0xff] %vm394_vm0, %v389_v28 }
 0x10b   :  { %v366_v44 = vadd.f32 %v350_v33, %v300_v38  ;;  %v374_v45 = vadd.f32 %v358_v35, %v332_v39  ;;  %v303_v46 = vadd.f32 %v481_v40, %v692_v34  ;;  %v335_v47 = vadd.f32 %v505_v41, %v692_v34 }
 0x10d   :  { %v382_v48 = vmax.f32 %v366_v44, 0.0  ;;  %v390_v49 = vmax.f32 %v374_v45, 0.0  ;;  %v367_v50 = vadd.f32 %v351_v42, %v303_v46  ;;  %v375_v51 = vadd.f32 %v359_v43, %v335_v47  ;;  %v482_v52 = vpop.f32.mrb[12].mxu0  ;;  %v506_v53 = vpop.f32.mrb[12].mxu1 }
 0x10e   :  { %v483_v54 = vpop.f32.mrb[13].mxu0  ;;  %v507_v55 = vpop.f32.mrb[13].mxu1 }
 0x10f   :  { %399 = vst.msk [vmem:[%s826_s4 + $0x20] sm:$0xff] %vm394_vm0, %v382_v48  ;;  %407 = vst.msk [vmem:[%s826_s4 + $0x60] sm:$0xff] %vm394_vm0, %v390_v49  ;;  %v383_v56 = vmax.f32 %v367_v50, 0.0  ;;  %v391_v57 = vmax.f32 %v375_v51, 0.0  ;;  %v484_v58 = vadd.f32 %v483_v54, %v482_v52  ;;  %v508_v59 = vadd.f32 %v507_v55, %v506_v53  ;;  %v485_v60 = vpop.f32.mrb[14].mxu0  ;;  %v509_v61 = vpop.f32.mrb[14].mxu1 }
 0x110   :  { %v486_v0 = vpop.f32.mrb[15].mxu0  ;;  %v510_v1 = vpop.f32.mrb[15].mxu1 }
 0x111   :  { %400 = vst.msk [vmem:[%s826_s4 + $0x28] sm:$0xff] %vm394_vm0, %v383_v56  ;;  %408 = vst.msk [vmem:[%s826_s4 + $0x68] sm:$0xff] %vm394_vm0, %v391_v57  ;;  %v308_v2 = vadd.f32 %v484_v58, %v692_v34  ;;  %v340_v3 = vadd.f32 %v508_v59, %v692_v34  ;;  %v487_v4 = vadd.f32 %v486_v0, %v485_v60 }
 0x112   :  { %v511_v5 = vadd.f32 %v510_v1, %v509_v61 }
 0x113   :  { %v368_v8 = vadd.f32 %v352_v62, %v308_v2  ;;  %v376_v9 = vadd.f32 %v360_v63, %v340_v3  ;;  %v311_v10 = vadd.f32 %v487_v4, %v692_v34 }
 0x114   :  { %v343_v11 = vadd.f32 %v511_v5, %v692_v34 }
 0x115   :  { %v384_v12 = vmax.f32 %v368_v8, 0.0  ;;  %v392_v13 = vmax.f32 %v376_v9, 0.0  ;;  %v369_v14 = vadd.f32 %v353_v6, %v311_v10 }
 0x116   :  { %v377_v15 = vadd.f32 %v361_v7, %v343_v11 }
 0x117   :  { %401 = vst.msk [vmem:[%s826_s4 + $0x30] sm:$0xff] %vm394_vm0, %v384_v12  ;;  %409 = vst.msk [vmem:[%s826_s4 + $0x70] sm:$0xff] %vm394_vm0, %v392_v13  ;;  %v385_v16 = vmax.f32 %v369_v14, 0.0 }
 0x118   :  { %v393_v17 = vmax.f32 %v377_v15, 0.0 }
 0x119   :  { %402 = vst.msk [vmem:[%s826_s4 + $0x38] sm:$0xff] %vm394_vm0, %v385_v16 }
 0x11a   :  { %410 = vst.msk [vmem:[%s826_s4 + $0x78] sm:$0xff] %vm394_vm0, %v393_v17 }

</bundles_post_ra>
